<compile_context>
chip_gen: v7x
topology: tpu7x:2x2x1
jax: 0.10.0
libtpu: 0.0.40
codegen_flags: <defaults>
</compile_context>

<pallas_src>
import math

import jax
import jax.numpy as jnp
from jax.experimental import pallas as pl
from jax.experimental.pallas import tpu as pltpu

# --- synthetic "ProtBERT" config (small logical shapes, same structure) -----
SEQ = 8          # tokenized sequence length (<= 1024 in the real module)
HIDDEN = 32      # hidden_size
N_HEADS = 4      # num_attention_heads
HEAD_DIM = HIDDEN // N_HEADS   # 8
FFN = 64         # intermediate_size
N_LAYERS = 2     # num_hidden_layers
VOCAB = 30       # ProtBERT vocab size
EPS = 1e-12      # BERT layer_norm_eps

# --- lane-dense padded (physical) shapes ------------------------------------
D_PAD = 128                    # hidden padded to one full 128-lane tile
FFN_PAD = 128                  # FFN padded to the minimum lane-aligned width
HEADS_PAD = D_PAD // HEAD_DIM  # 16 heads; heads >= N_HEADS are identically 0
N_VEC_ROWS = 16                # consolidated per-layer (1, D) vectors
# vec row layout: 0=bq(pre-scaled) 1=bk 2=bv 3=bo 4=ln1_g 5=ln1_b 6=b2 7=ln2_g 8=ln2_b

ATTN_SCALE = 1.0 / math.sqrt(HEAD_DIM)


# ----------------------------- fused Pallas kernel --------------------------
def fused_bert_kernel(x_ref, embln_ref, wqkv_ref, wo_ref, w1_ref, w2_ref,
                      vec_ref, bffn_ref, o_ref):
    """Embedding LayerNorm + N_LAYERS post-LN BERT layers, fully unrolled."""
    # lane-liveness mask, broadcast ONCE (JAX does not CSE broadcast_in_dim)
    live = jax.lax.broadcasted_iota(jnp.int32, (SEQ, D_PAD), 1) < HIDDEN

    def layernorm(x, g, b):
        # LayerNorm over the real HIDDEN lanes only; padded lanes stay exactly
        # 0 because g/b are zero-padded and the deviation is masked.
        mu = jnp.sum(x, axis=-1, keepdims=True) * (1.0 / HIDDEN)
        d = jnp.where(live, x - mu, 0.0)
        var = jnp.sum(d * d, axis=-1, keepdims=True) * (1.0 / HIDDEN)
        return d * jax.lax.rsqrt(var + EPS) * g + b

    def gelu(x):
        # TODO(synk): real ProtBERT uses exact erf GELU; tanh approximation here.
        return 0.5 * x * (1.0 + jnp.tanh(0.7978845608028654
                                         * (x + 0.044715 * x * x * x)))

    # embedding LayerNorm into the resident activation value
    h = layernorm(x_ref[...], embln_ref[0:1, :], embln_ref[1:2, :])

    # both encoder layers unrolled: single grid step, all weights already in VMEM
    for layer in range(N_LAYERS):
        vec = vec_ref[layer]                               # (N_VEC_ROWS, D_PAD)

        # fused QKV projection: one bf16 MXU matmul, f32 accumulation
        qkv = jnp.dot(h.astype(jnp.bfloat16), wqkv_ref[layer],
                      preferred_element_type=jnp.float32)  # (SEQ, 3*D_PAD)
        # 1/sqrt(HEAD_DIM) is already folded into Wq / bq at pack time.
        q = qkv[:, 0 * D_PAD:1 * D_PAD] + vec[0:1, :]
        k = qkv[:, 1 * D_PAD:2 * D_PAD] + vec[1:2, :]
        v = qkv[:, 2 * D_PAD:3 * D_PAD] + vec[2:3, :]

        # Batched multi-head attention, bf16 operands / f32 accumulation.
        # The padded heads (>= N_HEADS) are identically zero and contribute
        # exactly 0 to ctx; they are kept so the head split/merge reshapes
        # stay on the proven lane-aligned (SEQ,128)<->(SEQ,16,8) path
        # (sub-tile (SEQ,32) reshapes are not guaranteed to lower in Mosaic).
        qh = q.reshape(SEQ, HEADS_PAD, HEAD_DIM).astype(jnp.bfloat16)
        kh = k.reshape(SEQ, HEADS_PAD, HEAD_DIM).astype(jnp.bfloat16)
        vh = v.reshape(SEQ, HEADS_PAD, HEAD_DIM).astype(jnp.bfloat16)
        s = jnp.einsum("qhd,khd->hqk", qh, kh,
                       preferred_element_type=jnp.float32)
        # TODO(synk): no attention mask -- a single un-padded sequence, as in
        #             the original forward (one input, no padding tokens).
        s = s - jnp.max(s, axis=-1, keepdims=True)
        p = jnp.exp(s)
        p = p * pl.reciprocal(jnp.sum(p, axis=-1, keepdims=True), approx=True)
        ctx = jnp.einsum("hqk,khd->qhd", p.astype(jnp.bfloat16), vh,
                         preferred_element_type=jnp.float32).reshape(SEQ, D_PAD)

        # output projection + residual + LayerNorm
        attn = jnp.dot(ctx.astype(jnp.bfloat16), wo_ref[layer],
                       preferred_element_type=jnp.float32) + vec[3:4, :]
        h1 = layernorm(h + attn, vec[4:5, :], vec[5:6, :])

        # feed-forward (FFN padded only up to 128 lanes)
        ff = jnp.dot(h1.astype(jnp.bfloat16), w1_ref[layer],
                     preferred_element_type=jnp.float32) + bffn_ref[layer, 0:1, :]
        ff = gelu(ff)
        ff = jnp.dot(ff.astype(jnp.bfloat16), w2_ref[layer],
                     preferred_element_type=jnp.float32) + vec[6:7, :]
        h = layernorm(h1 + ff, vec[7:8, :], vec[8:9, :])

    o_ref[...] = h          # single store of the resident activation


# ----------------------------- pallas_call wrapper --------------------------
def fused_encoder(x_pad, embln, wqkv, wo, w1, w2, vec, bffn):
    flops_layer = (2 * SEQ * D_PAD * 3 * D_PAD            # QKV
                   + 4 * HEADS_PAD * SEQ * SEQ * HEAD_DIM  # scores + context
                   + 2 * SEQ * D_PAD * D_PAD               # output projection
                   + 4 * SEQ * D_PAD * FFN_PAD)            # FFN up + down
    trans_layer = HEADS_PAD * SEQ * SEQ + SEQ * FFN_PAD + 5 * SEQ
    bytes_acc = (2 * SEQ * D_PAD * 4 + 8 * D_PAD * 4
                 + N_LAYERS * (3 * D_PAD * D_PAD + D_PAD * D_PAD
                               + 2 * D_PAD * FFN_PAD) * 2          # bf16 weights
                 + N_LAYERS * (N_VEC_ROWS * D_PAD + 8 * FFN_PAD) * 4)

    vmem_full = pl.BlockSpec(memory_space=pltpu.MemorySpace.VMEM)  # whole array
    return pl.pallas_call(
        fused_bert_kernel,
        out_shape=jax.ShapeDtypeStruct((SEQ, D_PAD), jnp.float32),
        in_specs=[vmem_full] * 8,
        out_specs=vmem_full,
        cost_estimate=pl.CostEstimate(
            flops=N_LAYERS * flops_layer,
            transcendentals=N_LAYERS * trans_layer,
            bytes_accessed=bytes_acc),
    )(x_pad, embln, wqkv, wo, w1, w2, vec, bffn)


# ----------------------------- parameter setup -------------------------------
def init_params(key):
    scale = 0.02
    keys = iter(jax.random.split(key, 3 + 6 * N_LAYERS))
    params = {
        "word_emb": scale * jax.random.normal(next(keys), (VOCAB, HIDDEN), jnp.float32),
        "pos_emb": scale * jax.random.normal(next(keys), (SEQ, HIDDEN), jnp.float32),
        "type_emb": scale * jax.random.normal(next(keys), (1, HIDDEN), jnp.float32),
        "emb_ln_g": jnp.ones((HIDDEN,), jnp.float32),
        "emb_ln_b": jnp.zeros((HIDDEN,), jnp.float32),
        "layers": [],
    }
    for _ in range(N_LAYERS):
        params["layers"].append(dict(
            wq=scale * jax.random.normal(next(keys), (HIDDEN, HIDDEN), jnp.float32),
            wk=scale * jax.random.normal(next(keys), (HIDDEN, HIDDEN), jnp.float32),
            wv=scale * jax.random.normal(next(keys), (HIDDEN, HIDDEN), jnp.float32),
            wo=scale * jax.random.normal(next(keys), (HIDDEN, HIDDEN), jnp.float32),
            w1=scale * jax.random.normal(next(keys), (HIDDEN, FFN), jnp.float32),
            w2=scale * jax.random.normal(next(keys), (FFN, HIDDEN), jnp.float32),
            bq=jnp.zeros((HIDDEN,), jnp.float32),
            bk=jnp.zeros((HIDDEN,), jnp.float32),
            bv=jnp.zeros((HIDDEN,), jnp.float32),
            bo=jnp.zeros((HIDDEN,), jnp.float32),
            b1=jnp.zeros((FFN,), jnp.float32),
            b2=jnp.zeros((HIDDEN,), jnp.float32),
            ln1_g=jnp.ones((HIDDEN,), jnp.float32),
            ln1_b=jnp.zeros((HIDDEN,), jnp.float32),
            ln2_g=jnp.ones((HIDDEN,), jnp.float32),
            ln2_b=jnp.zeros((HIDDEN,), jnp.float32),
        ))
    return params


def _pad2(a, rows, cols):
    return jnp.zeros((rows, cols), a.dtype).at[:a.shape[0], :a.shape[1]].set(a)


def _assert_zero(a):
    assert float(jnp.max(jnp.abs(a.astype(jnp.float32)))) == 0.0, \
        "padded lanes/rows must be exactly zero (masked LayerNorm invariant)"


def pack_params(params):
    """Zero-pad to lane-dense shapes, fold the attention scale into Wq/bq,
    and stack per-layer weights on axis 0."""
    embln = jnp.zeros((8, D_PAD), jnp.float32)
    embln = embln.at[0, :HIDDEN].set(params["emb_ln_g"])
    embln = embln.at[1, :HIDDEN].set(params["emb_ln_b"])

    wqkv_l, wo_l, w1_l, w2_l, vec_l, bffn_l = [], [], [], [], [], []
    for L in params["layers"]:
        wq = _pad2(L["wq"] * ATTN_SCALE, D_PAD, D_PAD)   # scale folded in (free)
        wk = _pad2(L["wk"], D_PAD, D_PAD)
        wv = _pad2(L["wv"], D_PAD, D_PAD)
        wqkv_l.append(jnp.concatenate([wq, wk, wv], axis=1).astype(jnp.bfloat16))
        wo_l.append(_pad2(L["wo"], D_PAD, D_PAD).astype(jnp.bfloat16))
        w1_l.append(_pad2(L["w1"], D_PAD, FFN_PAD).astype(jnp.bfloat16))
        w2_l.append(_pad2(L["w2"], FFN_PAD, D_PAD).astype(jnp.bfloat16))

        vals = dict(L)
        vals["bq"] = L["bq"] * ATTN_SCALE                # scale folded into bq too
        vec = jnp.zeros((N_VEC_ROWS, D_PAD), jnp.float32)
        for row, name in enumerate(("bq", "bk", "bv", "bo", "ln1_g", "ln1_b",
                                    "b2", "ln2_g", "ln2_b")):
            vec = vec.at[row, :HIDDEN].set(vals[name])
        vec_l.append(vec)

        bffn_l.append(jnp.zeros((8, FFN_PAD), jnp.float32).at[0, :FFN].set(L["b1"]))

    packed = dict(
        embln=embln,
        wqkv=jnp.stack(wqkv_l),   # (N_LAYERS, 128, 384) bf16
        wo=jnp.stack(wo_l),       # (N_LAYERS, 128, 128) bf16
        w1=jnp.stack(w1_l),       # (N_LAYERS, 128, 128) bf16
        w2=jnp.stack(w2_l),       # (N_LAYERS, 128, 128) bf16
        vec=jnp.stack(vec_l),     # (N_LAYERS, 16, 128) f32
        bffn=jnp.stack(bffn_l),   # (N_LAYERS, 8, 128) f32
    )

    # Padded-lane invariant: every padded weight / bias / LN-gamma entry must
    # be exactly zero, or the masked LayerNorm silently corrupts the result.
    _assert_zero(packed["embln"][:, HIDDEN:])
    _assert_zero(packed["wqkv"][:, HIDDEN:, :])
    for j in range(3):
        _assert_zero(packed["wqkv"][:, :, j * D_PAD + HIDDEN:(j + 1) * D_PAD])
    _assert_zero(packed["wo"][:, HIDDEN:, :])
    _assert_zero(packed["wo"][:, :, HIDDEN:])
    _assert_zero(packed["w1"][:, HIDDEN:, :])
    _assert_zero(packed["w1"][:, :, FFN:])
    _assert_zero(packed["w2"][:, FFN:, :])
    _assert_zero(packed["w2"][:, :, HIDDEN:])
    _assert_zero(packed["vec"][:, :, HIDDEN:])
    _assert_zero(packed["bffn"][:, :, FFN:])
    return packed


# ----------------------------- forward pass -----------------------------------
def substrate_rep_forward(token_ids, params, packed):
    """Mirrors SubstrateRep.forward: encoder over one sequence, return CLS row."""
    # TODO(synk): the HuggingFace WordPiece tokenizer has no Pallas equivalent;
    #             the forward starts from integer token ids instead.
    x = (params["word_emb"][token_ids]
         + params["pos_emb"]
         + params["type_emb"])                                   # (SEQ, HIDDEN)
    x_pad = jnp.zeros((SEQ, D_PAD), jnp.float32).at[:, :HIDDEN].set(x)
    h = fused_encoder(x_pad, packed["embln"], packed["wqkv"], packed["wo"],
                      packed["w1"], packed["w2"], packed["vec"], packed["bffn"])
    # last_hidden_state[0][0] -> CLS token representation (real lanes only)
    return h[0, :HIDDEN]                                         # (HIDDEN,)


if __name__ == "__main__":
    key = jax.random.PRNGKey(0)
    k_ids, k_params = jax.random.split(key)

    # deterministic synthetic "tokenized" protein sequence, token 2 == [CLS]
    token_ids = jax.random.randint(k_ids, (SEQ,), 0, VOCAB, dtype=jnp.int32)
    token_ids = token_ids.at[0].set(2)

    params = init_params(k_params)
    packed = pack_params(params)

    cls_rep = substrate_rep_forward(token_ids, params, packed)
    cls_rep = jax.block_until_ready(cls_rep)

    assert cls_rep.shape == (HIDDEN,) and cls_rep.dtype == jnp.float32
    assert bool(jnp.all(jnp.isfinite(cls_rep)))
    print("KERNEL_OK")
</pallas_src>

<mosaic_0001>
module attributes {stable_mosaic.version = 11 : i64} {
  func.func @fused_bert_kernel(%arg0: memref<8x128xf32, #tpu.memory_space<vmem>>, %arg1: memref<8x128xf32, #tpu.memory_space<vmem>>, %arg2: memref<2x128x384xbf16, #tpu.memory_space<vmem>>, %arg3: memref<2x128x128xbf16, #tpu.memory_space<vmem>>, %arg4: memref<2x128x128xbf16, #tpu.memory_space<vmem>>, %arg5: memref<2x128x128xbf16, #tpu.memory_space<vmem>>, %arg6: memref<2x16x128xf32, #tpu.memory_space<vmem>>, %arg7: memref<2x8x128xf32, #tpu.memory_space<vmem>>, %arg8: memref<8x128xf32, #tpu.memory_space<vmem>>) attributes {dimension_semantics = [], scalar_prefetch = 0 : i64, scratch_operands = 0 : i64, tpu.core_type = #tpu.core_type<tc>} {
    %0 = tpu.iota {dimensions = array<i32: 1>} : vector<8x128xi32>
    %c32_i32 = arith.constant 32 : i32
    %1 = vector.broadcast %c32_i32 : i32 to vector<8x128xi32>
    %2 = arith.cmpi slt, %0, %1 : vector<8x128xi32>
    %c0 = arith.constant 0 : index
    %c0_0 = arith.constant 0 : index
    %3 = vector.load %arg0[%c0, %c0_0] : memref<8x128xf32, #tpu.memory_space<vmem>>, vector<8x128xf32>
    %c0_1 = arith.constant 0 : index
    %c0_2 = arith.constant 0 : index
    %4 = vector.load %arg1[%c0_1, %c0_2] : memref<8x128xf32, #tpu.memory_space<vmem>>, vector<1x128xf32>
    %c1 = arith.constant 1 : index
    %c0_3 = arith.constant 0 : index
    %5 = vector.load %arg1[%c1, %c0_3] : memref<8x128xf32, #tpu.memory_space<vmem>>, vector<1x128xf32>
    %cst = arith.constant dense<0.000000e+00> : vector<8xf32>
    %6 = vector.multi_reduction <add>, %3, %cst [1] : vector<8x128xf32> to vector<8xf32>
    %7 = vector.shape_cast %6 : vector<8xf32> to vector<8x1xf32>
    %cst_4 = arith.constant 3.125000e-02 : f32
    %8 = vector.broadcast %cst_4 : f32 to vector<8x1xf32>
    %9 = arith.mulf %7, %8 : vector<8x1xf32>
    %10 = vector.broadcast %9 : vector<8x1xf32> to vector<8x128xf32>
    %11 = arith.subf %3, %10 : vector<8x128xf32>
    %cst_5 = arith.constant 0.000000e+00 : f32
    %12 = vector.broadcast %cst_5 : f32 to vector<8x128xf32>
    %13 = arith.select %2, %11, %12 : vector<8x128xi1>, vector<8x128xf32>
    %14 = arith.mulf %13, %13 : vector<8x128xf32>
    %cst_6 = arith.constant dense<0.000000e+00> : vector<8xf32>
    %15 = vector.multi_reduction <add>, %14, %cst_6 [1] : vector<8x128xf32> to vector<8xf32>
    %16 = vector.shape_cast %15 : vector<8xf32> to vector<8x1xf32>
    %cst_7 = arith.constant 3.125000e-02 : f32
    %17 = vector.broadcast %cst_7 : f32 to vector<8x1xf32>
    %18 = arith.mulf %16, %17 : vector<8x1xf32>
    %cst_8 = arith.constant 9.99999996E-13 : f32
    %19 = vector.broadcast %cst_8 : f32 to vector<8x1xf32>
    %20 = arith.addf %18, %19 : vector<8x1xf32>
    %21 = math.rsqrt %20 : vector<8x1xf32>
    %22 = vector.broadcast %21 : vector<8x1xf32> to vector<8x128xf32>
    %23 = arith.mulf %13, %22 : vector<8x128xf32>
    %24 = vector.broadcast %4 : vector<1x128xf32> to vector<8x128xf32>
    %25 = arith.mulf %23, %24 : vector<8x128xf32>
    %26 = vector.broadcast %5 : vector<1x128xf32> to vector<8x128xf32>
    %27 = arith.addf %25, %26 : vector<8x128xf32>
    %c0_9 = arith.constant 0 : index
    %c0_10 = arith.constant 0 : index
    %c0_11 = arith.constant 0 : index
    %28 = vector.load %arg6[%c0_9, %c0_10, %c0_11] : memref<2x16x128xf32, #tpu.memory_space<vmem>>, vector<1x16x128xf32>
    %29 = vector.shape_cast %28 : vector<1x16x128xf32> to vector<16x128xf32>
    %30 = arith.truncf %27 : vector<8x128xf32> to vector<8x128xbf16>
    %c0_12 = arith.constant 0 : index
    %c0_13 = arith.constant 0 : index
    %c0_14 = arith.constant 0 : index
    %31 = vector.load %arg2[%c0_12, %c0_13, %c0_14] : memref<2x128x384xbf16, #tpu.memory_space<vmem>>, vector<1x128x384xbf16>
    %32 = vector.shape_cast %31 : vector<1x128x384xbf16> to vector<128x384xbf16>
    %cst_15 = arith.constant dense<0.000000e+00> : vector<8x384xf32>
    %33 = tpu.matmul %30, %32, %cst_15 {dimension_numbers = #tpu.dot_dimension_numbers<[1], [0], [0], [1], [0, 0, 1, 1], [], []>} : vector<8x128xbf16>, vector<128x384xbf16>, vector<8x384xf32> -> vector<8x384xf32>
    %34 = vector.extract_strided_slice %33 {offsets = [0, 0], sizes = [8, 128], strides = [1, 1]} : vector<8x384xf32> to vector<8x128xf32>
    %35 = vector.extract_strided_slice %29 {offsets = [0, 0], sizes = [1, 128], strides = [1, 1]} : vector<16x128xf32> to vector<1x128xf32>
    %36 = vector.broadcast %35 : vector<1x128xf32> to vector<8x128xf32>
    %37 = arith.addf %34, %36 : vector<8x128xf32>
    %38 = vector.extract_strided_slice %33 {offsets = [0, 128], sizes = [8, 128], strides = [1, 1]} : vector<8x384xf32> to vector<8x128xf32>
    %39 = vector.extract_strided_slice %29 {offsets = [1, 0], sizes = [1, 128], strides = [1, 1]} : vector<16x128xf32> to vector<1x128xf32>
    %40 = vector.broadcast %39 : vector<1x128xf32> to vector<8x128xf32>
    %41 = arith.addf %38, %40 : vector<8x128xf32>
    %42 = vector.extract_strided_slice %33 {offsets = [0, 256], sizes = [8, 128], strides = [1, 1]} : vector<8x384xf32> to vector<8x128xf32>
    %43 = vector.extract_strided_slice %29 {offsets = [2, 0], sizes = [1, 128], strides = [1, 1]} : vector<16x128xf32> to vector<1x128xf32>
    %44 = vector.broadcast %43 : vector<1x128xf32> to vector<8x128xf32>
    %45 = arith.addf %42, %44 : vector<8x128xf32>
    %46 = vector.shape_cast %37 : vector<8x128xf32> to vector<8x16x8xf32>
    %47 = arith.truncf %46 : vector<8x16x8xf32> to vector<8x16x8xbf16>
    %48 = vector.shape_cast %41 : vector<8x128xf32> to vector<8x16x8xf32>
    %49 = arith.truncf %48 : vector<8x16x8xf32> to vector<8x16x8xbf16>
    %50 = vector.shape_cast %45 : vector<8x128xf32> to vector<8x16x8xf32>
    %51 = arith.truncf %50 : vector<8x16x8xf32> to vector<8x16x8xbf16>
    "tpu.trace_start"() <{level = 10 : i32, message = "qhd,khd->hqk"}> : () -> ()
    %cst_16 = arith.constant dense<0.000000e+00> : vector<16x8x8xf32>
    %52 = tpu.matmul %47, %49, %cst_16 {dimension_numbers = #tpu.dot_dimension_numbers<[2], [2], [0], [0], [0, 1, 0, 0, 1, 0], [1], [1]>} : vector<8x16x8xbf16>, vector<8x16x8xbf16>, vector<16x8x8xf32> -> vector<16x8x8xf32>
    "tpu.trace_stop"() : () -> ()
    %cst_17 = arith.constant dense<0xFF800000> : vector<16x8xf32>
    %53 = vector.multi_reduction <maximumf>, %52, %cst_17 [2] : vector<16x8x8xf32> to vector<16x8xf32>
    %54 = vector.shape_cast %53 : vector<16x8xf32> to vector<16x8x1xf32>
    %55 = vector.broadcast %54 : vector<16x8x1xf32> to vector<16x8x8xf32>
    %56 = arith.subf %52, %55 : vector<16x8x8xf32>
    %57 = math.exp %56 : vector<16x8x8xf32>
    %cst_18 = arith.constant dense<0.000000e+00> : vector<16x8xf32>
    %58 = vector.multi_reduction <add>, %57, %cst_18 [2] : vector<16x8x8xf32> to vector<16x8xf32>
    %59 = vector.shape_cast %58 : vector<16x8xf32> to vector<16x8x1xf32>
    %60 = tpu.reciprocal %59 {approx = true} : vector<16x8x1xf32> -> vector<16x8x1xf32>
    %61 = vector.broadcast %60 : vector<16x8x1xf32> to vector<16x8x8xf32>
    %62 = arith.mulf %57, %61 : vector<16x8x8xf32>
    %63 = arith.truncf %62 : vector<16x8x8xf32> to vector<16x8x8xbf16>
    "tpu.trace_start"() <{level = 10 : i32, message = "hqk,khd->qhd"}> : () -> ()
    %cst_19 = arith.constant dense<0.000000e+00> : vector<16x8x8xf32>
    %64 = tpu.matmul %51, %63, %cst_19 {dimension_numbers = #tpu.dot_dimension_numbers<[0], [2], [2], [1], [0, 1, 0, 2, 1, 1], [1], [0]>} : vector<8x16x8xbf16>, vector<16x8x8xbf16>, vector<16x8x8xf32> -> vector<16x8x8xf32>
    %65 = tpu.transpose %64, [2, 0, 1] : vector<16x8x8xf32> -> vector<8x16x8xf32>
    "tpu.trace_stop"() : () -> ()
    %66 = vector.shape_cast %65 : vector<8x16x8xf32> to vector<8x128xf32>
    %67 = arith.truncf %66 : vector<8x128xf32> to vector<8x128xbf16>
    %c0_20 = arith.constant 0 : index
    %c0_21 = arith.constant 0 : index
    %c0_22 = arith.constant 0 : index
    %68 = vector.load %arg3[%c0_20, %c0_21, %c0_22] : memref<2x128x128xbf16, #tpu.memory_space<vmem>>, vector<1x128x128xbf16>
    %69 = vector.shape_cast %68 : vector<1x128x128xbf16> to vector<128x128xbf16>
    %cst_23 = arith.constant dense<0.000000e+00> : vector<8x128xf32>
    %70 = tpu.matmul %67, %69, %cst_23 {dimension_numbers = #tpu.dot_dimension_numbers<[1], [0], [0], [1], [0, 0, 1, 1], [], []>} : vector<8x128xbf16>, vector<128x128xbf16>, vector<8x128xf32> -> vector<8x128xf32>
    %71 = vector.extract_strided_slice %29 {offsets = [3, 0], sizes = [1, 128], strides = [1, 1]} : vector<16x128xf32> to vector<1x128xf32>
    %72 = vector.broadcast %71 : vector<1x128xf32> to vector<8x128xf32>
    %73 = arith.addf %70, %72 : vector<8x128xf32>
    %74 = arith.addf %27, %73 : vector<8x128xf32>
    %75 = vector.extract_strided_slice %29 {offsets = [4, 0], sizes = [1, 128], strides = [1, 1]} : vector<16x128xf32> to vector<1x128xf32>
    %76 = vector.extract_strided_slice %29 {offsets = [5, 0], sizes = [1, 128], strides = [1, 1]} : vector<16x128xf32> to vector<1x128xf32>
    %cst_24 = arith.constant dense<0.000000e+00> : vector<8xf32>
    %77 = vector.multi_reduction <add>, %74, %cst_24 [1] : vector<8x128xf32> to vector<8xf32>
    %78 = vector.shape_cast %77 : vector<8xf32> to vector<8x1xf32>
    %cst_25 = arith.constant 3.125000e-02 : f32
    %79 = vector.broadcast %cst_25 : f32 to vector<8x1xf32>
    %80 = arith.mulf %78, %79 : vector<8x1xf32>
    %81 = vector.broadcast %80 : vector<8x1xf32> to vector<8x128xf32>
    %82 = arith.subf %74, %81 : vector<8x128xf32>
    %cst_26 = arith.constant 0.000000e+00 : f32
    %83 = vector.broadcast %cst_26 : f32 to vector<8x128xf32>
    %84 = arith.select %2, %82, %83 : vector<8x128xi1>, vector<8x128xf32>
    %85 = arith.mulf %84, %84 : vector<8x128xf32>
    %cst_27 = arith.constant dense<0.000000e+00> : vector<8xf32>
    %86 = vector.multi_reduction <add>, %85, %cst_27 [1] : vector<8x128xf32> to vector<8xf32>
    %87 = vector.shape_cast %86 : vector<8xf32> to vector<8x1xf32>
    %cst_28 = arith.constant 3.125000e-02 : f32
    %88 = vector.broadcast %cst_28 : f32 to vector<8x1xf32>
    %89 = arith.mulf %87, %88 : vector<8x1xf32>
    %cst_29 = arith.constant 9.99999996E-13 : f32
    %90 = vector.broadcast %cst_29 : f32 to vector<8x1xf32>
    %91 = arith.addf %89, %90 : vector<8x1xf32>
    %92 = math.rsqrt %91 : vector<8x1xf32>
    %93 = vector.broadcast %92 : vector<8x1xf32> to vector<8x128xf32>
    %94 = arith.mulf %84, %93 : vector<8x128xf32>
    %95 = vector.broadcast %75 : vector<1x128xf32> to vector<8x128xf32>
    %96 = arith.mulf %94, %95 : vector<8x128xf32>
    %97 = vector.broadcast %76 : vector<1x128xf32> to vector<8x128xf32>
    %98 = arith.addf %96, %97 : vector<8x128xf32>
    %99 = arith.truncf %98 : vector<8x128xf32> to vector<8x128xbf16>
    %c0_30 = arith.constant 0 : index
    %c0_31 = arith.constant 0 : index
    %c0_32 = arith.constant 0 : index
    %100 = vector.load %arg4[%c0_30, %c0_31, %c0_32] : memref<2x128x128xbf16, #tpu.memory_space<vmem>>, vector<1x128x128xbf16>
    %101 = vector.shape_cast %100 : vector<1x128x128xbf16> to vector<128x128xbf16>
    %cst_33 = arith.constant dense<0.000000e+00> : vector<8x128xf32>
    %102 = tpu.matmul %99, %101, %cst_33 {dimension_numbers = #tpu.dot_dimension_numbers<[1], [0], [0], [1], [0, 0, 1, 1], [], []>} : vector<8x128xbf16>, vector<128x128xbf16>, vector<8x128xf32> -> vector<8x128xf32>
    %c0_34 = arith.constant 0 : index
    %c0_35 = arith.constant 0 : index
    %c0_36 = arith.constant 0 : index
    %103 = vector.load %arg7[%c0_34, %c0_35, %c0_36] : memref<2x8x128xf32, #tpu.memory_space<vmem>>, vector<1x1x128xf32>
    %104 = vector.shape_cast %103 : vector<1x1x128xf32> to vector<1x128xf32>
    %105 = vector.broadcast %104 : vector<1x128xf32> to vector<8x128xf32>
    %106 = arith.addf %102, %105 : vector<8x128xf32>
    %cst_37 = arith.constant 5.000000e-01 : f32
    %107 = vector.broadcast %cst_37 : f32 to vector<8x128xf32>
    %108 = arith.mulf %107, %106 : vector<8x128xf32>
    %cst_38 = arith.constant 4.471500e-02 : f32
    %109 = vector.broadcast %cst_38 : f32 to vector<8x128xf32>
    %110 = arith.mulf %109, %106 : vector<8x128xf32>
    %111 = arith.mulf %110, %106 : vector<8x128xf32>
    %112 = arith.mulf %111, %106 : vector<8x128xf32>
    %113 = arith.addf %106, %112 : vector<8x128xf32>
    %cst_39 = arith.constant 0.797884583 : f32
    %114 = vector.broadcast %cst_39 : f32 to vector<8x128xf32>
    %115 = arith.mulf %114, %113 : vector<8x128xf32>
    %116 = math.tanh %115 : vector<8x128xf32>
    %cst_40 = arith.constant 1.000000e+00 : f32
    %117 = vector.broadcast %cst_40 : f32 to vector<8x128xf32>
    %118 = arith.addf %117, %116 : vector<8x128xf32>
    %119 = arith.mulf %108, %118 : vector<8x128xf32>
    %120 = arith.truncf %119 : vector<8x128xf32> to vector<8x128xbf16>
    %c0_41 = arith.constant 0 : index
    %c0_42 = arith.constant 0 : index
    %c0_43 = arith.constant 0 : index
    %121 = vector.load %arg5[%c0_41, %c0_42, %c0_43] : memref<2x128x128xbf16, #tpu.memory_space<vmem>>, vector<1x128x128xbf16>
    %122 = vector.shape_cast %121 : vector<1x128x128xbf16> to vector<128x128xbf16>
    %cst_44 = arith.constant dense<0.000000e+00> : vector<8x128xf32>
    %123 = tpu.matmul %120, %122, %cst_44 {dimension_numbers = #tpu.dot_dimension_numbers<[1], [0], [0], [1], [0, 0, 1, 1], [], []>} : vector<8x128xbf16>, vector<128x128xbf16>, vector<8x128xf32> -> vector<8x128xf32>
    %124 = vector.extract_strided_slice %29 {offsets = [6, 0], sizes = [1, 128], strides = [1, 1]} : vector<16x128xf32> to vector<1x128xf32>
    %125 = vector.broadcast %124 : vector<1x128xf32> to vector<8x128xf32>
    %126 = arith.addf %123, %125 : vector<8x128xf32>
    %127 = arith.addf %98, %126 : vector<8x128xf32>
    %128 = vector.extract_strided_slice %29 {offsets = [7, 0], sizes = [1, 128], strides = [1, 1]} : vector<16x128xf32> to vector<1x128xf32>
    %129 = vector.extract_strided_slice %29 {offsets = [8, 0], sizes = [1, 128], strides = [1, 1]} : vector<16x128xf32> to vector<1x128xf32>
    %cst_45 = arith.constant dense<0.000000e+00> : vector<8xf32>
    %130 = vector.multi_reduction <add>, %127, %cst_45 [1] : vector<8x128xf32> to vector<8xf32>
    %131 = vector.shape_cast %130 : vector<8xf32> to vector<8x1xf32>
    %cst_46 = arith.constant 3.125000e-02 : f32
    %132 = vector.broadcast %cst_46 : f32 to vector<8x1xf32>
    %133 = arith.mulf %131, %132 : vector<8x1xf32>
    %134 = vector.broadcast %133 : vector<8x1xf32> to vector<8x128xf32>
    %135 = arith.subf %127, %134 : vector<8x128xf32>
    %cst_47 = arith.constant 0.000000e+00 : f32
    %136 = vector.broadcast %cst_47 : f32 to vector<8x128xf32>
    %137 = arith.select %2, %135, %136 : vector<8x128xi1>, vector<8x128xf32>
    %138 = arith.mulf %137, %137 : vector<8x128xf32>
    %cst_48 = arith.constant dense<0.000000e+00> : vector<8xf32>
    %139 = vector.multi_reduction <add>, %138, %cst_48 [1] : vector<8x128xf32> to vector<8xf32>
    %140 = vector.shape_cast %139 : vector<8xf32> to vector<8x1xf32>
    %cst_49 = arith.constant 3.125000e-02 : f32
    %141 = vector.broadcast %cst_49 : f32 to vector<8x1xf32>
    %142 = arith.mulf %140, %141 : vector<8x1xf32>
    %cst_50 = arith.constant 9.99999996E-13 : f32
    %143 = vector.broadcast %cst_50 : f32 to vector<8x1xf32>
    %144 = arith.addf %142, %143 : vector<8x1xf32>
    %145 = math.rsqrt %144 : vector<8x1xf32>
    %146 = vector.broadcast %145 : vector<8x1xf32> to vector<8x128xf32>
    %147 = arith.mulf %137, %146 : vector<8x128xf32>
    %148 = vector.broadcast %128 : vector<1x128xf32> to vector<8x128xf32>
    %149 = arith.mulf %147, %148 : vector<8x128xf32>
    %150 = vector.broadcast %129 : vector<1x128xf32> to vector<8x128xf32>
    %151 = arith.addf %149, %150 : vector<8x128xf32>
    %c1_51 = arith.constant 1 : index
    %c0_52 = arith.constant 0 : index
    %c0_53 = arith.constant 0 : index
    %152 = vector.load %arg6[%c1_51, %c0_52, %c0_53] : memref<2x16x128xf32, #tpu.memory_space<vmem>>, vector<1x16x128xf32>
    %153 = vector.shape_cast %152 : vector<1x16x128xf32> to vector<16x128xf32>
    %154 = arith.truncf %151 : vector<8x128xf32> to vector<8x128xbf16>
    %c1_54 = arith.constant 1 : index
    %c0_55 = arith.constant 0 : index
    %c0_56 = arith.constant 0 : index
    %155 = vector.load %arg2[%c1_54, %c0_55, %c0_56] : memref<2x128x384xbf16, #tpu.memory_space<vmem>>, vector<1x128x384xbf16>
    %156 = vector.shape_cast %155 : vector<1x128x384xbf16> to vector<128x384xbf16>
    %cst_57 = arith.constant dense<0.000000e+00> : vector<8x384xf32>
    %157 = tpu.matmul %154, %156, %cst_57 {dimension_numbers = #tpu.dot_dimension_numbers<[1], [0], [0], [1], [0, 0, 1, 1], [], []>} : vector<8x128xbf16>, vector<128x384xbf16>, vector<8x384xf32> -> vector<8x384xf32>
    %158 = vector.extract_strided_slice %157 {offsets = [0, 0], sizes = [8, 128], strides = [1, 1]} : vector<8x384xf32> to vector<8x128xf32>
    %159 = vector.extract_strided_slice %153 {offsets = [0, 0], sizes = [1, 128], strides = [1, 1]} : vector<16x128xf32> to vector<1x128xf32>
    %160 = vector.broadcast %159 : vector<1x128xf32> to vector<8x128xf32>
    %161 = arith.addf %158, %160 : vector<8x128xf32>
    %162 = vector.extract_strided_slice %157 {offsets = [0, 128], sizes = [8, 128], strides = [1, 1]} : vector<8x384xf32> to vector<8x128xf32>
    %163 = vector.extract_strided_slice %153 {offsets = [1, 0], sizes = [1, 128], strides = [1, 1]} : vector<16x128xf32> to vector<1x128xf32>
    %164 = vector.broadcast %163 : vector<1x128xf32> to vector<8x128xf32>
    %165 = arith.addf %162, %164 : vector<8x128xf32>
    %166 = vector.extract_strided_slice %157 {offsets = [0, 256], sizes = [8, 128], strides = [1, 1]} : vector<8x384xf32> to vector<8x128xf32>
    %167 = vector.extract_strided_slice %153 {offsets = [2, 0], sizes = [1, 128], strides = [1, 1]} : vector<16x128xf32> to vector<1x128xf32>
    %168 = vector.broadcast %167 : vector<1x128xf32> to vector<8x128xf32>
    %169 = arith.addf %166, %168 : vector<8x128xf32>
    %170 = vector.shape_cast %161 : vector<8x128xf32> to vector<8x16x8xf32>
    %171 = arith.truncf %170 : vector<8x16x8xf32> to vector<8x16x8xbf16>
    %172 = vector.shape_cast %165 : vector<8x128xf32> to vector<8x16x8xf32>
    %173 = arith.truncf %172 : vector<8x16x8xf32> to vector<8x16x8xbf16>
    %174 = vector.shape_cast %169 : vector<8x128xf32> to vector<8x16x8xf32>
    %175 = arith.truncf %174 : vector<8x16x8xf32> to vector<8x16x8xbf16>
    "tpu.trace_start"() <{level = 10 : i32, message = "qhd,khd->hqk"}> : () -> ()
    %cst_58 = arith.constant dense<0.000000e+00> : vector<16x8x8xf32>
    %176 = tpu.matmul %171, %173, %cst_58 {dimension_numbers = #tpu.dot_dimension_numbers<[2], [2], [0], [0], [0, 1, 0, 0, 1, 0], [1], [1]>} : vector<8x16x8xbf16>, vector<8x16x8xbf16>, vector<16x8x8xf32> -> vector<16x8x8xf32>
    "tpu.trace_stop"() : () -> ()
    %cst_59 = arith.constant dense<0xFF800000> : vector<16x8xf32>
    %177 = vector.multi_reduction <maximumf>, %176, %cst_59 [2] : vector<16x8x8xf32> to vector<16x8xf32>
    %178 = vector.shape_cast %177 : vector<16x8xf32> to vector<16x8x1xf32>
    %179 = vector.broadcast %178 : vector<16x8x1xf32> to vector<16x8x8xf32>
    %180 = arith.subf %176, %179 : vector<16x8x8xf32>
    %181 = math.exp %180 : vector<16x8x8xf32>
    %cst_60 = arith.constant dense<0.000000e+00> : vector<16x8xf32>
    %182 = vector.multi_reduction <add>, %181, %cst_60 [2] : vector<16x8x8xf32> to vector<16x8xf32>
    %183 = vector.shape_cast %182 : vector<16x8xf32> to vector<16x8x1xf32>
    %184 = tpu.reciprocal %183 {approx = true} : vector<16x8x1xf32> -> vector<16x8x1xf32>
    %185 = vector.broadcast %184 : vector<16x8x1xf32> to vector<16x8x8xf32>
    %186 = arith.mulf %181, %185 : vector<16x8x8xf32>
    %187 = arith.truncf %186 : vector<16x8x8xf32> to vector<16x8x8xbf16>
    "tpu.trace_start"() <{level = 10 : i32, message = "hqk,khd->qhd"}> : () -> ()
    %cst_61 = arith.constant dense<0.000000e+00> : vector<16x8x8xf32>
    %188 = tpu.matmul %175, %187, %cst_61 {dimension_numbers = #tpu.dot_dimension_numbers<[0], [2], [2], [1], [0, 1, 0, 2, 1, 1], [1], [0]>} : vector<8x16x8xbf16>, vector<16x8x8xbf16>, vector<16x8x8xf32> -> vector<16x8x8xf32>
    %189 = tpu.transpose %188, [2, 0, 1] : vector<16x8x8xf32> -> vector<8x16x8xf32>
    "tpu.trace_stop"() : () -> ()
    %190 = vector.shape_cast %189 : vector<8x16x8xf32> to vector<8x128xf32>
    %191 = arith.truncf %190 : vector<8x128xf32> to vector<8x128xbf16>
    %c1_62 = arith.constant 1 : index
    %c0_63 = arith.constant 0 : index
    %c0_64 = arith.constant 0 : index
    %192 = vector.load %arg3[%c1_62, %c0_63, %c0_64] : memref<2x128x128xbf16, #tpu.memory_space<vmem>>, vector<1x128x128xbf16>
    %193 = vector.shape_cast %192 : vector<1x128x128xbf16> to vector<128x128xbf16>
    %cst_65 = arith.constant dense<0.000000e+00> : vector<8x128xf32>
    %194 = tpu.matmul %191, %193, %cst_65 {dimension_numbers = #tpu.dot_dimension_numbers<[1], [0], [0], [1], [0, 0, 1, 1], [], []>} : vector<8x128xbf16>, vector<128x128xbf16>, vector<8x128xf32> -> vector<8x128xf32>
    %195 = vector.extract_strided_slice %153 {offsets = [3, 0], sizes = [1, 128], strides = [1, 1]} : vector<16x128xf32> to vector<1x128xf32>
    %196 = vector.broadcast %195 : vector<1x128xf32> to vector<8x128xf32>
    %197 = arith.addf %194, %196 : vector<8x128xf32>
    %198 = arith.addf %151, %197 : vector<8x128xf32>
    %199 = vector.extract_strided_slice %153 {offsets = [4, 0], sizes = [1, 128], strides = [1, 1]} : vector<16x128xf32> to vector<1x128xf32>
    %200 = vector.extract_strided_slice %153 {offsets = [5, 0], sizes = [1, 128], strides = [1, 1]} : vector<16x128xf32> to vector<1x128xf32>
    %cst_66 = arith.constant dense<0.000000e+00> : vector<8xf32>
    %201 = vector.multi_reduction <add>, %198, %cst_66 [1] : vector<8x128xf32> to vector<8xf32>
    %202 = vector.shape_cast %201 : vector<8xf32> to vector<8x1xf32>
    %cst_67 = arith.constant 3.125000e-02 : f32
    %203 = vector.broadcast %cst_67 : f32 to vector<8x1xf32>
    %204 = arith.mulf %202, %203 : vector<8x1xf32>
    %205 = vector.broadcast %204 : vector<8x1xf32> to vector<8x128xf32>
    %206 = arith.subf %198, %205 : vector<8x128xf32>
    %cst_68 = arith.constant 0.000000e+00 : f32
    %207 = vector.broadcast %cst_68 : f32 to vector<8x128xf32>
    %208 = arith.select %2, %206, %207 : vector<8x128xi1>, vector<8x128xf32>
    %209 = arith.mulf %208, %208 : vector<8x128xf32>
    %cst_69 = arith.constant dense<0.000000e+00> : vector<8xf32>
    %210 = vector.multi_reduction <add>, %209, %cst_69 [1] : vector<8x128xf32> to vector<8xf32>
    %211 = vector.shape_cast %210 : vector<8xf32> to vector<8x1xf32>
    %cst_70 = arith.constant 3.125000e-02 : f32
    %212 = vector.broadcast %cst_70 : f32 to vector<8x1xf32>
    %213 = arith.mulf %211, %212 : vector<8x1xf32>
    %cst_71 = arith.constant 9.99999996E-13 : f32
    %214 = vector.broadcast %cst_71 : f32 to vector<8x1xf32>
    %215 = arith.addf %213, %214 : vector<8x1xf32>
    %216 = math.rsqrt %215 : vector<8x1xf32>
    %217 = vector.broadcast %216 : vector<8x1xf32> to vector<8x128xf32>
    %218 = arith.mulf %208, %217 : vector<8x128xf32>
    %219 = vector.broadcast %199 : vector<1x128xf32> to vector<8x128xf32>
    %220 = arith.mulf %218, %219 : vector<8x128xf32>
    %221 = vector.broadcast %200 : vector<1x128xf32> to vector<8x128xf32>
    %222 = arith.addf %220, %221 : vector<8x128xf32>
    %223 = arith.truncf %222 : vector<8x128xf32> to vector<8x128xbf16>
    %c1_72 = arith.constant 1 : index
    %c0_73 = arith.constant 0 : index
    %c0_74 = arith.constant 0 : index
    %224 = vector.load %arg4[%c1_72, %c0_73, %c0_74] : memref<2x128x128xbf16, #tpu.memory_space<vmem>>, vector<1x128x128xbf16>
    %225 = vector.shape_cast %224 : vector<1x128x128xbf16> to vector<128x128xbf16>
    %cst_75 = arith.constant dense<0.000000e+00> : vector<8x128xf32>
    %226 = tpu.matmul %223, %225, %cst_75 {dimension_numbers = #tpu.dot_dimension_numbers<[1], [0], [0], [1], [0, 0, 1, 1], [], []>} : vector<8x128xbf16>, vector<128x128xbf16>, vector<8x128xf32> -> vector<8x128xf32>
    %c1_76 = arith.constant 1 : index
    %c0_77 = arith.constant 0 : index
    %c0_78 = arith.constant 0 : index
    %227 = vector.load %arg7[%c1_76, %c0_77, %c0_78] : memref<2x8x128xf32, #tpu.memory_space<vmem>>, vector<1x1x128xf32>
    %228 = vector.shape_cast %227 : vector<1x1x128xf32> to vector<1x128xf32>
    %229 = vector.broadcast %228 : vector<1x128xf32> to vector<8x128xf32>
    %230 = arith.addf %226, %229 : vector<8x128xf32>
    %cst_79 = arith.constant 5.000000e-01 : f32
    %231 = vector.broadcast %cst_79 : f32 to vector<8x128xf32>
    %232 = arith.mulf %231, %230 : vector<8x128xf32>
    %cst_80 = arith.constant 4.471500e-02 : f32
    %233 = vector.broadcast %cst_80 : f32 to vector<8x128xf32>
    %234 = arith.mulf %233, %230 : vector<8x128xf32>
    %235 = arith.mulf %234, %230 : vector<8x128xf32>
    %236 = arith.mulf %235, %230 : vector<8x128xf32>
    %237 = arith.addf %230, %236 : vector<8x128xf32>
    %cst_81 = arith.constant 0.797884583 : f32
    %238 = vector.broadcast %cst_81 : f32 to vector<8x128xf32>
    %239 = arith.mulf %238, %237 : vector<8x128xf32>
    %240 = math.tanh %239 : vector<8x128xf32>
    %cst_82 = arith.constant 1.000000e+00 : f32
    %241 = vector.broadcast %cst_82 : f32 to vector<8x128xf32>
    %242 = arith.addf %241, %240 : vector<8x128xf32>
    %243 = arith.mulf %232, %242 : vector<8x128xf32>
    %244 = arith.truncf %243 : vector<8x128xf32> to vector<8x128xbf16>
    %c1_83 = arith.constant 1 : index
    %c0_84 = arith.constant 0 : index
    %c0_85 = arith.constant 0 : index
    %245 = vector.load %arg5[%c1_83, %c0_84, %c0_85] : memref<2x128x128xbf16, #tpu.memory_space<vmem>>, vector<1x128x128xbf16>
    %246 = vector.shape_cast %245 : vector<1x128x128xbf16> to vector<128x128xbf16>
    %cst_86 = arith.constant dense<0.000000e+00> : vector<8x128xf32>
    %247 = tpu.matmul %244, %246, %cst_86 {dimension_numbers = #tpu.dot_dimension_numbers<[1], [0], [0], [1], [0, 0, 1, 1], [], []>} : vector<8x128xbf16>, vector<128x128xbf16>, vector<8x128xf32> -> vector<8x128xf32>
    %248 = vector.extract_strided_slice %153 {offsets = [6, 0], sizes = [1, 128], strides = [1, 1]} : vector<16x128xf32> to vector<1x128xf32>
    %249 = vector.broadcast %248 : vector<1x128xf32> to vector<8x128xf32>
    %250 = arith.addf %247, %249 : vector<8x128xf32>
    %251 = arith.addf %222, %250 : vector<8x128xf32>
    %252 = vector.extract_strided_slice %153 {offsets = [7, 0], sizes = [1, 128], strides = [1, 1]} : vector<16x128xf32> to vector<1x128xf32>
    %253 = vector.extract_strided_slice %153 {offsets = [8, 0], sizes = [1, 128], strides = [1, 1]} : vector<16x128xf32> to vector<1x128xf32>
    %cst_87 = arith.constant dense<0.000000e+00> : vector<8xf32>
    %254 = vector.multi_reduction <add>, %251, %cst_87 [1] : vector<8x128xf32> to vector<8xf32>
    %255 = vector.shape_cast %254 : vector<8xf32> to vector<8x1xf32>
    %cst_88 = arith.constant 3.125000e-02 : f32
    %256 = vector.broadcast %cst_88 : f32 to vector<8x1xf32>
    %257 = arith.mulf %255, %256 : vector<8x1xf32>
    %258 = vector.broadcast %257 : vector<8x1xf32> to vector<8x128xf32>
    %259 = arith.subf %251, %258 : vector<8x128xf32>
    %cst_89 = arith.constant 0.000000e+00 : f32
    %260 = vector.broadcast %cst_89 : f32 to vector<8x128xf32>
    %261 = arith.select %2, %259, %260 : vector<8x128xi1>, vector<8x128xf32>
    %262 = arith.mulf %261, %261 : vector<8x128xf32>
    %cst_90 = arith.constant dense<0.000000e+00> : vector<8xf32>
    %263 = vector.multi_reduction <add>, %262, %cst_90 [1] : vector<8x128xf32> to vector<8xf32>
    %264 = vector.shape_cast %263 : vector<8xf32> to vector<8x1xf32>
    %cst_91 = arith.constant 3.125000e-02 : f32
    %265 = vector.broadcast %cst_91 : f32 to vector<8x1xf32>
    %266 = arith.mulf %264, %265 : vector<8x1xf32>
    %cst_92 = arith.constant 9.99999996E-13 : f32
    %267 = vector.broadcast %cst_92 : f32 to vector<8x1xf32>
    %268 = arith.addf %266, %267 : vector<8x1xf32>
    %269 = math.rsqrt %268 : vector<8x1xf32>
    %270 = vector.broadcast %269 : vector<8x1xf32> to vector<8x128xf32>
    %271 = arith.mulf %261, %270 : vector<8x128xf32>
    %272 = vector.broadcast %252 : vector<1x128xf32> to vector<8x128xf32>
    %273 = arith.mulf %271, %272 : vector<8x128xf32>
    %274 = vector.broadcast %253 : vector<1x128xf32> to vector<8x128xf32>
    %275 = arith.addf %273, %274 : vector<8x128xf32>
    %c0_93 = arith.constant 0 : index
    %c0_94 = arith.constant 0 : index
    %276 = vector.load %arg8[%c0_93, %c0_94] : memref<8x128xf32, #tpu.memory_space<vmem>>, vector<8x128xf32>
    tpu.vector_store %arg8[%c0_93, %c0_94], %275 {strides = array<i32>} : memref<8x128xf32, #tpu.memory_space<vmem>>, vector<8x128xf32>,
    return
  }
}

</mosaic_0001>

<bundles_post_ra>
// kernel: tpu_custom_call.1
= control target key start
LH: loop header
LB: loop body
LE: loop exit
PB: predicated region body
PF: predicated region fallthrough
CT: control target
= control target key end

     0   :  { %13 = vsyncpa [#allocation3], 0  ;;  %s15291_s0 = inlined_call_operand.hbm [shape: f32[8,128], index: 0, kind: input, shape index: {}]   ;;  %s15292_s1 = inlined_call_operand.hbm [shape: f32[8,128], index: 1, kind: input, shape index: {}]   ;;  %s15293_s2 = inlined_call_operand.hbm [shape: bf16[2,128,384], index: 2, kind: input, shape index: {}]   ;;  %s15294_s3 = inlined_call_operand.hbm [shape: bf16[2,128,128], index: 3, kind: input, shape index: {}]   ;;  %s15295_s4 = inlined_call_operand.hbm [shape: bf16[2,128,128], index: 4, kind: input, shape index: {}]   ;;  %s15296_s5 = inlined_call_operand.hbm [shape: bf16[2,128,128], index: 5, kind: input, shape index: {}]   ;;  %s15297_s6 = inlined_call_operand.hbm [shape: f32[2,16,128], index: 6, kind: input, shape index: {}]   ;;  %s15298_s7 = inlined_call_operand.vmem [shape: f32[2,8,128], index: 7, kind: input, shape index: {}]   ;;  %s15299_s8 = inlined_call_operand.hbm [shape: f32[8,128], index: 8, kind: output, shape index: {}]  }
   0x1   :  { %14 = vsyncpa [#allocation6], 0 }
   0x2   :  { %15 = vsyncpa [#allocation9], 0 }
   0x3   :  { %16 = vsyncpa [#allocation12], 0 }
   0x4   :  { %17 = vsyncpa [#allocation4], 0  ;;  %s12868_s27 = smov [#allocation5]   ;;  %s12869_s29 = smov [#allocation8]  }
   0x5   :  { %s34_s28 = sshll.u32 %s12868_s27, 4  ;;  %s55_s30 = sshll.u32 %s12869_s29, 4  ;;  %s35_s28 = int_to_ptr.vmem [resolvable:$true] %s34_s28  ;;  %s12945_s30 = int_to_ptr.vmem [resolvable:$true] %s55_s30 }
   0x6   :  { %s12682_s11 = scalar_lea.hbm %s15292_s1, 128 }
   0x7   :  { %p12683_p0 = scmp.ne.s32.totalorder %s15292_s1, %s12682_s11  ;;  %p12686_p1 = scmp.lt.u32.totalorder %s12682_s11, %s15292_s1 }
   0x9   :  { %p12688_p2 = pnand %p12686_p1, %p12683_p0 }
   0xb   :  { %12691 = shalt.err (!%p12688_p2)
}
   0xc   :  { %s12692_s16 = scalar_lea.vmem %s35_s28, 128  ;;  %p12697_p4 = scmp.lt.s32.totalorder %s35_s28, %s35_s28 }
   0xd   :  { %p12693_p3 = scmp.ne.s32.totalorder %s35_s28, %s12692_s16  ;;  %p12698_p5 = scmp.lt.s32.totalorder %s12692_s16, %s12692_s16 }
   0xf   :  { %p12699_p6 = por %p12698_p5, %p12697_p4 }
  0x11   :  { %p12700_p7 = pnand %p12699_p6, %p12693_p3 }
  0x13   :  { %12703 = shalt.err (!%p12700_p7)
}
  0x14   :  { %37 = dma.hbm_to_vmem [thread:$0]  %s15292_s1, 128, %s35_s28, [#allocation6]  }
  0x15   :  { %s12704_s21 = scalar_lea.hbm %s15294_s3, 2048 }
  0x16   :  { %p12705_p8 = scmp.ne.s32.totalorder %s15294_s3, %s12704_s21  ;;  %p12708_p9 = scmp.lt.u32.totalorder %s12704_s21, %s15294_s3 }
  0x18   :  { %p12710_p10 = pnand %p12708_p9, %p12705_p8 }
  0x1a   :  { %12713 = shalt.err (!%p12710_p10)
}
  0x1b   :  { %s12714_s26 = scalar_lea.vmem %s12945_s30, 2048  ;;  %p12719_p12 = scmp.lt.s32.totalorder %s12945_s30, %s12945_s30 }
  0x1c   :  { %p12715_p11 = scmp.ne.s32.totalorder %s12945_s30, %s12714_s26  ;;  %p12720_p13 = scmp.lt.s32.totalorder %s12714_s26, %s12714_s26 }
  0x1e   :  { %p12721_p0 = por %p12720_p13, %p12719_p12 }
  0x20   :  { %p12722_p1 = pnand %p12721_p0, %p12715_p11 }
  0x22   :  { %12725 = shalt.err (!%p12722_p1)
}
  0x23   :  { %s12870_s1 = smov 64   ;;  %s12871_s27 = smov 4  }
  0x24   :  { %61 = dma.hbm_to_vmem [thread:$0]  %s15294_s3, 2048, %s12945_s30, [#allocation9], %s12870_s1, %s12870_s1, %s12871_s27  }
  0x25   :  { %s12872_s9 = smov [#allocation11]   ;;  %s12873_s11 = smov [#allocation2]  }
  0x26   :  { %s79_s10 = sshll.u32 %s12872_s9, 4  ;;  %s24_s12 = sshll.u32 %s12873_s11, 4  ;;  %s80_s10 = int_to_ptr.vmem [resolvable:$true] %s79_s10  ;;  %s25_s12 = int_to_ptr.vmem [resolvable:$true] %s24_s12 }
  0x27   :  { %s12726_s15 = scalar_lea.hbm %s15296_s5, 2048 }
  0x28   :  { %p12727_p2 = scmp.ne.s32.totalorder %s15296_s5, %s12726_s15  ;;  %p12730_p3 = scmp.lt.u32.totalorder %s12726_s15, %s15296_s5 }
  0x2a   :  { %p12732_p4 = pnand %p12730_p3, %p12727_p2 }
  0x2c   :  { %12735 = shalt.err (!%p12732_p4)
}
  0x2d   :  { %s12736_s3 = scalar_lea.vmem %s80_s10, 2048  ;;  %p12741_p6 = scmp.lt.s32.totalorder %s80_s10, %s80_s10 }
  0x2e   :  { %p12737_p5 = scmp.ne.s32.totalorder %s80_s10, %s12736_s3  ;;  %p12742_p7 = scmp.lt.s32.totalorder %s12736_s3, %s12736_s3 }
  0x30   :  { %p12743_p8 = por %p12742_p7, %p12741_p6 }
  0x32   :  { %p12744_p9 = pnand %p12743_p8, %p12737_p5 }
  0x34   :  { %12747 = shalt.err (!%p12744_p9)
}
  0x35   :  { %85 = dma.hbm_to_vmem [thread:$0]  %s15296_s5, 2048, %s80_s10, [#allocation12], %s12870_s1, %s12870_s1, %s12871_s27  }
  0x36   :  { %s12748_s23 = scalar_lea.hbm %s15291_s0, 128 }
  0x37   :  { %p12749_p10 = scmp.ne.s32.totalorder %s15291_s0, %s12748_s23  ;;  %p12752_p11 = scmp.lt.u32.totalorder %s12748_s23, %s15291_s0 }
  0x39   :  { %p12754_p12 = pnand %p12752_p11, %p12749_p10 }
  0x3b   :  { %12757 = shalt.err (!%p12754_p12)
}
  0x3c   :  { %s12758_s29 = scalar_lea.vmem %s25_s12, 128  ;;  %p12763_p0 = scmp.lt.s32.totalorder %s25_s12, %s25_s12 }
  0x3d   :  { %p12759_p13 = scmp.ne.s32.totalorder %s25_s12, %s12758_s29  ;;  %p12764_p1 = scmp.lt.s32.totalorder %s12758_s29, %s12758_s29 }
  0x3f   :  { %p12765_p2 = por %p12764_p1, %p12763_p0 }
  0x41   :  { %p12766_p3 = pnand %p12765_p2, %p12759_p13 }
  0x43   :  { %12769 = shalt.err (!%p12766_p3)
}
  0x44   :  { %27 = dma.hbm_to_vmem [thread:$0]  %s15291_s0, 128, %s25_s12, [#allocation3]  }
  0x45   :  { %s12874_s10 = smov [#allocation7]   ;;  %s12770_s15 = scalar_lea.hbm %s15293_s2, 6144 }
  0x46   :  { %s43_s11 = sshll.u32 %s12874_s10, 4  ;;  %p12771_p4 = scmp.ne.s32.totalorder %s15293_s2, %s12770_s15  ;;  %s44_s11 = int_to_ptr.vmem [resolvable:$true] %s43_s11 }
  0x47   :  { %p12774_p5 = scmp.lt.u32.totalorder %s12770_s15, %s15293_s2 }
  0x49   :  { %p12776_p6 = pnand %p12774_p5, %p12771_p4 }
  0x4b   :  { %12779 = shalt.err (!%p12776_p6)
}
  0x4c   :  { %s12780_s3 = scalar_lea.vmem %s44_s11, 6144  ;;  %p12785_p8 = scmp.lt.s32.totalorder %s44_s11, %s44_s11 }
  0x4d   :  { %p12781_p7 = scmp.ne.s32.totalorder %s44_s11, %s12780_s3  ;;  %p12786_p9 = scmp.lt.s32.totalorder %s12780_s3, %s12780_s3 }
  0x4f   :  { %p12787_p10 = por %p12786_p9, %p12785_p8 }
  0x51   :  { %p12788_p11 = pnand %p12787_p10, %p12781_p7 }
  0x53   :  { %12791 = shalt.err (!%p12788_p11)
}
  0x54   :  { %s12875_s0 = smov 192   ;;  %s12876_s12 = smov 12  }
  0x55   :  { %49 = dma.hbm_to_vmem [thread:$0]  %s15293_s2, 6144, %s44_s11, [#allocation6], %s12875_s0, %s12875_s0, %s12876_s12  }
  0x56   :  { %s12877_s21 = smov [#allocation10]   ;;  %s12878_s23 = smov [#allocation13]  }
  0x57   :  { %s67_s22 = sshll.u32 %s12877_s21, 4  ;;  %s91_s24 = sshll.u32 %s12878_s23, 4  ;;  %s68_s22 = int_to_ptr.vmem [resolvable:$true] %s67_s22  ;;  %s92_s24 = int_to_ptr.vmem [resolvable:$true] %s91_s24 }
  0x58   :  { %s12792_s28 = scalar_lea.hbm %s15295_s4, 2048 }
  0x59   :  { %p12793_p12 = scmp.ne.s32.totalorder %s15295_s4, %s12792_s28  ;;  %p12796_p13 = scmp.lt.u32.totalorder %s12792_s28, %s15295_s4 }
  0x5b   :  { %p12798_p0 = pnand %p12796_p13, %p12793_p12 }
  0x5d   :  { %12801 = shalt.err (!%p12798_p0)
}
  0x5e   :  { %s12802_s2 = scalar_lea.vmem %s68_s22, 2048  ;;  %p12807_p2 = scmp.lt.s32.totalorder %s68_s22, %s68_s22 }
  0x5f   :  { %p12803_p1 = scmp.ne.s32.totalorder %s68_s22, %s12802_s2  ;;  %p12808_p3 = scmp.lt.s32.totalorder %s12802_s2, %s12802_s2 }
  0x61   :  { %p12809_p4 = por %p12808_p3, %p12807_p2 }
  0x63   :  { %p12810_p5 = pnand %p12809_p4, %p12803_p1 }
  0x65   :  { %12813 = shalt.err (!%p12810_p5)
}
  0x66   :  { %73 = dma.hbm_to_vmem [thread:$0]  %s15295_s4, 2048, %s68_s22, [#allocation9], %s12870_s1, %s12870_s1, %s12871_s27  }
  0x67   :  { %s12814_s16 = scalar_lea.hbm %s15297_s6, 512 }
  0x68   :  { %p12815_p6 = scmp.ne.s32.totalorder %s15297_s6, %s12814_s16  ;;  %p12818_p7 = scmp.lt.u32.totalorder %s12814_s16, %s15297_s6 }
  0x6a   :  { %p12820_p8 = pnand %p12818_p7, %p12815_p6 }
  0x6c   :  { %12823 = shalt.err (!%p12820_p8)
}
  0x6d   :  { %s12824_s0 = scalar_lea.vmem %s92_s24, 512  ;;  %p12829_p10 = scmp.lt.s32.totalorder %s92_s24, %s92_s24 }
  0x6e   :  { %p12825_p9 = scmp.ne.s32.totalorder %s92_s24, %s12824_s0  ;;  %p12830_p11 = scmp.lt.s32.totalorder %s12824_s0, %s12824_s0 }
  0x70   :  { %p12831_p12 = por %p12830_p11, %p12829_p10 }
  0x72   :  { %p12832_p13 = pnand %p12831_p12, %p12825_p9 }
  0x74   :  { %12835 = shalt.err (!%p12832_p13)
}
  0x75   :  { %s12879_s4 = smov 128   ;;  %s12880_s27 = smov 8  }
  0x76   :  { %97 = dma.hbm_to_vmem [thread:$0]  %s15297_s6, 512, %s92_s24, [#allocation12], %s12879_s4, %s12879_s4, %s12880_s27  }
  0x77   :  { %12858 = dma.done.wait [#allocation3], 128  }
  0x78   :  { %12859 = vsyncadd [#allocation3], 4294967168 }
  0x79   :  { %12860 = dma.done.wait [#allocation6], 6272  }
  0x7a   :  { %12861 = vsyncadd [#allocation6], 4294961024 }
  0x7b   :  { %12862 = dma.done.wait [#allocation9], 4096  }
  0x7c   :  { %12863 = vsyncadd [#allocation9], 4294963200 }
  0x7d   :  { %12864 = dma.done.wait [#allocation12], 2560  }
  0x7e   :  { %12865 = vsyncadd [#allocation12], 4294964736  ;;  %v125_v0 = vld [vmem:[#allocation2] sm:$0xff]  ;;  %v12428_v2 = vld [vmem:[#allocation7] ss:$12 sps:$4 sm:$0xff]   ;;  %v12881_v3 = vmov 0.0   ;;  %v122_v9 = vlaneseq }
  0x7f   :  { %128 = vadd.xlane.f32.xlu0 %v125_v0  ;;  %v12426_v1 = vld [vmem:[#allocation7 + $0x4] ss:$12 sps:$4 sm:$0xff]   ;;  %11850 = vmatprep.subr.bf16.mxu1 %v12881_v3  ;;  %v12429_v4 = vld [vmem:[#allocation7 + $0x8] ss:$12 sps:$4 sm:$0xff]   ;;  %v12433_v7 = vld [vmem:[#allocation7 + $0x20] ss:$12 sps:$4 sm:$0xff]  }
  0x80   :  { %v12430_v5 = vld [vmem:[#allocation7 + $0x1c] ss:$12 sps:$4 sm:$0xff]   ;;  %v12432_v6 = vld [vmem:[#allocation7 + $0x18] ss:$12 sps:$4 sm:$0xff]   ;;  %313 = vmatprep.subr.bf16.mxu0 %v12426_v1  ;;  %v12434_v8 = vld [vmem:[#allocation7 + $0x34] ss:$12 sps:$4 sm:$0xff]   ;;  %11851 = vmatpush3.bf16.msra.mxu1 %v12429_v4 }
  0x81   :  { %314 = vmatpush1.bf16.msra.mxu0 %v12428_v2  ;;  %11852 = vmatprep.subr.bf16.mxu1 %v12881_v3  ;;  %v13050_v10 = vand.u32 127, %v122_v9  ;;  %v12436_v16 = vld [vmem:[#allocation7 + $0x30] ss:$12 sps:$4 sm:$0xff]   ;;  %v12437_v17 = vld [vmem:[#allocation7 + $0x38] ss:$12 sps:$4 sm:$0xff]   ;;  %v12882_v28 = vmov 0  }
  0x82   :  { %315 = vmatprep.subr.bf16.mxu0 %v12430_v5  ;;  %v12438_v18 = vld [vmem:[#allocation7 + $0x4c] ss:$12 sps:$4 sm:$0xff]   ;;  %v12440_v19 = vld [vmem:[#allocation7 + $0x48] ss:$12 sps:$4 sm:$0xff]   ;;  %v12441_v20 = vld [vmem:[#allocation7 + $0x50] ss:$12 sps:$4 sm:$0xff]   ;;  %345 = vmatprep.mubr.bf16.mxu0 %v12882_v28 }
  0x83   :  { %vm15302_vm0 = vcmp.lt.s32.totalorder %v13050_v10, 32  ;;  %v12442_v21 = vld [vmem:[#allocation7 + $0x64] ss:$12 sps:$4 sm:$0xff]   ;;  %v12444_v22 = vld [vmem:[#allocation7 + $0x60] ss:$12 sps:$4 sm:$0xff]   ;;  %vm12883_vm1 = vmmov 0  }
  0x84   :  { %11853 = vmatpush3.bf16.msra.mxu1 %v12433_v7  ;;  %v12445_v23 = vld [vmem:[#allocation7 + $0x68] ss:$12 sps:$4 sm:$0xff]   ;;  %v12448_v25 = vld [vmem:[#allocation7 + $0x78] ss:$12 sps:$4 sm:$0xff]   ;;  %v12449_v26 = vld [vmem:[#allocation7 + $0x80] ss:$12 sps:$4 sm:$0xff]   ;;  %11866 = vmatprep.mubr.msk.bf16.mxu1 %vm12883_vm1, %v12881_v3 }
  0x85   :  { %316 = vmatpush1.bf16.msra.mxu0 %v12432_v6  ;;  %11854 = vmatprep.subr.bf16.mxu1 %v12881_v3  ;;  %v12446_v24 = vld [vmem:[#allocation7 + $0x7c] ss:$12 sps:$4 sm:$0xff]   ;;  %v12450_v27 = vld [vmem:[#allocation7 + $0x94] ss:$12 sps:$4 sm:$0xff]   ;;  %v12453_v30 = vld [vmem:[#allocation7 + $0x98] ss:$12 sps:$4 sm:$0xff]  }
  0x86   :  { %317 = vmatprep.subr.bf16.mxu0 %v12434_v8  ;;  %v12452_v29 = vld [vmem:[#allocation7 + $0x90] ss:$12 sps:$4 sm:$0xff]   ;;  %v12454_v31 = vld [vmem:[#allocation7 + $0xac] ss:$12 sps:$4 sm:$0xff]   ;;  %v12456_v32 = vld [vmem:[#allocation7 + $0xa8] ss:$12 sps:$4 sm:$0xff]  }
  0x87   :  { %v12457_v33 = vld [vmem:[#allocation7 + $0xb0] ss:$12 sps:$4 sm:$0xff]   ;;  %v11453_v38 = vld [vmem:[#allocation5] ss:$0 sm:$0xff]  ;;  %v11454_v40 = vld [vmem:[#allocation5 + $0x1] ss:$0 sm:$0xff] }
  0x88   :  { %11855 = vmatpush3.bf16.msra.mxu1 %v12437_v17  ;;  %v13074_v44 = vshrl.u32 %v122_v9, 7  ;;  %v13077_v46 = vld [vmem:[#allocation13] sm:$0xff]  ;;  %s12884_s6 = smov 104   ;;  %s12885_s20 = smov 120   ;;  %v12897_v6 = vmov 1983009808  }
  0x89   :  { %318 = vmatpush1.bf16.msra.mxu0 %v12436_v16  ;;  %11856 = vmatprep.subr.bf16.mxu1 %v12881_v3  ;;  %s12886_s21 = smov 48   ;;  %s12887_s22 = smov 112   ;;  %v458_v7 = vunpack.c.l.s4 %v12897_v6  ;;  %vm2083_vm2 = vcmask 1043456   ;;  %vm2079_vm3 = vcmask 64512   ;;  %vm5386_vm4 = vcmask 130048  }
  0x8a   :  { %319 = vmatprep.subr.bf16.mxu0 %v12438_v18  ;;  %v401_v45 = vsub.s32 1, %v13074_v44  ;;  %v13095_v57 = vsub.s32 0, %v13074_v44  ;;  %s12888_s23 = smov 32   ;;  %s12889_s24 = smov 96   ;;  %vm5388_vm5 = vcmask 195584   ;;  %vm5390_vm6 = vcmask 261120  }
  0x8b   :  { %s12890_s25 = smov 16   ;;  %s12891_s26 = smov 88   ;;  %vm5392_vm7 = vcmask 326656   ;;  %vm15301_vm8 = vcmask 392192   ;;  %vm15300_vm9 = vcmask 457728   ;;  %vm5398_vm10 = vcmask 523264  }
  0x8c   :  { %11857 = vmatpush3.bf16.msra.mxu1 %v12441_v20  ;;  %v402_v47 = vrot.slane %v13077_v46, %v401_v45  ;;  %v397_v58 = vrot.slane %v13077_v46, %v13095_v57  ;;  %s12892_s28 = smov 80   ;;  %s12893_s29 = smov 72   ;;  %vm5400_vm11 = vcmask 588800   ;;  %vm5402_vm12 = vcmask 654336  }
  0x8d   :  { %320 = vmatpush1.bf16.msra.mxu0 %v12440_v19  ;;  %11858 = vmatprep.subr.bf16.mxu1 %v12881_v3  ;;  %s12894_s5 = smov 56   ;;  %s12895_s9 = smov 40   ;;  %vm5404_vm13 = vcmask 719872   ;;  %vm5406_vm14 = vcmask 785408   ;;  %vm5408_vm15 = vcmask 850944  }
  0x8e   :  { %321 = vmatprep.subr.bf16.mxu0 %v12442_v21  ;;  %s12896_s10 = smov 24  }
  0x90   :  { %11859 = vmatpush3.bf16.msra.mxu1 %v12445_v23 }
  0x91   :  { %322 = vmatpush1.bf16.msra.mxu0 %v12444_v22  ;;  %11860 = vmatprep.subr.bf16.mxu1 %v12881_v3 }
  0x92   :  { %323 = vmatprep.subr.bf16.mxu0 %v12446_v24 }
  0x94   :  { %11861 = vmatpush3.bf16.msra.mxu1 %v12449_v26 }
  0x95   :  { %324 = vmatpush1.bf16.msra.mxu0 %v12448_v25  ;;  %11862 = vmatprep.subr.bf16.mxu1 %v12881_v3 }
  0x96   :  { %325 = vmatprep.subr.bf16.mxu0 %v12450_v27 }
  0x98   :  { %11863 = vmatpush3.bf16.msra.mxu1 %v12453_v30 }
  0x99   :  { %326 = vmatpush1.bf16.msra.mxu0 %v12452_v29  ;;  %11864 = vmatprep.subr.bf16.mxu1 %v12881_v3 }
  0x9a   :  { %327 = vmatprep.subr.bf16.mxu0 %v12454_v31 }
  0x9c   :  { %11865 = vmatpush3.bf16.msra.mxu1 %v12457_v33 }
  0x9d   :  { %328 = vmatpush1.bf16.msra.mxu0 %v12456_v32  ;;  %11870 = vmatprep.subr.bf16.mxu1 %v12881_v3 }
  0x9e   :  { %11894 = vmatprep.subr.bf16.mxu0 %v12881_v3 }
 0x10c   :  { %v129_v11 = vpop.xlane.xlu0 %128 }
 0x10d   :  { %v130_v12 = vmul.f32 0.03125, %v129_v11  ;;  %v459_v11 = vunpack.c.0.s8 %v458_v7 }
 0x10f   :  { %v131_v13 = vsub.f32 %v125_v0, %v130_v12  ;;  %v12898_v12 = vmov 1934713408   ;;  %v13147_v17 = vsub.s32 %v459_v11, %v13074_v44 }
 0x111   :  { %v132_v14 = vsel %vm15302_vm0, %v131_v13, 0.0  ;;  %v522_v13 = vunpack.c.l.s4 %v12898_v12 }
 0x112   :  { %v133_v15 = vmul.f32 %v132_v14, %v132_v14 }
 0x113   :  { %v523_v19 = vunpack.c.0.s8 %v522_v13 }
 0x114   :  { %134 = vadd.xlane.f32.xlu0 %v133_v15 }
 0x1a1   :  { %v135_v34 = vpop.xlane.xlu0 %134 }
 0x1a2   :  { %v136_v35 = vmul.f32 0.03125, %v135_v34 }
 0x1a4   :  { %v137_v36 = vadd.f32 1e-12, %v136_v35 }
 0x1a6   :  { %12538 = vrsqrt.f32 %v137_v36  ;;  %v13154_v36 = vsub.s32 %v523_v19, %v13074_v44 }
 0x1b0   :  { %v12539_v37 = vpop.eup %12538 }
 0x1b1   :  { %v139_v39 = vmul.f32 %v12539_v37, %v132_v14 }
 0x1b3   :  { %v144_v41 = vmul.f32 %v11453_v38, %v139_v39 }
 0x1b5   :  { %v13065_v42 = vadd.f32 %v11454_v40, %v144_v41 }
 0x1b7   :  { %v152_v43 = vpack.c.bf16 %v13065_v42, %v13065_v42 }
 0x1b9   :  { %346 = vmatmul.mubr.bf16.vlgmr.msra.gmra.mrb[0].mxu0 %v152_v43  ;;  %11867 = vmatmul.mubr.bf16.vlgmr.msra.gmra.mrb[0].mxu1 %v152_v43 }
 0x1ba   :  { %11872 = vmatprep.mubr.msk.bf16.mxu1 %vm12883_vm1, %v12881_v3  ;;  %11896 = vmatprep.mubr.msk.bf16.mxu0 %vm12883_vm1, %v12881_v3 }
 0x28c   :  { %v347_v48 = vpop.f32.mrb[0].mxu0  ;;  %v13082_v49 = vpop.f32.mrb[0].mxu1 }
 0x28d   :  { %v349_v50 = vpop.f32.mrb[1].mxu0  ;;  %v11868_v51 = vpop.f32.mrb[1].mxu1  ;;  %v13107_v59 = vadd.f32 %v397_v58, %v347_v48 }
 0x28e   :  { %v13084_v52 = vadd.f32 %v402_v47, %v349_v50  ;;  %v351_v53 = vpop.f32.mrb[2].mxu0  ;;  %v391_v54 = vpop.f32.mrb[2].mxu1 }
 0x28f   :  { %v352_v55 = vpop.f32.mrb[3].mxu0  ;;  %v11869_v56 = vpop.f32.mrb[3].mxu1 }
 0x290   :  { %742 = vrot.lane.b32.xlu0 %v13084_v52, %s12884_s6  ;;  %736 = vrot.lane.b32.xlu1 %v13084_v52, %s12885_s20 }
 0x294   :  { %763 = vrot.lane.b32.xlu0 %v13084_v52, %s12886_s21  ;;  %739 = vrot.lane.b32.xlu1 %v13084_v52, %s12887_s22 }
 0x298   :  { %769 = vrot.lane.b32.xlu0 %v13084_v52, %s12888_s23  ;;  %745 = vrot.lane.b32.xlu1 %v13084_v52, %s12889_s24 }
 0x29c   :  { %775 = vrot.lane.b32.xlu0 %v13084_v52, %s12890_s25  ;;  %748 = vrot.lane.b32.xlu1 %v13084_v52, %s12891_s26 }
 0x2a0   :  { %413 = vrot.lane.b32.xlu0 %v13107_v59, %s12887_s22  ;;  %751 = vrot.lane.b32.xlu1 %v13084_v52, %s12892_s28 }
 0x2a4   :  { %422 = vrot.lane.b32.xlu0 %v13107_v59, %s12891_s26  ;;  %754 = vrot.lane.b32.xlu1 %v13084_v52, %s12893_s29 }
 0x2a8   :  { %428 = vrot.lane.b32.xlu0 %v13107_v59, %s12893_s29  ;;  %757 = vrot.lane.b32.xlu1 %v13084_v52, %s12870_s1 }
 0x2ac   :  { %434 = vrot.lane.b32.xlu0 %v13107_v59, %s12894_s5  ;;  %760 = vrot.lane.b32.xlu1 %v13084_v52, %s12894_s5 }
 0x2b0   :  { %440 = vrot.lane.b32.xlu0 %v13107_v59, %s12895_s9  ;;  %766 = vrot.lane.b32.xlu1 %v13084_v52, %s12895_s9 }
 0x2b4   :  { %772 = vrot.lane.b32.xlu1 %v13084_v52, %s12896_s10 }
 0x2b8   :  { %778 = vrot.lane.b32.xlu1 %v13084_v52, %s12880_s27 }
 0x2bc   :  { %410 = vrot.lane.b32.xlu1 %v13107_v59, %s12885_s20 }
 0x2c0   :  { %416 = vrot.lane.b32.xlu1 %v13107_v59, %s12884_s6 }
 0x2c4   :  { %419 = vrot.lane.b32.xlu1 %v13107_v59, %s12889_s24 }
 0x2c8   :  { %425 = vrot.lane.b32.xlu1 %v13107_v59, %s12892_s28 }
 0x2cc   :  { %431 = vrot.lane.b32.xlu1 %v13107_v59, %s12870_s1 }
 0x2d0   :  { %437 = vrot.lane.b32.xlu1 %v13107_v59, %s12886_s21 }
 0x302   :  { %v737_v60 = vpop.permute.xlu1 %736  ;;  %v743_v1 = vpop.permute.xlu0 %742 }
 0x303   :  { %v797_v20 = vcombine.low %v737_v60, %v743_v1  ;;  %v798_v23 = vcombine.high %v737_v60, %v743_v1 }
 0x305   :  { %v805_v37 = vrot.slane %v797_v20, %v13147_v17  ;;  %v812_v40 = vrot.slane %v798_v23, %v13147_v17 }
 0x306   :  { %v740_v61 = vpop.permute.xlu1 %739  ;;  %v764_v4 = vpop.permute.xlu0 %763 }
 0x307   :  { %v781_v16 = vcombine.low %v13084_v52, %v740_v61  ;;  %v782_v24 = vcombine.high %v13084_v52, %v740_v61 }
 0x309   :  { %v789_v29 = vrot.slane %v781_v16, %v13147_v17  ;;  %v796_v41 = vrot.slane %v782_v24, %v13147_v17 }
 0x30a   :  { %v746_v62 = vpop.permute.xlu1 %745  ;;  %v770_v9 = vpop.permute.xlu0 %769 }
 0x30b   :  { %v845_v58 = vcombine.low %v789_v29, %v805_v37  ;;  %v861_v1 = vcombine.low %v796_v41, %v812_v40 }
 0x30e   :  { %v749_v63 = vpop.permute.xlu1 %748  ;;  %v776_v21 = vpop.permute.xlu0 %775 }
 0x30f   :  { %v949_v32 = vcombine.low %v770_v9, %v776_v21  ;;  %v950_v33 = vcombine.high %v770_v9, %v776_v21  ;;  %v853_v9 = vrot.slane %v845_v58, %v13154_v36 }
 0x311   :  { %v957_v54 = vrot.slane %v949_v32, %v13147_v17  ;;  %v964_v55 = vrot.slane %v950_v33, %v13147_v17 }
 0x312   :  { %v752_v0 = vpop.permute.xlu1 %751 }
 0x313   :  { %v813_v18 = vcombine.low %v746_v62, %v752_v0  ;;  %v814_v34 = vcombine.high %v746_v62, %v752_v0 }
 0x315   :  { %v821_v35 = vrot.slane %v813_v18, %v13147_v17  ;;  %v828_v56 = vrot.slane %v814_v34, %v13147_v17 }
 0x316   :  { %v755_v2 = vpop.permute.xlu1 %754 }
 0x317   :  { %v829_v14 = vcombine.low %v749_v63, %v755_v2  ;;  %v830_v25 = vcombine.high %v749_v63, %v755_v2 }
 0x319   :  { %v837_v26 = vrot.slane %v829_v14, %v13147_v17  ;;  %v844_v43 = vrot.slane %v830_v25, %v13147_v17 }
 0x31a   :  { %v758_v5 = vpop.permute.xlu1 %757 }
 0x31b   :  { %v917_v30 = vcombine.low %v758_v5, %v764_v4  ;;  %v918_v38 = vcombine.high %v758_v5, %v764_v4  ;;  %v877_v48 = vcombine.low %v821_v35, %v837_v26  ;;  %v893_v2 = vcombine.low %v828_v56, %v844_v43 }
 0x31c   :  { %v846_v4 = vcombine.high %v789_v29, %v805_v37  ;;  %v878_v11 = vcombine.high %v821_v35, %v837_v26  ;;  %v894_v13 = vcombine.high %v828_v56, %v844_v43 }
 0x31d   :  { %v925_v50 = vrot.slane %v917_v30, %v13147_v17  ;;  %v932_v60 = vrot.slane %v918_v38, %v13147_v17  ;;  %v885_v0 = vrot.slane %v877_v48, %v13154_v36  ;;  %v901_v21 = vrot.slane %v893_v2, %v13154_v36 }
 0x31e   :  { %v761_v8 = vpop.permute.xlu1 %760  ;;  %v892_v29 = vrot.slane %v878_v11, %v13154_v36  ;;  %v860_v37 = vrot.slane %v846_v4, %v13154_v36  ;;  %v908_v43 = vrot.slane %v894_v13, %v13154_v36  ;;  %v13197_v4 = vpop.permute.xlu0 %413 }
 0x31f   :  { %v910_v19 = vcombine.high %v853_v9, %v885_v0  ;;  %v909_v20 = vcombine.low %v853_v9, %v885_v0 }
 0x320   :  { %v911_v48 = vcombine.low %v860_v37, %v892_v29 }
 0x322   :  { %v767_v15 = vpop.permute.xlu1 %766 }
 0x323   :  { %v933_v22 = vcombine.low %v761_v8, %v767_v15  ;;  %v934_v31 = vcombine.high %v761_v8, %v767_v15 }
 0x325   :  { %v941_v39 = vrot.slane %v933_v22, %v13147_v17  ;;  %v948_v51 = vrot.slane %v934_v31, %v13147_v17  ;;  %v862_v31 = vcombine.high %v796_v41, %v812_v40 }
 0x326   :  { %v773_v27 = vpop.permute.xlu1 %772 }
 0x327   :  { %v981_v63 = vcombine.low %v925_v50, %v941_v39  ;;  %v997_v6 = vcombine.low %v932_v60, %v948_v51  ;;  %v982_v12 = vcombine.high %v925_v50, %v941_v39  ;;  %v998_v26 = vcombine.high %v932_v60, %v948_v51 }
 0x328   :  { %v876_v51 = vrot.slane %v862_v31, %v13154_v36 }
 0x329   :  { %v989_v14 = vrot.slane %v981_v63, %v13154_v36  ;;  %v1005_v25 = vrot.slane %v997_v6, %v13154_v36  ;;  %v996_v30 = vrot.slane %v982_v12, %v13154_v36  ;;  %v13201_v6 = vpop.permute.xlu0 %422 }
 0x32a   :  { %v779_v47 = vpop.permute.xlu1 %778  ;;  %v916_v63 = vcombine.high %v876_v51, %v908_v43 }
 0x32b   :  { %v965_v52 = vcombine.low %v773_v27, %v779_v47  ;;  %v966_v53 = vcombine.high %v773_v27, %v779_v47  ;;  %v869_v27 = vrot.slane %v861_v1, %v13154_v36  ;;  %v1012_v47 = vrot.slane %v998_v26, %v13154_v36 }
 0x32d   :  { %v973_v61 = vrot.slane %v965_v52, %v13147_v17  ;;  %v980_v62 = vrot.slane %v966_v53, %v13147_v17  ;;  %v913_v39 = vcombine.low %v869_v27, %v901_v21  ;;  %v915_v53 = vcombine.low %v876_v51, %v908_v43 }
 0x32e   :  { %v914_v60 = vcombine.high %v869_v27, %v901_v21  ;;  %v13193_v1 = vpop.permute.xlu1 %410 }
 0x32f   :  { %v1013_v5 = vcombine.low %v957_v54, %v973_v61  ;;  %v1029_v7 = vcombine.low %v964_v55, %v980_v62  ;;  %v1014_v8 = vcombine.high %v957_v54, %v973_v61  ;;  %v1030_v18 = vcombine.high %v964_v55, %v980_v62 }
 0x330   :  { %v912_v54 = vcombine.high %v860_v37, %v892_v29 }
 0x331   :  { %v1021_v15 = vrot.slane %v1013_v5, %v13154_v36  ;;  %v1037_v16 = vrot.slane %v1029_v7, %v13154_v36  ;;  %v1028_v22 = vrot.slane %v1014_v8, %v13154_v36  ;;  %v1044_v35 = vrot.slane %v1030_v18, %v13154_v36  ;;  %v13205_v8 = vpop.permute.xlu0 %428 }
 0x332   :  { %v13195_v2 = vpop.permute.xlu1 %416 }
 0x333   :  { %v1046_v23 = vcombine.high %v989_v14, %v1021_v15  ;;  %v1045_v24 = vcombine.low %v989_v14, %v1021_v15  ;;  %v1049_v34 = vcombine.low %v1005_v25, %v1037_v16  ;;  %v1047_v38 = vcombine.low %v996_v30, %v1028_v22 }
 0x334   :  { %v1051_v40 = vcombine.low %v1012_v47, %v1044_v35  ;;  %v1048_v52 = vcombine.high %v996_v30, %v1028_v22  ;;  %v1050_v58 = vcombine.high %v1005_v25, %v1037_v16  ;;  %v1052_v62 = vcombine.high %v1012_v47, %v1044_v35 }
 0x335   :  { %v1054_v32 = vpack.c.bf16 %v1046_v23, %v910_v19  ;;  %v1053_v33 = vpack.c.bf16 %v1045_v24, %v909_v20  ;;  %v1057_v50 = vpack.c.bf16 %v1049_v34, %v913_v39  ;;  %v1055_v41 = vpack.c.bf16 %v1047_v38, %v911_v48  ;;  %v13209_v11 = vpop.permute.xlu0 %434 }
 0x336   :  { %v1059_v55 = vpack.c.bf16 %v1051_v40, %v915_v53  ;;  %v1056_v56 = vpack.c.bf16 %v1048_v52, %v912_v54  ;;  %v1058_v61 = vpack.c.bf16 %v1050_v58, %v914_v60  ;;  %v1060_v0 = vpack.c.bf16 %v1052_v62, %v916_v63  ;;  %v13199_v5 = vpop.permute.xlu1 %419 }
 0x337   :  { %1571 = vxpose.xlu1.c.b16.start.end [1/1] (short) (narrow) %v1054_v32, 16  ;;  %1555 = vxpose.xlu0.c.b16.start.end [1/1] (short) (narrow) %v1053_v33, 16  ;;  %v406_v62 = vsub.s32 2, %v13074_v44 }
 0x339   :  { %v13213_v13 = vpop.permute.xlu0 %440 }
 0x33a   :  { %v13203_v7 = vpop.permute.xlu1 %425 }
 0x33b   :  { %1619 = vxpose.xlu1.c.b16.start.end [1/1] (short) (narrow) %v1057_v50, 16  ;;  %1587 = vxpose.xlu0.c.b16.start.end [1/1] (short) (narrow) %v1055_v41, 16 }
 0x33e   :  { %v13207_v9 = vpop.permute.xlu1 %431 }
 0x33f   :  { %1651 = vxpose.xlu1.c.b16.start.end [1/1] (short) (narrow) %v1059_v55, 16  ;;  %1603 = vxpose.xlu0.c.b16.start.end [1/1] (short) (narrow) %v1056_v56, 16 }
 0x342   :  { %v13211_v12 = vpop.permute.xlu1 %437 }
 0x343   :  { %443 = vrot.lane.b32.xlu1 %v13107_v59, %s12888_s23  ;;  %1635 = vxpose.xlu0.c.b16.start.end [1/1] (short) (narrow) %v1058_v61, 16 }
 0x347   :  { %449 = vrot.lane.b32.xlu1 %v13107_v59, %s12890_s25  ;;  %1667 = vxpose.xlu0.c.b16.start.end [1/1] (short) (narrow) %v1060_v0, 16 }
 0x350   :  { %446 = vrot.lane.b32.xlu0 %v13107_v59, %s12896_s10 }
 0x354   :  { %452 = vrot.lane.b32.xlu0 %v13107_v59, %s12880_s27 }
 0x39d   :  { %v1579_v14 = vpop.trf.xlu1  ;;  %v1563_v15 = vpop.trf.xlu0 }
 0x3a1   :  { %v1627_v16 = vpop.trf.xlu1  ;;  %v1595_v18 = vpop.trf.xlu0 }
 0x3a2   :  { %v1683_v23 = vcombine.low %v1563_v15, %v1627_v16  ;;  %v407_v16 = vrot.slane %v13077_v46, %v406_v62 }
 0x3a4   :  { %v1690_v27 = vrot.slane %v1683_v23, %v13147_v17  ;;  %v471_v23 = vcombine.low %v13193_v1, %v13195_v2 }
 0x3a5   :  { %v1611_v19 = vpop.trf.xlu0  ;;  %v1659_v20 = vpop.trf.xlu1 }
 0x3a6   :  { %v1691_v21 = vcombine.low %v1595_v18, %v1659_v20  ;;  %v13232_v20 = vadd.f32 %v407_v16, %v13082_v49 }
 0x3a8   :  { %v1698_v24 = vrot.slane %v1691_v21, %v13147_v17 }
 0x3a9   :  { %v1643_v22 = vpop.trf.xlu0 }
 0x3aa   :  { %v1717_v25 = vcombine.low %v1579_v14, %v1643_v22  ;;  %v1699_v30 = vcombine.low %v1690_v27, %v1698_v24  ;;  %v1700_v31 = vcombine.high %v1690_v27, %v1698_v24  ;;  %v472_v27 = vcombine.high %v13193_v1, %v13195_v2 }
 0x3ab   :  { %v608_v1 = vcombine.high %v13209_v11, %v13213_v13  ;;  %v488_v2 = vcombine.high %v13199_v5, %v13203_v7 }
 0x3ac   :  { %v1724_v32 = vrot.slane %v1717_v25, %v13147_v17  ;;  %v1707_v37 = vrot.slane %v1699_v30, %v13154_v36  ;;  %v1714_v38 = vrot.slane %v1700_v31, %v13154_v36  ;;  %v455_v25 = vcombine.low %v13107_v59, %v13197_v4 }
 0x3ad   :  { %v1675_v26 = vpop.trf.xlu0  ;;  %v503_v30 = vcombine.low %v13201_v6, %v13205_v8  ;;  %v591_v31 = vcombine.low %v13207_v9, %v13211_v12 }
 0x3ae   :  { %v1725_v29 = vcombine.low %v1611_v19, %v1675_v26  ;;  %v1755_v41 = vshrl.u32 %v1707_v37, 16  ;;  %v1771_v52 = vshrl.u32 %v1714_v38, 16  ;;  %v1715_v53 = vcombine.high %v1707_v37, %v12882_v28 }
 0x3af   :  { %v1716_v61 = vcombine.high %v1714_v38, %v12882_v28  ;;  %v456_v26 = vcombine.high %v13107_v59, %v13197_v4  ;;  %v607_v59 = vcombine.low %v13209_v11, %v13213_v13  ;;  %v479_v4 = vrot.slane %v471_v23, %v13147_v17 }
 0x3b0   :  { %v1732_v33 = vrot.slane %v1725_v29, %v13147_v17  ;;  %v1763_v60 = vshrl.u32 %v1715_v53, 16  ;;  %v487_v29 = vcombine.low %v13199_v5, %v13203_v7  ;;  %v511_v11 = vrot.slane %v503_v30, %v13147_v17 }
 0x3b1   :  { %v1779_v15 = vshrl.u32 %v1716_v61, 16  ;;  %v599_v5 = vrot.slane %v591_v31, %v13147_v17 }
 0x3b2   :  { %v1733_v34 = vcombine.low %v1724_v32, %v1732_v33  ;;  %v1734_v35 = vcombine.high %v1724_v32, %v1732_v33 }
 0x3b4   :  { %v1741_v39 = vrot.slane %v1733_v34, %v13154_v36  ;;  %v1748_v43 = vrot.slane %v1734_v35, %v13154_v36  ;;  %v504_v34 = vcombine.high %v13201_v6, %v13205_v8  ;;  %v592_v35 = vcombine.high %v13207_v9, %v13211_v12 }
 0x3b5   :  { %v444_v49 = vpop.permute.xlu1 %443  ;;  %v470_v6 = vrot.slane %v456_v26, %v13147_v17  ;;  %v486_v8 = vrot.slane %v472_v27, %v13147_v17  ;;  %v615_v12 = vrot.slane %v607_v59, %v13147_v17 }
 0x3b6   :  { %v1769_v47 = vpack.i.b16 %v1748_v43, %v1714_v38  ;;  %v1753_v48 = vpack.i.b16 %v1741_v39, %v1707_v37  ;;  %v1756_v50 = vshrl.u32 %v1741_v39, 16  ;;  %v1772_v51 = vshrl.u32 %v1748_v43, 16 }
 0x3b7   :  { %v1749_v40 = vcombine.high %v1741_v39, %v12882_v28  ;;  %v1750_v58 = vcombine.high %v1748_v43, %v12882_v28  ;;  %v463_v39 = vrot.slane %v455_v25, %v13147_v17  ;;  %v495_v43 = vrot.slane %v487_v29, %v13147_v17 }
 0x3b8   :  { %1847 = vxpose.xlu0.c.b16.start.end [1/1] (short) (narrow) %v1769_v47, 16  ;;  %1783 = vxpose.xlu1.c.b16.start.end [1/1] (short) (narrow) %v1753_v48, 16  ;;  %v1757_v54 = vpack.i.b16 %v1756_v50, %v1755_v41  ;;  %v1773_v55 = vpack.i.b16 %v1772_v51, %v1771_v52  ;;  %v518_v9 = vrot.slane %v504_v34, %v13147_v17 }
 0x3b9   :  { %v1764_v56 = vshrl.u32 %v1749_v40, 16  ;;  %v1761_v0 = vpack.i.b16 %v1749_v40, %v1715_v53  ;;  %v1780_v14 = vshrl.u32 %v1750_v58, 16  ;;  %v1777_v19 = vpack.i.b16 %v1750_v58, %v1716_v61  ;;  %v450_v22 = vpop.permute.xlu1 %449 }
 0x3ba   :  { %v623_v32 = vcombine.low %v444_v49, %v450_v22  ;;  %v624_v37 = vcombine.high %v444_v49, %v450_v22  ;;  %v622_v47 = vrot.slane %v608_v1, %v13147_v17  ;;  %v502_v48 = vrot.slane %v488_v2, %v13147_v17 }
 0x3bb   :  { %v1765_v63 = vpack.i.b16 %v1764_v56, %v1763_v60  ;;  %v1781_v18 = vpack.i.b16 %v1780_v14, %v1779_v15  ;;  %v519_v50 = vcombine.low %v463_v39, %v479_v4  ;;  %v606_v51 = vrot.slane %v592_v35, %v13147_v17 }
 0x3bc   :  { %1799 = vxpose.xlu0.c.b16.start.end [1/1] (short) (narrow) %v1757_v54, 16  ;;  %1863 = vxpose.xlu1.c.b16.start.end [1/1] (short) (narrow) %v1773_v55, 16  ;;  %v631_v7 = vrot.slane %v623_v32, %v13147_v17  ;;  %v638_v40 = vrot.slane %v624_v37, %v13147_v17  ;;  %v520_v52 = vcombine.high %v463_v39, %v479_v4 }
 0x3bd   :  { %v535_v53 = vcombine.low %v470_v6, %v486_v8  ;;  %v551_v54 = vcombine.low %v495_v43, %v511_v11  ;;  %v536_v56 = vcombine.high %v470_v6, %v486_v8  ;;  %v655_v58 = vcombine.low %v599_v5, %v615_v12 }
 0x3be   :  { %v568_v14 = vcombine.high %v502_v48, %v518_v9  ;;  %v656_v15 = vcombine.high %v599_v5, %v615_v12  ;;  %v527_v16 = vrot.slane %v519_v50, %v13154_v36  ;;  %v534_v49 = vrot.slane %v520_v52, %v13154_v36 }
 0x3bf   :  { %v559_v22 = vrot.slane %v551_v54, %v13154_v36  ;;  %v663_v25 = vrot.slane %v655_v58, %v13154_v36 }
 0x3c0   :  { %1831 = vxpose.xlu1.c.b16.start.end [1/1] (short) (narrow) %v1765_v63, 16  ;;  %1815 = vxpose.xlu0.c.b16.start.end [1/1] (short) (narrow) %v1761_v0, 16  ;;  %v552_v63 = vcombine.high %v495_v43, %v511_v11  ;;  %v567_v0 = vcombine.low %v502_v48, %v518_v9  ;;  %v582_v31 = vrot.slane %v568_v14, %v13154_v36 }
 0x3c1   :  { %v670_v32 = vrot.slane %v656_v15, %v13154_v36  ;;  %v583_v2 = vcombine.low %v527_v16, %v559_v22  ;;  %v584_v4 = vcombine.high %v527_v16, %v559_v22 }
 0x3c2   :  { %v447_v46 = vpop.permute.xlu0 %446  ;;  %v566_v29 = vrot.slane %v552_v63, %v13154_v36  ;;  %v575_v30 = vrot.slane %v567_v0, %v13154_v36 }
 0x3c4   :  { %1895 = vxpose.xlu1.c.b16.start.end [1/1] (short) (narrow) %v1781_v18, 16  ;;  %1879 = vxpose.xlu0.c.b16.start.end [1/1] (short) (narrow) %v1777_v19, 16  ;;  %v671_v18 = vcombine.low %v606_v51, %v622_v47  ;;  %v672_v19 = vcombine.high %v606_v51, %v622_v47  ;;  %v585_v5 = vcombine.low %v534_v49, %v566_v29 }
 0x3c6   :  { %v453_v21 = vpop.permute.xlu0 %452  ;;  %v686_v34 = vrot.slane %v672_v19, %v13154_v36 }
 0x3c7   :  { %v639_v24 = vcombine.low %v447_v46, %v453_v21  ;;  %v640_v33 = vcombine.high %v447_v46, %v453_v21  ;;  %v543_v21 = vrot.slane %v535_v53, %v13154_v36 }
 0x3c8   :  { %1065 = vrot.lane.b32.xlu1 %v13232_v20, %s12887_s22 }
 0x3c9   :  { %v647_v38 = vrot.slane %v639_v24, %v13147_v17  ;;  %v654_v13 = vrot.slane %v640_v33, %v13147_v17  ;;  %v550_v24 = vrot.slane %v536_v56, %v13154_v36  ;;  %v679_v33 = vrot.slane %v671_v18, %v13154_v36 }
 0x3ca   :  { %v588_v9 = vcombine.high %v543_v21, %v575_v30 }
 0x3cb   :  { %v687_v41 = vcombine.low %v631_v7, %v647_v38  ;;  %v688_v55 = vcombine.high %v631_v7, %v647_v38  ;;  %v703_v60 = vcombine.low %v638_v40, %v654_v13  ;;  %v704_v61 = vcombine.high %v638_v40, %v654_v13 }
 0x3cc   :  { %1068 = vrot.lane.b32.xlu1 %v13232_v20, %s12884_s6  ;;  %v586_v7 = vcombine.high %v534_v49, %v566_v29  ;;  %v587_v13 = vcombine.low %v543_v21, %v575_v30  ;;  %v589_v12 = vcombine.low %v550_v24, %v582_v31  ;;  %v590_v47 = vcombine.high %v550_v24, %v582_v31 }
 0x3cd   :  { %1062 = vrot.lane.b32.xlu0 %v13232_v20, %s12885_s20  ;;  %v695_v46 = vrot.slane %v687_v41, %v13154_v36  ;;  %v702_v23 = vrot.slane %v688_v55, %v13154_v36  ;;  %v711_v26 = vrot.slane %v703_v60, %v13154_v36  ;;  %v718_v27 = vrot.slane %v704_v61, %v13154_v36 }
 0x3cf   :  { %v719_v59 = vcombine.low %v663_v25, %v695_v46  ;;  %v720_v1 = vcombine.high %v663_v25, %v695_v46  ;;  %v721_v35 = vcombine.low %v670_v32, %v702_v23  ;;  %v722_v37 = vcombine.high %v670_v32, %v702_v23 }
 0x3d0   :  { %1074 = vrot.lane.b32.xlu1 %v13232_v20, %s12891_s26  ;;  %v723_v38 = vcombine.low %v679_v33, %v711_v26  ;;  %v724_v39 = vcombine.high %v679_v33, %v711_v26  ;;  %v725_v6 = vcombine.low %v686_v34, %v718_v27  ;;  %v726_v8 = vcombine.high %v686_v34, %v718_v27 }
 0x3d1   :  { %1071 = vrot.lane.b32.xlu0 %v13232_v20, %s12889_s24  ;;  %v727_v48 = vpack.c.bf16 %v719_v59, %v583_v2  ;;  %v728_v50 = vpack.c.bf16 %v720_v1, %v584_v4  ;;  %v729_v51 = vpack.c.bf16 %v721_v35, %v585_v5  ;;  %v730_v40 = vpack.c.bf16 %v722_v37, %v586_v7 }
 0x3d2   :  { %v731_v41 = vpack.c.bf16 %v723_v38, %v587_v13  ;;  %v732_v52 = vpack.c.bf16 %v724_v39, %v588_v9  ;;  %v733_v53 = vpack.c.bf16 %v725_v6, %v589_v12  ;;  %v734_v54 = vpack.c.bf16 %v726_v8, %v590_v47 }
 0x3d3   :  { %v13320_v58 = vpack.i.b16 %v728_v50, %v727_v48  ;;  %v1391_v60 = vshrl.u32 %v727_v48, 16  ;;  %v13322_v61 = vpack.i.b16 %v730_v40, %v729_v51  ;;  %v1392_v49 = vshrl.u32 %v728_v50, 16 }
 0x3d4   :  { %1080 = vrot.lane.b32.xlu1 %v13232_v20, %s12893_s29  ;;  %v13324_v14 = vpack.i.b16 %v732_v52, %v731_v41  ;;  %v13326_v15 = vpack.i.b16 %v734_v54, %v733_v53  ;;  %v1399_v21 = vshrl.u32 %v729_v51, 16  ;;  %v1400_v24 = vshrl.u32 %v730_v40, 16 }
 0x3d5   :  { %1077 = vrot.lane.b32.xlu0 %v13232_v20, %s12892_s28  ;;  %v1407_v25 = vshrl.u32 %v731_v41, 16  ;;  %v1408_v26 = vshrl.u32 %v732_v52, 16  ;;  %v1415_v27 = vshrl.u32 %v733_v53, 16  ;;  %v1416_v33 = vshrl.u32 %v734_v54, 16 }
 0x3d6   :  { %v1419_v34 = vcombine.low %v13320_v58, %v13324_v14  ;;  %v1435_v59 = vcombine.low %v13322_v61, %v13326_v15  ;;  %v13342_v6 = vpack.i.b16 %v1392_v49, %v1391_v60  ;;  %v13344_v8 = vpack.i.b16 %v1400_v24, %v1399_v21 }
 0x3d7   :  { %v13352_v13 = vpack.i.b16 %v1408_v26, %v1407_v25  ;;  %v13354_v9 = vpack.i.b16 %v1416_v33, %v1415_v27 }
 0x3d8   :  { %1086 = vrot.lane.b32.xlu1 %v13232_v20, %s12894_s5  ;;  %v1427_v12 = vrot.slane %v1419_v34, %v13147_v17  ;;  %v1443_v47 = vrot.slane %v1435_v59, %v13147_v17 }
 0x3d9   :  { %1083 = vrot.lane.b32.xlu0 %v13232_v20, %s12870_s1  ;;  %v1487_v60 = vcombine.low %v13342_v6, %v13352_v13 }
 0x3dc   :  { %1092 = vrot.lane.b32.xlu1 %v13232_v20, %s12895_s9 }
 0x3dd   :  { %1089 = vrot.lane.b32.xlu0 %v13232_v20, %s12886_s21 }
 0x3e0   :  { %1098 = vrot.lane.b32.xlu1 %v13232_v20, %s12896_s10 }
 0x3e1   :  { %1095 = vrot.lane.b32.xlu0 %v13232_v20, %s12888_s23 }
 0x3e4   :  { %1104 = vrot.lane.b32.xlu1 %v13232_v20, %s12880_s27 }
 0x3e5   :  { %1101 = vrot.lane.b32.xlu0 %v13232_v20, %s12890_s25 }
 0x41e   :  { %v1855_v43 = vpop.trf.xlu0  ;;  %v1791_v11 = vpop.trf.xlu1 }
 0x41f   :  { %v1931_v22 = vshrl.u32 %v1855_v43, 16  ;;  %v1915_v23 = vshrl.u32 %v1791_v11, 16 }
 0x422   :  { %v1807_v55 = vpop.trf.xlu0  ;;  %v1871_v56 = vpop.trf.xlu1 }
 0x423   :  { %v1916_v63 = vshrl.u32 %v1807_v55, 16  ;;  %v1932_v0 = vshrl.u32 %v1871_v56, 16  ;;  %v13328_v16 = vpack.i.b16 %v1807_v55, %v1791_v11  ;;  %v13330_v18 = vpack.i.b16 %v1871_v56, %v1855_v43 }
 0x424   :  { %v1451_v55 = vcombine.low %v1427_v12, %v1443_v47  ;;  %v1452_v56 = vcombine.high %v1427_v12, %v1443_v47 }
 0x425   :  { %v13332_v29 = vpack.i.b16 %v1916_v63, %v1915_v23  ;;  %v13334_v30 = vpack.i.b16 %v1932_v0, %v1931_v22  ;;  %v1943_v1 = vcombine.low %v13328_v16, %v13330_v18  ;;  %v1503_v63 = vcombine.low %v13344_v8, %v13354_v9 }
 0x426   :  { %v1823_v19 = vpop.trf.xlu0  ;;  %v1839_v46 = vpop.trf.xlu1  ;;  %v1944_v0 = vcombine.high %v13328_v16, %v13330_v18  ;;  %v13386_v16 = vrot.slane %v1487_v60, %v13147_v17  ;;  %v1459_v27 = vrot.slane %v1451_v55, %v13154_v36 }
 0x427   :  { %v1923_v31 = vshrl.u32 %v1823_v19, 16  ;;  %v1924_v32 = vshrl.u32 %v1839_v46, 16  ;;  %v1921_v35 = vpack.i.b16 %v1839_v46, %v1823_v19  ;;  %v2011_v43 = vcombine.low %v13332_v29, %v13334_v30 }
 0x428   :  { %v1951_v48 = vrot.slane %v1943_v1, %v13147_v17  ;;  %v13389_v18 = vrot.slane %v1503_v63, %v13147_v17  ;;  %v13392_v26 = vrot.slane %v1944_v0, %v13147_v17  ;;  %v1420_v1 = vcombine.high %v13320_v58, %v13324_v14 }
 0x429   :  { %v13348_v11 = vpack.i.b16 %v1924_v32, %v1923_v31  ;;  %v13363_v53 = vrot.slane %v2011_v43, %v13147_v17  ;;  %v1466_v31 = vrot.slane %v1452_v56, %v13154_v36  ;;  %v1483_v55 = vcombine.high %v1459_v27, %v12882_v28 }
 0x42a   :  { %v1887_v2 = vpop.trf.xlu0  ;;  %v1903_v4 = vpop.trf.xlu1  ;;  %v1520_v60 = vcombine.high %v13386_v16, %v13389_v18 }
 0x42b   :  { %v1939_v37 = vshrl.u32 %v1887_v2, 16  ;;  %v1937_v38 = vpack.i.b16 %v1903_v4, %v1887_v2  ;;  %v1940_v39 = vshrl.u32 %v1903_v4, 16  ;;  %v1436_v2 = vcombine.high %v13322_v61, %v13326_v15 }
 0x42c   :  { %v1519_v4 = vcombine.low %v13386_v16, %v13389_v18 }
 0x42d   :  { %v13350_v5 = vpack.i.b16 %v1940_v39, %v1939_v37  ;;  %v1959_v7 = vcombine.low %v1921_v35, %v1937_v38  ;;  %v1960_v40 = vcombine.high %v1921_v35, %v1937_v38  ;;  %v1484_v37 = vcombine.high %v1466_v31, %v12882_v28 }
 0x42e   :  { %v1527_v15 = vrot.slane %v1519_v4, %v13154_v36  ;;  %v1434_v38 = vrot.slane %v1420_v1, %v13147_v17  ;;  %v1450_v39 = vrot.slane %v1436_v2, %v13147_v17 }
 0x42f   :  { %v1967_v50 = vrot.slane %v1959_v7, %v13147_v17  ;;  %v2027_v51 = vcombine.low %v13348_v11, %v13350_v5  ;;  %v13379_v21 = vrot.slane %v1960_v40, %v13147_v17 }
 0x431   :  { %v1975_v41 = vcombine.low %v1951_v48, %v1967_v50  ;;  %v1976_v52 = vcombine.high %v1951_v48, %v1967_v50  ;;  %v13366_v54 = vrot.slane %v2027_v51, %v13147_v17  ;;  %v1991_v34 = vcombine.low %v13392_v26, %v13379_v21 }
 0x432   :  { %v1467_v48 = vcombine.low %v1434_v38, %v1450_v39  ;;  %v1992_v63 = vcombine.high %v13392_v26, %v13379_v21 }
 0x433   :  { %v1983_v19 = vrot.slane %v1975_v41, %v13154_v36  ;;  %v1990_v46 = vrot.slane %v1976_v52, %v13154_v36  ;;  %v2043_v49 = vcombine.low %v13363_v53, %v13366_v54  ;;  %v1999_v58 = vrot.slane %v1991_v34, %v13154_v36 }
 0x434   :  { %v1468_v41 = vcombine.high %v1434_v38, %v1450_v39  ;;  %v1475_v56 = vrot.slane %v1467_v48, %v13154_v36 }
 0x435   :  { %v2085_v22 = vsel %vm2083_vm2, %v1983_v19, 0  ;;  %v2269_v23 = vsel %vm2083_vm2, %v1990_v46, 0  ;;  %v2051_v24 = vrot.slane %v2043_v49, %v13154_v36  ;;  %v2008_v25 = vcombine.high %v1990_v46, %v12882_v28 }
 0x436   :  { %11871 = vmatpush3.bf16.msra.mxu1 %v2085_v22  ;;  %11895 = vmatpush3.bf16.msra.mxu0 %v2269_v23  ;;  %v2007_v35 = vcombine.high %v1983_v19, %v12882_v28  ;;  %v2453_v7 = vsel %vm2083_vm2, %v1999_v58, 0  ;;  %v2009_v51 = vcombine.high %v1999_v58, %v12882_v28  ;;  %v2044_v46 = vcombine.high %v13363_v53, %v13366_v54 }
 0x437   :  { %11876 = vmatprep.subr.bf16.mxu1 %v12881_v3  ;;  %11906 = vmatprep.subr.bf16.mxu0 %v12881_v3  ;;  %v2131_v32 = vsel %vm2083_vm2, %v2051_v24, 0  ;;  %v2361_v33 = vsel %vm2083_vm2, %v2008_v25, 0  ;;  %v2075_v50 = vcombine.high %v2051_v24, %v12882_v28  ;;  %v1488_v49 = vcombine.high %v13342_v6, %v13352_v13 }
 0x438   :  { %v2177_v43 = vsel %vm2083_vm2, %v2007_v35, 0  ;;  %v2545_v19 = vsel %vm2083_vm2, %v2009_v51, 0  ;;  %v13465_v21 = vrot.slane %v1468_v41, %v13154_v36  ;;  %v1504_v23 = vcombine.high %v13344_v8, %v13354_v9 }
 0x439   :  { %11873 = vmatmul.mubr.msk.bf16.vlgmr.msra.gmra.mrb[4].mxu1 %vm2079_vm3, %v1459_v27  ;;  %11897 = vmatmul.mubr.msk.bf16.vlgmr.msra.gmra.mrb[4].mxu0 %vm2079_vm3, %v1466_v31  ;;  %v2223_v0 = vsel %vm2083_vm2, %v2075_v50, 0  ;;  %v13475_v53 = vrot.slane %v1520_v60, %v13154_v36  ;;  %v2012_v6 = vcombine.high %v13332_v29, %v13334_v30  ;;  %v2028_v13 = vcombine.high %v13348_v11, %v13350_v5 }
 0x43a   :  { %11877 = vmatpush3.bf16.msra.mxu1 %v2131_v32  ;;  %11907 = vmatpush3.bf16.msra.mxu0 %v2361_v33  ;;  %v13404_v59 = vpop.permute.xlu1 %1065  ;;  %v2006_v8 = vrot.slane %v1992_v63, %v13154_v36  ;;  %v2058_v9 = vrot.slane %v2044_v46, %v13154_v36  ;;  %v13487_v54 = vrot.slane %v1488_v49, %v13147_v17 }
 0x43b   :  { %11878 = vmatprep.mubr.msk.bf16.mxu1 %vm12883_vm1, %v12881_v3  ;;  %11882 = vmatprep.subr.bf16.mxu1 %v12881_v3  ;;  %v1485_v29 = vcombine.high %v1475_v56, %v12882_v28  ;;  %v13496_v30 = vcombine.high %v13465_v21, %v12882_v28  ;;  %v13499_v11 = vrot.slane %v1504_v23, %v13147_v17 }
 0x43c   :  { %11908 = vmatprep.mubr.msk.bf16.mxu0 %vm12883_vm1, %v12881_v3  ;;  %11918 = vmatprep.subr.bf16.mxu0 %v12881_v3  ;;  %v1551_v27 = vcombine.high %v1527_v15, %v12882_v28  ;;  %v13510_v31 = vcombine.high %v13475_v53, %v12882_v28  ;;  %v1107_v32 = vcombine.low %v13232_v20, %v13404_v59  ;;  %v2637_v33 = vsel %vm2083_vm2, %v2006_v8, 0 }
 0x43d   :  { %v13516_v34 = vrot.slane %v2012_v6, %v13147_v17  ;;  %v13519_v1 = vrot.slane %v2028_v13, %v13147_v17  ;;  %v1108_v2 = vcombine.high %v13232_v20, %v13404_v59  ;;  %v2315_v35 = vsel %vm2083_vm2, %v2058_v9, 0 }
 0x43e   :  { %v13420_v14 = vpop.permute.xlu1 %1068  ;;  %v2076_v58 = vcombine.high %v2058_v9, %v12882_v28 }
 0x43f   :  { %v13422_v61 = vpop.permute.xlu0 %1062  ;;  %v13551_v48 = vrot.slane %v1108_v2, %v13147_v17 }
 0x440   :  { %v1123_v25 = vcombine.low %v13422_v61, %v13420_v14  ;;  %v1124_v4 = vcombine.high %v13422_v61, %v13420_v14 }
 0x441   :  { %11879 = vmatmul.mubr.msk.bf16.vlgmr.msra.gmra.mrb[8].mxu1 %vm2079_vm3, %v1527_v15  ;;  %11909 = vmatmul.mubr.msk.bf16.vlgmr.msra.gmra.mrb[8].mxu0 %vm2079_vm3, %v1484_v37 }
 0x442   :  { %11883 = vmatpush3.bf16.msra.mxu1 %v2177_v43  ;;  %11919 = vmatpush3.bf16.msra.mxu0 %v2453_v7  ;;  %v13432_v12 = vpop.permute.xlu1 %1074  ;;  %v13530_v15 = vrot.slane %v1123_v25, %v13147_v17  ;;  %v1115_v43 = vrot.slane %v1107_v32, %v13147_v17  ;;  %v2010_v7 = vcombine.high %v2006_v8, %v12882_v28 }
 0x443   :  { %v13434_v47 = vpop.permute.xlu0 %1071  ;;  %11884 = vmatprep.mubr.msk.bf16.mxu1 %vm12883_vm1, %v12881_v3  ;;  %11888 = vmatprep.subr.bf16.mxu1 %v12881_v3  ;;  %v13554_v50 = vrot.slane %v1124_v4, %v13147_v17 }
 0x444   :  { %11920 = vmatprep.mubr.msk.bf16.mxu0 %vm12883_vm1, %v12881_v3  ;;  %11930 = vmatprep.subr.bf16.mxu0 %v12881_v3  ;;  %v1171_v41 = vcombine.low %v1115_v43, %v13530_v15  ;;  %v1172_v63 = vcombine.high %v1115_v43, %v13530_v15 }
 0x445   :  { %v1187_v4 = vcombine.low %v13551_v48, %v13554_v50 }
 0x446   :  { %v13444_v40 = vpop.permute.xlu1 %1080  ;;  %v1179_v2 = vrot.slane %v1171_v41, %v13154_v36 }
 0x447   :  { %v13446_v52 = vpop.permute.xlu0 %1077  ;;  %v1155_v5 = vcombine.low %v13432_v12, %v13444_v40  ;;  %v1156_v14 = vcombine.high %v13432_v12, %v13444_v40  ;;  %v2059_v12 = vcombine.low %v13516_v34, %v13519_v1  ;;  %v2407_v40 = vsel %vm2083_vm2, %v2076_v58, 0 }
 0x448   :  { %v1139_v18 = vcombine.low %v13434_v47, %v13446_v52  ;;  %v1140_v51 = vcombine.high %v13434_v47, %v13446_v52 }
 0x449   :  { %11885 = vmatmul.mubr.msk.bf16.vlgmr.msra.gmra.mrb[12].mxu1 %vm2079_vm3, %v1483_v55  ;;  %11921 = vmatmul.mubr.msk.bf16.vlgmr.msra.gmra.mrb[12].mxu0 %vm2079_vm3, %v1475_v56  ;;  %v1163_v61 = vrot.slane %v1155_v5, %v13147_v17 }
 0x44a   :  { %11889 = vmatpush3.bf16.msra.mxu1 %v2223_v0  ;;  %11931 = vmatpush3.bf16.msra.mxu0 %v2545_v19  ;;  %v13462_v22 = vpop.permute.xlu1 %1086  ;;  %v1147_v38 = vrot.slane %v1139_v18, %v13147_v17  ;;  %v13564_v0 = vrot.slane %v1156_v14, %v13147_v17  ;;  %v13571_v8 = vrot.slane %v1140_v51, %v13147_v17 }
 0x44b   :  { %v13469_v24 = vpop.permute.xlu0 %1083  ;;  %11890 = vmatprep.mubr.msk.bf16.mxu1 %vm12883_vm1, %v12881_v3  ;;  %11900 = vmatprep.subr.bf16.mxu1 %v12881_v3 }
 0x44c   :  { %11932 = vmatprep.mubr.msk.bf16.mxu0 %vm12883_vm1, %v12881_v3  ;;  %11942 = vmatprep.subr.bf16.mxu0 %v12881_v3  ;;  %v1203_v19 = vcombine.low %v1147_v38, %v1163_v61 }
 0x44e   :  { %v13491_v16 = vpop.permute.xlu1 %1092  ;;  %v1211_v5 = vrot.slane %v1203_v19, %v13154_v36 }
 0x44f   :  { %v13505_v26 = vpop.permute.xlu0 %1089  ;;  %v1259_v37 = vcombine.low %v13462_v22, %v13491_v16  ;;  %v1260_v47 = vcombine.high %v13462_v22, %v13491_v16  ;;  %v2729_v22 = vsel %vm2083_vm2, %v2010_v7, 0 }
 0x450   :  { %v1243_v20 = vcombine.low %v13469_v24, %v13505_v26  ;;  %v1244_v52 = vcombine.high %v13469_v24, %v13505_v26  ;;  %v1235_v43 = vcombine.low %v1179_v2, %v1211_v5 }
 0x451   :  { %11891 = vmatmul.mubr.msk.bf16.vlgmr.msra.gmra.mrb[16].mxu1 %vm2079_vm3, %v1551_v27  ;;  %11933 = vmatmul.mubr.msk.bf16.vlgmr.msra.gmra.mrb[16].mxu0 %vm2079_vm3, %v1485_v29  ;;  %v1267_v55 = vrot.slane %v1259_v37, %v13147_v17  ;;  %v1186_v37 = vrot.slane %v1172_v63, %v13154_v36 }
 0x452   :  { %11901 = vmatpush3.bf16.msra.mxu1 %v2315_v35  ;;  %11943 = vmatpush3.bf16.msra.mxu0 %v2637_v33  ;;  %v1099_v59 = vpop.permute.xlu1 %1098  ;;  %v1251_v56 = vrot.slane %v1243_v20, %v13147_v17  ;;  %v1258_v26 = vrot.slane %v1244_v52, %v13147_v17  ;;  %v2067_v33 = vrot.slane %v2059_v12, %v13154_v36 }
 0x453   :  { %v1096_v39 = vpop.permute.xlu0 %1095  ;;  %11902 = vmatprep.mubr.msk.bf16.mxu1 %vm12883_vm1, %v12881_v3  ;;  %11912 = vmatprep.subr.bf16.mxu1 %v12881_v3 }
 0x454   :  { %11944 = vmatprep.mubr.msk.bf16.mxu0 %vm12883_vm1, %v12881_v3  ;;  %11954 = vmatprep.subr.bf16.mxu0 %v12881_v3  ;;  %v1307_v16 = vcombine.low %v1251_v56, %v1267_v55  ;;  %v1308_v18 = vcombine.high %v1251_v56, %v1267_v55  ;;  %v2499_v51 = vsel %vm2083_vm2, %v2067_v33, 0  ;;  %v2077_v52 = vcombine.high %v2067_v33, %v12882_v28 }
 0x456   :  { %v1105_v60 = vpop.permute.xlu1 %1104  ;;  %v1315_v58 = vrot.slane %v1307_v16, %v13154_v36 }
 0x457   :  { %v1291_v46 = vcombine.low %v1099_v59, %v1105_v60  ;;  %v1292_v49 = vcombine.high %v1099_v59, %v1105_v60  ;;  %v1102_v23 = vpop.permute.xlu0 %1101  ;;  %v1236_v59 = vcombine.high %v1179_v2, %v1211_v5 }
 0x458   :  { %v1275_v6 = vcombine.low %v1096_v39, %v1102_v23  ;;  %v1276_v13 = vcombine.high %v1096_v39, %v1102_v23 }
 0x459   :  { %v1299_v9 = vrot.slane %v1291_v46, %v13147_v17  ;;  %v1306_v25 = vrot.slane %v1292_v49, %v13147_v17  ;;  %11903 = vmatmul.mubr.msk.bf16.vlgmr.msra.gmra.mrb[20].mxu1 %vm2079_vm3, %v13475_v53  ;;  %11945 = vmatmul.mubr.msk.bf16.vlgmr.msra.gmra.mrb[20].mxu0 %vm2079_vm3, %v13465_v21  ;;  %v1204_v53 = vcombine.high %v1147_v38, %v1163_v61 }
 0x45a   :  { %v1283_v24 = vrot.slane %v1275_v6, %v13147_v17  ;;  %v1290_v29 = vrot.slane %v1276_v13, %v13147_v17  ;;  %11913 = vmatpush3.bf16.msra.mxu1 %v2407_v40  ;;  %11955 = vmatpush3.bf16.msra.mxu0 %v2729_v22  ;;  %v1274_v21 = vrot.slane %v1260_v47, %v13147_v17 }
 0x45b   :  { %11914 = vmatprep.mubr.msk.bf16.mxu1 %vm12883_vm1, %v12881_v3  ;;  %11924 = vmatprep.subr.bf16.mxu1 %v12881_v3  ;;  %v1218_v14 = vrot.slane %v1204_v53, %v13154_v36  ;;  %v1322_v61 = vrot.slane %v1308_v18, %v13154_v36  ;;  %v1219_v38 = vcombine.low %v13571_v8, %v13564_v0 }
 0x45c   :  { %v1339_v27 = vcombine.low %v1283_v24, %v1299_v9  ;;  %11956 = vmatprep.mubr.msk.bf16.mxu0 %vm12883_vm1, %v12881_v3  ;;  %v1340_v32 = vcombine.high %v1283_v24, %v1299_v9  ;;  %v1355_v35 = vcombine.low %v1290_v29, %v1306_v25  ;;  %11966 = vmatprep.subr.bf16.mxu0 %v12881_v3 }
 0x45d   :  { %v1323_v12 = vcombine.low %v1258_v26, %v1274_v21  ;;  %v1356_v55 = vcombine.high %v1290_v29, %v1306_v25  ;;  %v1227_v19 = vrot.slane %v1219_v38, %v13154_v36  ;;  %v1324_v46 = vcombine.high %v1258_v26, %v1274_v21 }
 0x45e   :  { %v1347_v15 = vrot.slane %v1339_v27, %v13154_v36  ;;  %v1354_v20 = vrot.slane %v1340_v32, %v13154_v36  ;;  %v1363_v41 = vrot.slane %v1355_v35, %v13154_v36  ;;  %v1238_v49 = vcombine.high %v1186_v37, %v1218_v14 }
 0x45f   :  { %v1237_v23 = vcombine.low %v1186_v37, %v1218_v14  ;;  %v1331_v47 = vrot.slane %v1323_v12, %v13154_v36  ;;  %v1195_v6 = vrot.slane %v1187_v4, %v13154_v36  ;;  %v1188_v13 = vcombine.high %v13551_v48, %v13554_v50 }
 0x460   :  { %v1372_v39 = vcombine.high %v1315_v58, %v1347_v15  ;;  %v1371_v7 = vcombine.low %v1315_v58, %v1347_v15  ;;  %v1374_v40 = vcombine.high %v1322_v61, %v1354_v20  ;;  %v1373_v63 = vcombine.low %v1322_v61, %v1354_v20 }
 0x461   :  { %11915 = vmatmul.mubr.msk.bf16.vlgmr.msra.gmra.mrb[24].mxu1 %vm2079_vm3, %v13510_v31  ;;  %11957 = vmatmul.mubr.msk.bf16.vlgmr.msra.gmra.mrb[24].mxu0 %vm2079_vm3, %v13496_v30  ;;  %v1535_v31 = vcombine.low %v13487_v54, %v13499_v11  ;;  %v1220_v30 = vcombine.high %v13571_v8, %v13564_v0  ;;  %v1370_v9 = vrot.slane %v1356_v55, %v13154_v36  ;;  %v2591_v48 = vsel %vm2083_vm2, %v2077_v52, 0 }
 0x462   :  { %11925 = vmatpush3.bf16.msra.mxu1 %v2499_v51  ;;  %v1380_v56 = vpack.c.bf16 %v1372_v39, %v1236_v59  ;;  %v1379_v60 = vpack.c.bf16 %v1371_v7, %v1235_v43  ;;  %11926 = vmatprep.mubr.msk.bf16.mxu1 %vm12883_vm1, %v12881_v3  ;;  %v1382_v0 = vpack.c.bf16 %v1374_v40, %v1238_v49 }
 0x463   :  { %11936 = vmatprep.subr.bf16.mxu1 %v12881_v3  ;;  %11968 = vmatprep.mubr.msk.bf16.mxu0 %vm12883_vm1, %v12881_v3  ;;  %v1381_v8 = vpack.c.bf16 %v1373_v63, %v1237_v23  ;;  %v1376_v25 = vcombine.high %v1331_v47, %v1363_v41  ;;  %v1375_v22 = vcombine.low %v1331_v47, %v1363_v41 }
 0x464   :  { %3025 = vxpose.xlu0.c.b16.start.end [1/1] (short) (narrow) %v1380_v56, 16  ;;  %3009 = vxpose.xlu1.c.b16.start.end [1/1] (short) (narrow) %v1379_v60, 16  ;;  %v1543_v16 = vrot.slane %v1535_v31, %v13154_v36  ;;  %v1338_v24 = vrot.slane %v1324_v46, %v13154_v36  ;;  %v1240_v29 = vcombine.high %v1195_v6, %v1227_v19 }
 0x465   :  { %v1239_v5 = vcombine.low %v1195_v6, %v1227_v19  ;;  %v1234_v53 = vrot.slane %v1220_v30, %v13154_v36  ;;  %v1202_v50 = vrot.slane %v1188_v13, %v13154_v36  ;;  %v2060_v21 = vcombine.high %v13516_v34, %v13519_v1 }
 0x466   :  { %v1378_v18 = vcombine.high %v1338_v24, %v1370_v9  ;;  %v1384_v26 = vpack.c.bf16 %v1376_v25, %v1240_v29  ;;  %v1377_v32 = vcombine.low %v1338_v24, %v1370_v9  ;;  %v1553_v15 = vcombine.high %v1543_v16, %v12882_v28 }
 0x467   :  { %v1383_v27 = vpack.c.bf16 %v1375_v22, %v1239_v5  ;;  %v1242_v33 = vcombine.high %v1202_v50, %v1234_v53  ;;  %v1241_v2 = vcombine.low %v1202_v50, %v1234_v53  ;;  %v2074_v4 = vrot.slane %v2060_v21, %v13154_v36 }
 0x468   :  { %3057 = vxpose.xlu0.c.b16.start.end [1/1] (short) (narrow) %v1382_v0, 16  ;;  %3041 = vxpose.xlu1.c.b16.start.end [1/1] (short) (narrow) %v1381_v8, 16  ;;  %v1536_v1 = vcombine.high %v13487_v54, %v13499_v11 }
 0x469   :  { %11927 = vmatmul.mubr.msk.bf16.vlgmr.msra.gmra.mrb[28].mxu1 %vm2079_vm3, %v1543_v16  ;;  %v1386_v35 = vpack.c.bf16 %v1378_v18, %v1242_v33  ;;  %v1385_v58 = vpack.c.bf16 %v1377_v32, %v1241_v2  ;;  %v2683_v34 = vsel %vm2083_vm2, %v2074_v4, 0  ;;  %v2078_v37 = vcombine.high %v2074_v4, %v12882_v28 }
 0x46a   :  { %11937 = vmatpush3.bf16.msra.mxu1 %v2591_v48  ;;  %11938 = vmatprep.mubr.msk.bf16.mxu1 %vm12883_vm1, %v12881_v3  ;;  %v1550_v20 = vrot.slane %v1536_v1, %v13154_v36 }
 0x46b   :  { %11948 = vmatprep.subr.bf16.mxu1 %v12881_v3  ;;  %v2775_v59 = vsel %vm2083_vm2, %v2078_v37, 0 }
 0x46c   :  { %3089 = vxpose.xlu0.c.b16.start.end [1/1] (short) (narrow) %v1384_v26, 16  ;;  %3073 = vxpose.xlu1.c.b16.start.end [1/1] (short) (narrow) %v1383_v27, 16  ;;  %v1554_v14 = vcombine.high %v1550_v20, %v12882_v28 }
 0x470   :  { %3121 = vxpose.xlu0.c.b16.start.end [1/1] (short) (narrow) %v1386_v35, 16  ;;  %3105 = vxpose.xlu1.c.b16.start.end [1/1] (short) (narrow) %v1385_v58, 16 }
 0x471   :  { %11939 = vmatmul.mubr.msk.bf16.vlgmr.msra.gmra.mrb[32].mxu1 %vm2079_vm3, %v1553_v15 }
 0x472   :  { %11949 = vmatpush3.bf16.msra.mxu1 %v2683_v34  ;;  %11950 = vmatprep.mubr.msk.bf16.mxu1 %vm12883_vm1, %v12881_v3 }
 0x473   :  { %11960 = vmatprep.subr.bf16.mxu1 %v12881_v3 }
 0x479   :  { %11951 = vmatmul.mubr.msk.bf16.vlgmr.msra.gmra.mrb[36].mxu1 %vm2079_vm3, %v1550_v20 }
 0x47a   :  { %11961 = vmatpush3.bf16.msra.mxu1 %v2775_v59  ;;  %11962 = vmatprep.mubr.msk.bf16.mxu1 %vm12883_vm1, %v12881_v3 }
 0x47b   :  { %11972 = vmatprep.subr.bf16.mxu1 %v12881_v3 }
 0x481   :  { %11963 = vmatmul.mubr.msk.bf16.vlgmr.msra.gmra.mrb[40].mxu1 %vm2079_vm3, %v1554_v14 }
 0x482   :  { %11974 = vmatprep.mubr.msk.bf16.mxu1 %vm12883_vm1, %v12881_v3 }
 0x4ca   :  { %v3033_v54 = vpop.trf.xlu0  ;;  %v3017_v11 = vpop.trf.xlu1 }
 0x4ce   :  { %v3065_v61 = vpop.trf.xlu0  ;;  %v3049_v38 = vpop.trf.xlu1 }
 0x4d2   :  { %v3097_v39 = vpop.trf.xlu0  ;;  %v3081_v43 = vpop.trf.xlu1 }
 0x4d3   :  { %v3171_v7 = vcombine.low %v3033_v54, %v3097_v39  ;;  %v3137_v12 = vcombine.low %v3017_v11, %v3081_v43 }
 0x4d5   :  { %v3178_v41 = vrot.slane %v3171_v7, %v13147_v17  ;;  %v3144_v55 = vrot.slane %v3137_v12, %v13147_v17 }
 0x4d6   :  { %v3129_v51 = vpop.trf.xlu0  ;;  %v3113_v40 = vpop.trf.xlu1 }
 0x4d7   :  { %v3179_v56 = vcombine.low %v3065_v61, %v3129_v51  ;;  %v3145_v60 = vcombine.low %v3049_v38, %v3113_v40 }
 0x4d9   :  { %v3186_v63 = vrot.slane %v3179_v56, %v13147_v17  ;;  %v3152_v31 = vrot.slane %v3145_v60, %v13147_v17 }
 0x4db   :  { %v3187_v19 = vcombine.low %v3178_v41, %v3186_v63  ;;  %v3188_v30 = vcombine.high %v3178_v41, %v3186_v63  ;;  %v3153_v46 = vcombine.low %v3144_v55, %v3152_v31  ;;  %v3154_v49 = vcombine.high %v3144_v55, %v3152_v31 }
 0x4dd   :  { %v3195_v23 = vrot.slane %v3187_v19, %v13154_v36  ;;  %v13662_v47 = vrot.slane %v3188_v30, %v13154_v36  ;;  %v3161_v52 = vrot.slane %v3153_v46, %v13154_v36  ;;  %v13666_v6 = vrot.slane %v3154_v49, %v13154_v36 }
 0x4df   :  { %v3209_v13 = vshrl.u32 %v3161_v52, 16  ;;  %v3210_v9 = vshrl.u32 %v3195_v23, 16  ;;  %v3169_v0 = vcombine.high %v3161_v52, %v12882_v28  ;;  %v3203_v8 = vcombine.high %v3195_v23, %v12882_v28 }
 0x4e0   :  { %v3207_v25 = vpack.i.b16 %v3195_v23, %v3161_v52  ;;  %v3223_v22 = vpack.i.b16 %v13662_v47, %v13666_v6  ;;  %v3225_v16 = vshrl.u32 %v13666_v6, 16  ;;  %v3226_v24 = vshrl.u32 %v13662_v47, 16 }
 0x4e1   :  { %v3211_v29 = vpack.i.b16 %v3210_v9, %v3209_v13  ;;  %v3217_v5 = vshrl.u32 %v3169_v0, 16  ;;  %v3218_v53 = vshrl.u32 %v3203_v8, 16  ;;  %v3215_v48 = vpack.i.b16 %v3203_v8, %v3169_v0 }
 0x4e2   :  { %3237 = vxpose.xlu1.c.b16.start.end [1/1] (short) (narrow) %v3207_v25, 16  ;;  %v13674_v50 = vpack.i.b16 %v3226_v24, %v3225_v16  ;;  %v13678_v18 = vcombine.high %v13666_v6, %v12882_v28  ;;  %v13682_v21 = vcombine.high %v13662_v47, %v12882_v28 }
 0x4e3   :  { %3253 = vxpose.xlu0.c.b16.start.end [1/1] (short) (narrow) %v3211_v29, 16  ;;  %v3219_v26 = vpack.i.b16 %v3218_v53, %v3217_v5 }
 0x4e4   :  { %v3231_v27 = vpack.i.b16 %v13682_v21, %v13678_v18  ;;  %v3233_v32 = vshrl.u32 %v13678_v18, 16  ;;  %v3234_v33 = vshrl.u32 %v13682_v21, 16 }
 0x4e6   :  { %3269 = vxpose.xlu1.c.b16.start.end [1/1] (short) (narrow) %v3215_v48, 16  ;;  %v13688_v2 = vpack.i.b16 %v3234_v33, %v3233_v32 }
 0x4e7   :  { %3285 = vxpose.xlu0.c.b16.start.end [1/1] (short) (narrow) %v3219_v26, 16 }
 0x50c   :  { %v13690_v4 = vpop.f32.mrb[4].mxu1  ;;  %v13692_v35 = vpop.f32.mrb[4].mxu0 }
 0x50d   :  { %v11874_v58 = vpop.f32.mrb[5].mxu1  ;;  %v11898_v15 = vpop.f32.mrb[5].mxu0  ;;  %v2817_v34 = vsel %vm2079_vm3, %v13690_v4, -inf  ;;  %v2829_v14 = vsel %vm2079_vm3, %v13692_v35, -inf }
 0x50e   :  { %v2124_v1 = vpop.f32.mrb[6].mxu1  ;;  %2818 = vmax.xlane.f32.xlu0 %v2817_v34  ;;  %v2308_v37 = vpop.f32.mrb[6].mxu0 }
 0x50f   :  { %v11875_v20 = vpop.f32.mrb[7].mxu1  ;;  %v11899_v59 = vpop.f32.mrb[7].mxu0 }
 0x512   :  { %2830 = vmax.xlane.f32.xlu0 %v2829_v14 }
 0x514   :  { %v13698_v54 = vpop.f32.mrb[8].mxu1  ;;  %v13700_v11 = vpop.f32.mrb[8].mxu0 }
 0x515   :  { %v11880_v61 = vpop.f32.mrb[9].mxu1  ;;  %v11910_v38 = vpop.f32.mrb[9].mxu0  ;;  %v2820_v39 = vsel %vm2079_vm3, %v13698_v54, -inf  ;;  %v2835_v43 = vsel %vm2079_vm3, %v13700_v11, -inf }
 0x516   :  { %v2170_v7 = vpop.f32.mrb[10].mxu1  ;;  %2821 = vmax.xlane.f32.xlu1 %v2820_v39  ;;  %2836 = vmax.xlane.f32.xlu0 %v2835_v43  ;;  %v2400_v12 = vpop.f32.mrb[10].mxu0 }
 0x517   :  { %v11881_v51 = vpop.f32.mrb[11].mxu1  ;;  %v11911_v40 = vpop.f32.mrb[11].mxu0 }
 0x51c   :  { %v13706_v41 = vpop.f32.mrb[12].mxu1  ;;  %v13708_v55 = vpop.f32.mrb[12].mxu0 }
 0x51d   :  { %v11886_v56 = vpop.f32.mrb[13].mxu1  ;;  %v11922_v60 = vpop.f32.mrb[13].mxu0  ;;  %v2823_v63 = vsel %vm2079_vm3, %v13706_v41, -inf  ;;  %v2841_v31 = vsel %vm2079_vm3, %v13708_v55, -inf }
 0x51e   :  { %v2216_v19 = vpop.f32.mrb[14].mxu1  ;;  %2824 = vmax.xlane.f32.xlu0 %v2823_v63  ;;  %2842 = vmax.xlane.f32.xlu1 %v2841_v31  ;;  %v2492_v30 = vpop.f32.mrb[14].mxu0 }
 0x51f   :  { %v11887_v46 = vpop.f32.mrb[15].mxu1  ;;  %v11923_v49 = vpop.f32.mrb[15].mxu0 }
 0x524   :  { %v13714_v23 = vpop.f32.mrb[16].mxu1  ;;  %v13716_v52 = vpop.f32.mrb[16].mxu0 }
 0x525   :  { %v11892_v13 = vpop.f32.mrb[17].mxu1  ;;  %v11934_v9 = vpop.f32.mrb[17].mxu0  ;;  %v2826_v0 = vsel %vm2079_vm3, %v13714_v23, -inf  ;;  %v2847_v29 = vsel %vm2079_vm3, %v13716_v52, -inf }
 0x526   :  { %v2262_v8 = vpop.f32.mrb[18].mxu1  ;;  %2827 = vmax.xlane.f32.xlu1 %v2826_v0  ;;  %v2584_v25 = vpop.f32.mrb[18].mxu0 }
 0x527   :  { %v11893_v16 = vpop.f32.mrb[19].mxu1  ;;  %v11935_v24 = vpop.f32.mrb[19].mxu0 }
 0x52a   :  { %2848 = vmax.xlane.f32.xlu1 %v2847_v29 }
 0x52c   :  { %v13722_v5 = vpop.f32.mrb[20].mxu1  ;;  %v13724_v53 = vpop.f32.mrb[20].mxu0 }
 0x52d   :  { %v11904_v48 = vpop.f32.mrb[21].mxu1  ;;  %v11946_v26 = vpop.f32.mrb[21].mxu0  ;;  %v2832_v32 = vsel %vm2079_vm3, %v13722_v5, -inf  ;;  %v2853_v1 = vsel %vm2079_vm3, %v13724_v53, -inf }
 0x52e   :  { %v2354_v33 = vpop.f32.mrb[22].mxu1  ;;  %2833 = vmax.xlane.f32.xlu1 %v2832_v32  ;;  %v2676_v58 = vpop.f32.mrb[22].mxu0 }
 0x52f   :  { %v11905_v15 = vpop.f32.mrb[23].mxu1  ;;  %v11947_v34 = vpop.f32.mrb[23].mxu0 }
 0x532   :  { %2854 = vmax.xlane.f32.xlu1 %v2853_v1 }
 0x534   :  { %v13730_v37 = vpop.f32.mrb[24].mxu1  ;;  %v13732_v20 = vpop.f32.mrb[24].mxu0 }
 0x535   :  { %v11916_v59 = vpop.f32.mrb[25].mxu1  ;;  %v11958_v14 = vpop.f32.mrb[25].mxu0  ;;  %v2838_v61 = vsel %vm2079_vm3, %v13730_v37, -inf  ;;  %v2859_v48 = vsel %vm2079_vm3, %v13732_v20, -inf }
 0x536   :  { %v2446_v38 = vpop.f32.mrb[26].mxu1  ;;  %2839 = vmax.xlane.f32.xlu0 %v2838_v61  ;;  %v2768_v39 = vpop.f32.mrb[26].mxu0 }
 0x537   :  { %v11917_v43 = vpop.f32.mrb[27].mxu1  ;;  %v11959_v7 = vpop.f32.mrb[27].mxu0 }
 0x53c   :  { %v13736_v12 = vpop.f32.mrb[28].mxu1 }
 0x53d   :  { %v11928_v51 = vpop.f32.mrb[29].mxu1  ;;  %v2844_v40 = vsel %vm2079_vm3, %v13736_v12, -inf }
 0x53e   :  { %v2538_v56 = vpop.f32.mrb[30].mxu1  ;;  %2845 = vmax.xlane.f32.xlu0 %v2844_v40 }
 0x53f   :  { %v11929_v60 = vpop.f32.mrb[31].mxu1 }
 0x544   :  { %v13740_v63 = vpop.f32.mrb[32].mxu1 }
 0x545   :  { %v11940_v31 = vpop.f32.mrb[33].mxu1  ;;  %v2850_v19 = vsel %vm2079_vm3, %v13740_v63, -inf }
 0x546   :  { %v2630_v30 = vpop.f32.mrb[34].mxu1  ;;  %2851 = vmax.xlane.f32.xlu0 %v2850_v19 }
 0x547   :  { %v11941_v46 = vpop.f32.mrb[35].mxu1 }
 0x548   :  { %v13762_v58 = vpop.trf.xlu1 }
 0x549   :  { %v13758_v32 = vpop.trf.xlu0 }
 0x54c   :  { %v13744_v49 = vpop.f32.mrb[36].mxu1  ;;  %v13765_v6 = vpop.trf.xlu1 }
 0x54d   :  { %v11952_v13 = vpop.f32.mrb[37].mxu1  ;;  %v2856_v9 = vsel %vm2079_vm3, %v13744_v49, -inf  ;;  %v13760_v33 = vpop.trf.xlu0 }
 0x54e   :  { %v2722_v0 = vpop.f32.mrb[38].mxu1  ;;  %2857 = vmax.xlane.f32.xlu0 %v2856_v9 }
 0x54f   :  { %v11953_v8 = vpop.f32.mrb[39].mxu1 }
 0x554   :  { %v13748_v25 = vpop.f32.mrb[40].mxu1 }
 0x555   :  { %v11964_v16 = vpop.f32.mrb[41].mxu1  ;;  %v2862_v26 = vsel %vm2079_vm3, %v13748_v25, -inf }
 0x556   :  { %v2814_v24 = vpop.f32.mrb[42].mxu1 }
 0x557   :  { %v11965_v29 = vpop.f32.mrb[43].mxu1 }
 0x55f   :  { %3301 = vxpose.xlu1.c.b16.start.end [1/1] (short) (narrow) %v3223_v22, 16 }
 0x56c   :  { %2860 = vmax.xlane.f32.xlu1 %v2859_v48 }
 0x57b   :  { %3317 = vxpose.xlu0.c.b16.start.end [1/1] (short) (narrow) %v13674_v50, 16 }
 0x588   :  { %2863 = vmax.xlane.f32.xlu0 %v2862_v26 }
 0x59b   :  { %v2819_v15 = vpop.xlane.xlu0 %2818 }
 0x59c   :  { %v2865_v47 = vsub.f32 %v13690_v4, %v2819_v15 }
 0x59e   :  { %v2881_v22 = vmul.f32 1.442695, %v2865_v47 }
 0x59f   :  { %v2831_v34 = vpop.xlane.xlu0 %2830 }
 0x5a0   :  { %12540 = vpow2.f32 %v2881_v22  ;;  %v2869_v50 = vsub.f32 %v13692_v35, %v2831_v34 }
 0x5a2   :  { %v2889_v1 = vmul.f32 1.442695, %v2869_v50 }
 0x5a3   :  { %v2822_v59 = vpop.xlane.xlu1 %2821  ;;  %v2837_v14 = vpop.xlane.xlu0 %2836 }
 0x5a4   :  { %12542 = vpow2.f32 %v2889_v1  ;;  %v2866_v61 = vsub.f32 %v13698_v54, %v2822_v59  ;;  %v2871_v38 = vsub.f32 %v13700_v11, %v2837_v14 }
 0x5a6   :  { %v2883_v39 = vmul.f32 1.442695, %v2866_v61  ;;  %v2893_v43 = vmul.f32 1.442695, %v2871_v38 }
 0x5a8   :  { %12544 = vpow2.f32 %v2883_v39 }
 0x5a9   :  { %12546 = vpow2.f32 %v2893_v43 }
 0x5aa   :  { %v13770_v4 = vpop.eup %12540 }
 0x5ab   :  { %v2825_v7 = vpop.xlane.xlu0 %2824  ;;  %v2843_v51 = vpop.xlane.xlu1 %2842  ;;  %v2913_v40 = vsel %vm2079_vm3, %v13770_v4, 0.0 }
 0x5ac   :  { %v2867_v35 = vsub.f32 %v13706_v41, %v2825_v7  ;;  %v2873_v56 = vsub.f32 %v13708_v55, %v2843_v51  ;;  %2914 = vadd.xlane.f32.xlu1 %v2913_v40 }
 0x5ae   :  { %v13776_v60 = vpop.eup %12542  ;;  %v2885_v54 = vmul.f32 1.442695, %v2867_v35  ;;  %v2897_v11 = vmul.f32 1.442695, %v2873_v56 }
 0x5af   :  { %v2925_v31 = vsel %vm2079_vm3, %v13776_v60, 0.0 }
 0x5b0   :  { %12548 = vpow2.f32 %v2885_v54  ;;  %2926 = vadd.xlane.f32.xlu1 %v2925_v31 }
 0x5b1   :  { %12550 = vpow2.f32 %v2897_v11 }
 0x5b2   :  { %v13780_v19 = vpop.eup %12544 }
 0x5b3   :  { %v13782_v30 = vpop.eup %12546  ;;  %v2828_v46 = vpop.xlane.xlu1 %2827  ;;  %v2916_v41 = vsel %vm2079_vm3, %v13780_v19, 0.0 }
 0x5b4   :  { %v2868_v55 = vsub.f32 %v13714_v23, %v2828_v46  ;;  %2917 = vadd.xlane.f32.xlu0 %v2916_v41  ;;  %v2931_v13 = vsel %vm2079_vm3, %v13782_v30, 0.0 }
 0x5b5   :  { %2932 = vadd.xlane.f32.xlu1 %v2931_v13 }
 0x5b6   :  { %v2887_v9 = vmul.f32 1.442695, %v2868_v55 }
 0x5b7   :  { %v2849_v0 = vpop.xlane.xlu1 %2848 }
 0x5b8   :  { %12552 = vpow2.f32 %v2887_v9  ;;  %v2875_v8 = vsub.f32 %v13716_v52, %v2849_v0 }
 0x5ba   :  { %v13790_v16 = vpop.eup %12548  ;;  %v2901_v24 = vmul.f32 1.442695, %v2875_v8 }
 0x5bb   :  { %v2834_v29 = vpop.xlane.xlu1 %2833  ;;  %v2919_v48 = vsel %vm2079_vm3, %v13790_v16, 0.0  ;;  %v13794_v26 = vpop.eup %12550 }
 0x5bc   :  { %12554 = vpow2.f32 %v2901_v24  ;;  %v2870_v23 = vsub.f32 %v13722_v5, %v2834_v29  ;;  %2920 = vadd.xlane.f32.xlu1 %v2919_v48  ;;  %v2937_v47 = vsel %vm2079_vm3, %v13794_v26, 0.0 }
 0x5be   :  { %v2891_v15 = vmul.f32 1.442695, %v2870_v23 }
 0x5bf   :  { %v2855_v31 = vpop.xlane.xlu1 %2854 }
 0x5c0   :  { %12556 = vpow2.f32 %v2891_v15  ;;  %2938 = vadd.xlane.f32.xlu1 %v2937_v47  ;;  %v2877_v46 = vsub.f32 %v13724_v53, %v2855_v31 }
 0x5c2   :  { %v13799_v52 = vpop.eup %12552  ;;  %v2905_v41 = vmul.f32 1.442695, %v2877_v46 }
 0x5c3   :  { %v2840_v22 = vpop.xlane.xlu0 %2839  ;;  %v2922_v34 = vsel %vm2079_vm3, %v13799_v52, 0.0 }
 0x5c4   :  { %v2872_v50 = vsub.f32 %v13730_v37, %v2840_v22  ;;  %2923 = vadd.xlane.f32.xlu0 %v2922_v34 }
 0x5c6   :  { %v13804_v1 = vpop.eup %12554  ;;  %v2895_v59 = vmul.f32 1.442695, %v2872_v50 }
 0x5c7   :  { %v2943_v5 = vsel %vm2079_vm3, %v13804_v1, 0.0 }
 0x5c8   :  { %12558 = vpow2.f32 %v2895_v59  ;;  %2944 = vadd.xlane.f32.xlu1 %v2943_v5 }
 0x5ca   :  { %v13808_v14 = vpop.eup %12556 }
 0x5cb   :  { %v2846_v61 = vpop.xlane.xlu0 %2845  ;;  %v2928_v38 = vsel %vm2079_vm3, %v13808_v14, 0.0 }
 0x5cc   :  { %v2874_v39 = vsub.f32 %v13736_v12, %v2846_v61  ;;  %2929 = vadd.xlane.f32.xlu0 %v2928_v38 }
 0x5ce   :  { %v2899_v43 = vmul.f32 1.442695, %v2874_v39 }
 0x5d0   :  { %12560 = vpow2.f32 %v2899_v43 }
 0x5d2   :  { %v13813_v37 = vpop.eup %12558 }
 0x5d3   :  { %v2852_v7 = vpop.xlane.xlu0 %2851  ;;  %v2934_v51 = vsel %vm2079_vm3, %v13813_v37, 0.0 }
 0x5d4   :  { %v2876_v40 = vsub.f32 %v13740_v63, %v2852_v7  ;;  %2935 = vadd.xlane.f32.xlu0 %v2934_v51  ;;  %v13827_v63 = vpop.trf.xlu1 }
 0x5d6   :  { %v2903_v35 = vmul.f32 1.442695, %v2876_v40 }
 0x5d8   :  { %12562 = vpow2.f32 %v2903_v35 }
 0x5d9   :  { %12564 = vpow2.f32 %v2905_v41 }
 0x5da   :  { %v13818_v56 = vpop.eup %12560 }
 0x5db   :  { %v2940_v54 = vsel %vm2079_vm3, %v13818_v56, 0.0  ;;  %v2858_v53 = vpop.xlane.xlu0 %2857 }
 0x5dc   :  { %2941 = vadd.xlane.f32.xlu0 %v2940_v54  ;;  %v2878_v29 = vsub.f32 %v13744_v49, %v2858_v53  ;;  %v3369_v53 = vshrl.u32 %v13762_v58, 16 }
 0x5de   :  { %v2907_v21 = vmul.f32 1.442695, %v2878_v29  ;;  %v3378_v29 = vshrl.u32 %v13760_v33, 16 }
 0x5e2   :  { %v13822_v12 = vpop.eup %12562 }
 0x5e3   :  { %v2946_v11 = vsel %vm2079_vm3, %v13822_v12, 0.0  ;;  %v13833_v0 = vpop.eup %12564 }
 0x5e4   :  { %2947 = vadd.xlane.f32.xlu0 %v2946_v11  ;;  %v2949_v8 = vsel %vm2079_vm3, %v13833_v0, 0.0 }
 0x5f5   :  { %3333 = vxpose.xlu1.c.b16.start.end [1/1] (short) (narrow) %v3231_v27, 16  ;;  %v3325_v27 = vpop.trf.xlu0 }
 0x5f6   :  { %v3386_v41 = vshrl.u32 %v3325_v27, 16 }
 0x5f9   :  { %v2861_v55 = vpop.xlane.xlu1 %2860 }
 0x5fa   :  { %v2879_v13 = vsub.f32 %v13732_v20, %v2861_v55 }
 0x5fc   :  { %v2909_v9 = vmul.f32 1.442695, %v2879_v13 }
 0x5fe   :  { %12566 = vpow2.f32 %v2909_v9  ;;  %v13864_v9 = vpack.i.b16 %v3325_v27, %v13827_v63 }
 0x5ff   :  { %12568 = vpow2.f32 %v2907_v21  ;;  %v3377_v21 = vshrl.u32 %v13765_v6, 16 }
 0x602   :  { %2950 = vadd.xlane.f32.xlu1 %v2949_v8  ;;  %v3370_v8 = vshrl.u32 %v13758_v32, 16 }
 0x608   :  { %v13837_v24 = vpop.eup %12566 }
 0x609   :  { %v2955_v18 = vsel %vm2079_vm3, %v13837_v24, 0.0  ;;  %v13844_v15 = vpop.eup %12568 }
 0x60a   :  { %2956 = vadd.xlane.f32.xlu1 %v2955_v18  ;;  %v2952_v47 = vsel %vm2079_vm3, %v13844_v15, 0.0  ;;  %v13871_v18 = vpack.i.b16 %v13758_v32, %v13762_v58  ;;  %v13884_v32 = vpack.i.b16 %v3370_v8, %v3369_v53 }
 0x611   :  { %3349 = vxpose.xlu0.c.b16.start.end [1/1] (short) (narrow) %v13688_v2, 16 }
 0x615   :  { %v2864_v20 = vpop.xlane.xlu0 %2863 }
 0x616   :  { %v2880_v48 = vsub.f32 %v13748_v25, %v2864_v20 }
 0x618   :  { %v2911_v23 = vmul.f32 1.442695, %v2880_v48 }
 0x61a   :  { %12570 = vpow2.f32 %v2911_v23  ;;  %v13876_v23 = vpack.i.b16 %v13760_v33, %v13765_v6 }
 0x61e   :  { %2953 = vadd.xlane.f32.xlu0 %v2952_v47  ;;  %v3397_v47 = vcombine.low %v13871_v18, %v13864_v9 }
 0x624   :  { %v13848_v49 = vpop.eup %12570 }
 0x625   :  { %v2958_v22 = vsel %vm2079_vm3, %v13848_v49, 0.0 }
 0x626   :  { %2959 = vadd.xlane.f32.xlu0 %v2958_v22 }
 0x639   :  { %v2915_v34 = vpop.xlane.xlu1 %2914 }
 0x63a   :  { %12572 = vrcp.f32 %v2915_v34 }
 0x63d   :  { %v2927_v7 = vpop.xlane.xlu1 %2926 }
 0x641   :  { %v2918_v2 = vpop.xlane.xlu0 %2917 }
 0x642   :  { %12574 = vrcp.f32 %v2918_v2  ;;  %v2933_v51 = vpop.xlane.xlu1 %2932  ;;  %v13886_v2 = vpack.i.b16 %v3378_v29, %v3377_v21 }
 0x644   :  { %v12573_v50 = vpop.eup %12572 }
 0x645   :  { %v2977_v25 = vmul.f32 %v12573_v50, %v13770_v4 }
 0x647   :  { %v2993_v59 = vpack.c.bf16 %v2977_v25, %v2977_v25 }
 0x649   :  { %v3537_v5 = vsel %vm2079_vm3, %v2993_v59, 0  ;;  %v2921_v35 = vpop.xlane.xlu1 %2920  ;;  %v3405_v59 = vrot.slane %v3397_v47, %v13147_v17 }
 0x64a   :  { %11967 = vmatpush3.bf16.xpose.msra.mxu0 %v3537_v5  ;;  %12576 = vrcp.f32 %v2921_v35 }
 0x64b   :  { %11978 = vmatprep.subr.bf16.mxu0 %v12881_v3 }
 0x64c   :  { %v12575_v61 = vpop.eup %12574 }
 0x64d   :  { %v2978_v38 = vmul.f32 %v12575_v61, %v13780_v19  ;;  %v2939_v54 = vpop.xlane.xlu1 %2938  ;;  %v3385_v19 = vshrl.u32 %v13827_v63, 16 }
 0x64f   :  { %v2994_v39 = vpack.c.bf16 %v2978_v38, %v2978_v38  ;;  %v13878_v63 = vpack.i.b16 %v3386_v41, %v3385_v19 }
 0x651   :  { %v3583_v43 = vsel %vm2079_vm3, %v2994_v39, 0  ;;  %v2924_v40 = vpop.xlane.xlu0 %2923  ;;  %v3465_v25 = vcombine.low %v13884_v32, %v13878_v63 }
 0x652   :  { %11973 = vmatpush3.bf16.xpose.msra.mxu1 %v3583_v43  ;;  %12578 = vrcp.f32 %v2924_v40 }
 0x653   :  { %11984 = vmatprep.subr.bf16.mxu1 %v12881_v3  ;;  %12580 = vrcp.f32 %v2927_v7  ;;  %v3473_v40 = vrot.slane %v3465_v25, %v13147_v17 }
 0x654   :  { %v12577_v48 = vpop.eup %12576 }
 0x655   :  { %v13858_v31 = vpop.xlane.xlu1 %2944  ;;  %v2979_v6 = vmul.f32 %v12577_v48, %v13790_v16 }
 0x657   :  { %v2995_v43 = vpack.c.bf16 %v2979_v6, %v2979_v6 }
 0x659   :  { %v2930_v4 = vpop.xlane.xlu0 %2929 }
 0x65a   :  { %12582 = vrcp.f32 %v2930_v4 }
 0x65b   :  { %v3341_v13 = vpop.trf.xlu1  ;;  %12584 = vrcp.f32 %v2933_v51 }
 0x65c   :  { %v3393_v20 = vshrl.u32 %v3341_v13, 16  ;;  %v12579_v58 = vpop.eup %12578 }
 0x65d   :  { %v2980_v38 = vmul.f32 %v12579_v58, %v13799_v52  ;;  %v12581_v7 = vpop.eup %12580 }
 0x65e   :  { %v2981_v51 = vmul.f32 %v12581_v7, %v13776_v60 }
 0x65f   :  { %v2996_v41 = vpack.c.bf16 %v2980_v38, %v2980_v38 }
 0x660   :  { %v2997_v53 = vpack.c.bf16 %v2981_v51, %v2981_v51 }
 0x661   :  { %v2936_v11 = vpop.xlane.xlu0 %2935 }
 0x662   :  { %12586 = vrcp.f32 %v2936_v11  ;;  %v3675_v11 = vsel %vm2079_vm3, %v2996_v41, 0 }
 0x663   :  { %12588 = vrcp.f32 %v2939_v54  ;;  %v3721_v54 = vsel %vm2079_vm3, %v2997_v53, 0 }
 0x664   :  { %v12583_v19 = vpop.eup %12582 }
 0x665   :  { %v2982_v8 = vmul.f32 %v12583_v19, %v13808_v14  ;;  %v12585_v60 = vpop.eup %12584 }
 0x666   :  { %v2983_v48 = vmul.f32 %v12585_v60, %v13782_v30 }
 0x667   :  { %v2998_v21 = vpack.c.bf16 %v2982_v8, %v2982_v8 }
 0x669   :  { %v2942_v46 = vpop.xlane.xlu0 %2941 }
 0x66a   :  { %12590 = vrcp.f32 %v2942_v46  ;;  %v3767_v46 = vsel %vm2079_vm3, %v2998_v21, 0 }
 0x66b   :  { %12592 = vrcp.f32 %v13858_v31 }
 0x671   :  { %v13861_v55 = vpop.xlane.xlu0 %2947 }
 0x672   :  { %12594 = vrcp.f32 %v13861_v55 }
 0x677   :  { %v3357_v27 = vpop.trf.xlu0 }
 0x678   :  { %v3394_v22 = vshrl.u32 %v3357_v27, 16  ;;  %v13882_v34 = vpack.i.b16 %v3357_v27, %v3341_v13  ;;  %v3629_v13 = vsel %vm2079_vm3, %v2995_v43, 0 }
 0x67a   :  { %v13888_v50 = vpack.i.b16 %v3394_v22, %v3393_v20  ;;  %v3413_v33 = vcombine.low %v13876_v23, %v13882_v34  ;;  %v12587_v20 = vpop.eup %12586  ;;  %v2999_v22 = vpack.c.bf16 %v2983_v48, %v2983_v48  ;;  %v3414_v55 = vcombine.high %v13876_v23, %v13882_v34 }
 0x67b   :  { %v2984_v47 = vmul.f32 %v12587_v20, %v13813_v37  ;;  %v12589_v30 = vpop.eup %12588 }
 0x67c   :  { %v3421_v5 = vrot.slane %v3413_v33, %v13147_v17  ;;  %v3481_v61 = vcombine.low %v13886_v2, %v13888_v50  ;;  %v12591_v6 = vpop.eup %12590  ;;  %v3813_v37 = vsel %vm2079_vm3, %v2999_v22, 0  ;;  %v3482_v23 = vcombine.high %v13886_v2, %v13888_v50 }
 0x67d   :  { %v3000_v31 = vpack.c.bf16 %v2984_v47, %v2984_v47  ;;  %v2986_v38 = vmul.f32 %v12591_v6, %v13818_v56  ;;  %v12593_v43 = vpop.eup %12592  ;;  %v3428_v34 = vrot.slane %v3414_v55, %v13147_v17  ;;  %v3466_v56 = vcombine.high %v13884_v32, %v13878_v63 }
 0x67e   :  { %v3429_v39 = vcombine.low %v3405_v59, %v3421_v5  ;;  %v3489_v16 = vrot.slane %v3481_v61, %v13147_v17  ;;  %v3430_v27 = vcombine.high %v3405_v59, %v3421_v5  ;;  %v2985_v59 = vmul.f32 %v12589_v30, %v13794_v26 }
 0x67f   :  { %v3859_v61 = vsel %vm2079_vm3, %v3000_v31, 0  ;;  %v3398_v26 = vcombine.high %v13871_v18, %v13864_v9  ;;  %v12595_v9 = vpop.eup %12594  ;;  %v2987_v2 = vmul.f32 %v12593_v43, %v13804_v1  ;;  %v13961_v50 = vrot.slane %v3482_v23, %v13147_v17 }
 0x680   :  { %v3437_v35 = vrot.slane %v3429_v39, %v13154_v36  ;;  %v3497_v4 = vcombine.low %v3473_v40, %v3489_v16  ;;  %v3498_v58 = vcombine.high %v3473_v40, %v3489_v16  ;;  %v3444_v33 = vrot.slane %v3430_v27, %v13154_v36 }
 0x681   :  { %v3001_v39 = vpack.c.bf16 %v2985_v59, %v2985_v59  ;;  %v3002_v40 = vpack.c.bf16 %v2986_v38, %v2986_v38  ;;  %v3412_v18 = vrot.slane %v3398_v26, %v13147_v17  ;;  %v3480_v32 = vrot.slane %v3466_v56, %v13147_v17 }
 0x682   :  { %11969 = vmatmul.mubr.msk.bf16.vlgmr.msra.gmra.mrb[28].mxu0 %vm2079_vm3, %v3437_v35  ;;  %v3505_v52 = vrot.slane %v3497_v4, %v13154_v36  ;;  %v3461_v29 = vcombine.high %v3437_v35, %v12882_v28  ;;  %v3512_v5 = vrot.slane %v3498_v58, %v13154_v36  ;;  %v3462_v7 = vcombine.high %v3444_v33, %v12882_v28 }
 0x683   :  { %11979 = vmatpush3.bf16.xpose.msra.mxu0 %v3629_v13  ;;  %11980 = vmatprep.mubr.msk.bf16.mxu0 %vm12883_vm1, %v12881_v3  ;;  %v3905_v35 = vsel %vm2079_vm3, %v3001_v39, 0  ;;  %v3445_v63 = vcombine.low %v3412_v18, %v3428_v34  ;;  %v3951_v41 = vsel %vm2079_vm3, %v3002_v40, 0  ;;  %v2988_v1 = vmul.f32 %v12595_v9, %v13822_v12 }
 0x684   :  { %11990 = vmatprep.subr.bf16.mxu0 %v12881_v3  ;;  %11975 = vmatmul.mubr.msk.bf16.vlgmr.msra.gmra.mrb[44].mxu1 %vm2079_vm3, %v3505_v52  ;;  %v3529_v14 = vcombine.high %v3505_v52, %v12882_v28  ;;  %v3530_v4 = vcombine.high %v3512_v5, %v12882_v28  ;;  %v3003_v19 = vpack.c.bf16 %v2987_v2, %v2987_v2 }
 0x685   :  { %11985 = vmatpush3.bf16.xpose.msra.mxu1 %v3675_v11  ;;  %11986 = vmatprep.mubr.msk.bf16.mxu1 %vm12883_vm1, %v12881_v3  ;;  %v3513_v51 = vcombine.low %v3480_v32, %v13961_v50  ;;  %v3453_v52 = vrot.slane %v3445_v63, %v13154_v36  ;;  %v3004_v11 = vpack.c.bf16 %v2988_v1, %v2988_v1 }
 0x686   :  { %11996 = vmatprep.subr.bf16.mxu1 %v12881_v3  ;;  %v3997_v8 = vsel %vm2079_vm3, %v3003_v19, 0  ;;  %v3446_v27 = vcombine.high %v3412_v18, %v3428_v34 }
 0x687   :  { %v3521_v12 = vrot.slane %v3513_v51, %v13154_v36  ;;  %v4043_v60 = vsel %vm2079_vm3, %v3004_v11, 0 }
 0x688   :  { %v3460_v47 = vrot.slane %v3446_v27, %v13154_v36 }
 0x68a   :  { %11981 = vmatmul.mubr.msk.bf16.vlgmr.msra.gmra.mrb[32].mxu0 %vm2079_vm3, %v3461_v29 }
 0x68b   :  { %11991 = vmatpush3.bf16.xpose.msra.mxu0 %v3721_v54  ;;  %11992 = vmatprep.mubr.msk.bf16.mxu0 %vm12883_vm1, %v12881_v3 }
 0x68c   :  { %12002 = vmatprep.subr.bf16.mxu0 %v12881_v3  ;;  %11987 = vmatmul.mubr.msk.bf16.vlgmr.msra.gmra.mrb[48].mxu1 %vm2079_vm3, %v3529_v14  ;;  %v3531_v14 = vcombine.high %v3521_v12, %v12882_v28 }
 0x68d   :  { %11997 = vmatpush3.bf16.xpose.msra.mxu1 %v3767_v46  ;;  %11998 = vmatprep.mubr.msk.bf16.mxu1 %vm12883_vm1, %v12881_v3 }
 0x68e   :  { %12008 = vmatprep.subr.bf16.mxu1 %v12881_v3 }
 0x68f   :  { %v2951_v25 = vpop.xlane.xlu1 %2950 }
 0x690   :  { %12596 = vrcp.f32 %v2951_v25  ;;  %v3514_v25 = vcombine.high %v3480_v32, %v13961_v50 }
 0x692   :  { %11993 = vmatmul.mubr.msk.bf16.vlgmr.msra.gmra.mrb[36].mxu0 %vm2079_vm3, %v3444_v33  ;;  %v3464_v33 = vcombine.high %v3460_v47, %v12882_v28 }
 0x693   :  { %12003 = vmatpush3.bf16.xpose.msra.mxu0 %v3813_v37  ;;  %12004 = vmatprep.mubr.msk.bf16.mxu0 %vm12883_vm1, %v12881_v3 }
 0x694   :  { %12014 = vmatprep.subr.bf16.mxu0 %v12881_v3  ;;  %11999 = vmatmul.mubr.msk.bf16.vlgmr.msra.gmra.mrb[52].mxu1 %vm2079_vm3, %v3512_v5 }
 0x695   :  { %12009 = vmatpush3.bf16.xpose.msra.mxu1 %v3859_v61  ;;  %12010 = vmatprep.mubr.msk.bf16.mxu1 %vm12883_vm1, %v12881_v3 }
 0x696   :  { %12020 = vmatprep.subr.bf16.mxu1 %v12881_v3 }
 0x697   :  { %v2957_v16 = vpop.xlane.xlu1 %2956 }
 0x698   :  { %12598 = vrcp.f32 %v2957_v16 }
 0x69a   :  { %12005 = vmatmul.mubr.msk.bf16.vlgmr.msra.gmra.mrb[40].mxu0 %vm2079_vm3, %v3462_v7  ;;  %v12597_v13 = vpop.eup %12596 }
 0x69b   :  { %12015 = vmatpush3.bf16.xpose.msra.mxu0 %v3905_v35  ;;  %12016 = vmatprep.mubr.msk.bf16.mxu0 %vm12883_vm1, %v12881_v3  ;;  %v2989_v53 = vmul.f32 %v12597_v13, %v13833_v0  ;;  %v3463_v0 = vcombine.high %v3453_v52, %v12882_v28 }
 0x69c   :  { %12026 = vmatprep.subr.bf16.mxu0 %v12881_v3  ;;  %12011 = vmatmul.mubr.msk.bf16.vlgmr.msra.gmra.mrb[56].mxu1 %vm2079_vm3, %v3530_v4 }
 0x69d   :  { %12021 = vmatpush3.bf16.xpose.msra.mxu1 %v3951_v41  ;;  %12022 = vmatprep.mubr.msk.bf16.mxu1 %vm12883_vm1, %v12881_v3  ;;  %v3005_v29 = vpack.c.bf16 %v2989_v53, %v2989_v53 }
 0x69e   :  { %12032 = vmatprep.subr.bf16.mxu1 %v12881_v3 }
 0x69f   :  { %v4089_v20 = vsel %vm2079_vm3, %v3005_v29, 0 }
 0x6a2   :  { %12017 = vmatmul.mubr.msk.bf16.vlgmr.msra.gmra.mrb[44].mxu0 %vm2079_vm3, %v3453_v52  ;;  %v12599_v21 = vpop.eup %12598 }
 0x6a3   :  { %12027 = vmatpush3.bf16.xpose.msra.mxu0 %v3997_v8  ;;  %12028 = vmatprep.mubr.msk.bf16.mxu0 %vm12883_vm1, %v12881_v3  ;;  %v2991_v54 = vmul.f32 %v12599_v21, %v13837_v24 }
 0x6a4   :  { %12038 = vmatprep.subr.bf16.mxu0 %v12881_v3  ;;  %12023 = vmatmul.mubr.msk.bf16.vlgmr.msra.gmra.mrb[60].mxu1 %vm2079_vm3, %v3521_v12 }
 0x6a5   :  { %12033 = vmatpush3.bf16.xpose.msra.mxu1 %v4043_v60  ;;  %12034 = vmatprep.mubr.msk.bf16.mxu1 %vm12883_vm1, %v12881_v3  ;;  %v3007_v46 = vpack.c.bf16 %v2991_v54, %v2991_v54 }
 0x6a6   :  { %12044 = vmatprep.subr.bf16.mxu1 %v12881_v3 }
 0x6a7   :  { %v4181_v24 = vsel %vm2079_vm3, %v3007_v46, 0 }
 0x6aa   :  { %12029 = vmatmul.mubr.msk.bf16.vlgmr.msra.gmra.mrb[48].mxu0 %vm2079_vm3, %v3463_v0 }
 0x6ab   :  { %12039 = vmatpush3.bf16.xpose.msra.mxu0 %v4089_v20  ;;  %v2954_v48 = vpop.xlane.xlu0 %2953  ;;  %12040 = vmatprep.mubr.msk.bf16.mxu0 %vm12883_vm1, %v12881_v3 }
 0x6ac   :  { %12600 = vrcp.f32 %v2954_v48  ;;  %12050 = vmatprep.subr.bf16.mxu0 %v12881_v3  ;;  %12035 = vmatmul.mubr.msk.bf16.vlgmr.msra.gmra.mrb[64].mxu1 %vm2079_vm3, %v3531_v14 }
 0x6ad   :  { %12046 = vmatprep.mubr.msk.bf16.mxu1 %vm12883_vm1, %v12881_v3 }
 0x6b2   :  { %12041 = vmatmul.mubr.msk.bf16.vlgmr.msra.gmra.mrb[52].mxu0 %vm2079_vm3, %v3460_v47 }
 0x6b3   :  { %12051 = vmatpush3.bf16.xpose.msra.mxu0 %v4181_v24  ;;  %v2960_v22 = vpop.xlane.xlu0 %2959  ;;  %12052 = vmatprep.mubr.msk.bf16.mxu0 %vm12883_vm1, %v12881_v3 }
 0x6b4   :  { %12602 = vrcp.f32 %v2960_v22  ;;  %12062 = vmatprep.subr.bf16.mxu0 %v12881_v3 }
 0x6b6   :  { %v12601_v30 = vpop.eup %12600 }
 0x6b7   :  { %v2990_v58 = vmul.f32 %v12601_v30, %v13844_v15  ;;  %v3528_v15 = vrot.slane %v3514_v25, %v13154_v36 }
 0x6b9   :  { %v3006_v31 = vpack.c.bf16 %v2990_v58, %v2990_v58  ;;  %v3532_v61 = vcombine.high %v3528_v15, %v12882_v28 }
 0x6ba   :  { %12053 = vmatmul.mubr.msk.bf16.vlgmr.msra.gmra.mrb[56].mxu0 %vm2079_vm3, %v3464_v33 }
 0x6bb   :  { %v4135_v6 = vsel %vm2079_vm3, %v3006_v31, 0  ;;  %12078 = vmatprep.mubr.msk.bf16.mxu0 %vm12883_vm1, %v12881_v3 }
 0x6bc   :  { %12045 = vmatpush3.bf16.xpose.msra.mxu1 %v4135_v6 }
 0x6bd   :  { %12056 = vmatprep.subr.bf16.mxu1 %v12881_v3 }
 0x6be   :  { %v12603_v37 = vpop.eup %12602 }
 0x6bf   :  { %v2992_v59 = vmul.f32 %v12603_v37, %v13848_v49 }
 0x6c1   :  { %v3008_v5 = vpack.c.bf16 %v2992_v59, %v2992_v59 }
 0x6c3   :  { %12047 = vmatmul.mubr.msk.bf16.vlgmr.msra.gmra.mrb[68].mxu1 %vm2079_vm3, %v3528_v15  ;;  %v4227_v55 = vsel %vm2079_vm3, %v3008_v5, 0 }
 0x6c4   :  { %12057 = vmatpush3.bf16.xpose.msra.mxu1 %v4227_v55  ;;  %12058 = vmatprep.mubr.msk.bf16.mxu1 %vm12883_vm1, %v12881_v3 }
 0x6c5   :  { %12082 = vmatprep.subr.bf16.mxu1 %v12881_v3 }
 0x6cb   :  { %12059 = vmatmul.mubr.msk.bf16.vlgmr.msra.gmra.mrb[72].mxu1 %vm2079_vm3, %v3532_v61 }
 0x6cc   :  { %12098 = vmatprep.mubr.msk.bf16.mxu1 %vm12883_vm1, %v12881_v3 }
 0x755   :  { %v3573_v49 = vpop.f32.mrb[28].mxu0 }
 0x756   :  { %4269 = vxpose.xlu1.b32.start.end [1/1] (short) (narrow) %v3573_v49, 8  ;;  %v11970_v38 = vpop.f32.mrb[29].mxu0 }
 0x757   :  { %v3576_v26 = vpop.f32.mrb[30].mxu0  ;;  %v3619_v39 = vpop.f32.mrb[44].mxu1 }
 0x758   :  { %v11971_v43 = vpop.f32.mrb[31].mxu0  ;;  %4301 = vxpose.xlu0.b32.start.end [1/1] (short) (narrow) %v3619_v39, 8  ;;  %v11976_v23 = vpop.f32.mrb[45].mxu1 }
 0x759   :  { %v3622_v34 = vpop.f32.mrb[46].mxu1 }
 0x75a   :  { %v11977_v7 = vpop.f32.mrb[47].mxu1 }
 0x75d   :  { %v3665_v56 = vpop.f32.mrb[32].mxu0 }
 0x75e   :  { %4333 = vxpose.xlu0.b32.start.end [1/1] (short) (narrow) %v3665_v56, 8  ;;  %v11982_v40 = vpop.f32.mrb[33].mxu0 }
 0x75f   :  { %v3668_v9 = vpop.f32.mrb[34].mxu0  ;;  %v3711_v18 = vpop.f32.mrb[48].mxu1 }
 0x760   :  { %v11983_v16 = vpop.f32.mrb[35].mxu0  ;;  %v11988_v35 = vpop.f32.mrb[49].mxu1 }
 0x761   :  { %v3714_v2 = vpop.f32.mrb[50].mxu1 }
 0x762   :  { %4365 = vxpose.xlu0.b32.start.end [1/1] (short) (narrow) %v3711_v18, 8  ;;  %v11989_v50 = vpop.f32.mrb[51].mxu1 }
 0x765   :  { %v3757_v4 = vpop.f32.mrb[36].mxu0 }
 0x766   :  { %4397 = vxpose.xlu1.b32.start.end [1/1] (short) (narrow) %v3757_v4, 8  ;;  %v11994_v63 = vpop.f32.mrb[37].mxu0 }
 0x767   :  { %v3760_v32 = vpop.f32.mrb[38].mxu0  ;;  %v3803_v41 = vpop.f32.mrb[52].mxu1 }
 0x768   :  { %v11995_v1 = vpop.f32.mrb[39].mxu0  ;;  %v12000_v19 = vpop.f32.mrb[53].mxu1  ;;  %4429 = vxpose.xlu0.b32.start.end [1/1] (short) (narrow) %v3803_v41, 8 }
 0x769   :  { %v3806_v13 = vpop.f32.mrb[54].mxu1 }
 0x76a   :  { %v12001_v51 = vpop.f32.mrb[55].mxu1 }
 0x76d   :  { %v3849_v52 = vpop.f32.mrb[40].mxu0 }
 0x76e   :  { %4461 = vxpose.xlu1.b32.start.end [1/1] (short) (narrow) %v3849_v52, 8  ;;  %v12006_v11 = vpop.f32.mrb[41].mxu0 }
 0x76f   :  { %v3852_v8 = vpop.f32.mrb[42].mxu0  ;;  %v3895_v53 = vpop.f32.mrb[56].mxu1 }
 0x770   :  { %v12007_v12 = vpop.f32.mrb[43].mxu0  ;;  %v12012_v60 = vpop.f32.mrb[57].mxu1  ;;  %4493 = vxpose.xlu0.b32.start.end [1/1] (short) (narrow) %v3895_v53, 8 }
 0x771   :  { %v3898_v29 = vpop.f32.mrb[58].mxu1 }
 0x772   :  { %v12013_v21 = vpop.f32.mrb[59].mxu1 }
 0x775   :  { %v3941_v0 = vpop.f32.mrb[44].mxu0 }
 0x776   :  { %4525 = vxpose.xlu1.b32.start.end [1/1] (short) (narrow) %v3941_v0, 8  ;;  %v12018_v20 = vpop.f32.mrb[45].mxu0 }
 0x777   :  { %v3944_v54 = vpop.f32.mrb[46].mxu0  ;;  %v3987_v48 = vpop.f32.mrb[60].mxu1 }
 0x778   :  { %v12019_v14 = vpop.f32.mrb[47].mxu0  ;;  %v12024_v27 = vpop.f32.mrb[61].mxu1  ;;  %4557 = vxpose.xlu0.b32.start.end [1/1] (short) (narrow) %v3987_v48, 8 }
 0x779   :  { %v3990_v46 = vpop.f32.mrb[62].mxu1 }
 0x77a   :  { %v12025_v47 = vpop.f32.mrb[63].mxu1 }
 0x77d   :  { %v4033_v24 = vpop.f32.mrb[48].mxu0 }
 0x77e   :  { %4589 = vxpose.xlu1.b32.start.end [1/1] (short) (narrow) %v4033_v24, 8  ;;  %v12030_v22 = vpop.f32.mrb[49].mxu0 }
 0x77f   :  { %v4036_v30 = vpop.f32.mrb[50].mxu0  ;;  %v4079_v58 = vpop.f32.mrb[64].mxu1 }
 0x780   :  { %v12031_v33 = vpop.f32.mrb[51].mxu0  ;;  %v12036_v31 = vpop.f32.mrb[65].mxu1  ;;  %4621 = vxpose.xlu0.b32.start.end [1/1] (short) (narrow) %v4079_v58, 8 }
 0x781   :  { %v4082_v6 = vpop.f32.mrb[66].mxu1 }
 0x782   :  { %v12037_v25 = vpop.f32.mrb[67].mxu1 }
 0x785   :  { %v4125_v37 = vpop.f32.mrb[52].mxu0 }
 0x786   :  { %4653 = vxpose.xlu1.b32.start.end [1/1] (short) (narrow) %v4125_v37, 8  ;;  %v12042_v59 = vpop.f32.mrb[53].mxu0 }
 0x787   :  { %v4128_v15 = vpop.f32.mrb[54].mxu0 }
 0x788   :  { %v12043_v5 = vpop.f32.mrb[55].mxu0 }
 0x78d   :  { %v4217_v55 = vpop.f32.mrb[56].mxu0 }
 0x78e   :  { %4717 = vxpose.xlu1.b32.start.end [1/1] (short) (narrow) %v4217_v55, 8  ;;  %v12054_v61 = vpop.f32.mrb[57].mxu0 }
 0x78f   :  { %v4220_v49 = vpop.f32.mrb[58].mxu0 }
 0x790   :  { %v12055_v38 = vpop.f32.mrb[59].mxu0 }
 0x796   :  { %v4171_v26 = vpop.f32.mrb[68].mxu1 }
 0x797   :  { %v12048_v39 = vpop.f32.mrb[69].mxu1  ;;  %4685 = vxpose.xlu0.b32.start.end [1/1] (short) (narrow) %v4171_v26, 8 }
 0x798   :  { %v4174_v43 = vpop.f32.mrb[70].mxu1 }
 0x799   :  { %v12049_v23 = vpop.f32.mrb[71].mxu1 }
 0x79e   :  { %v4263_v34 = vpop.f32.mrb[72].mxu1 }
 0x79f   :  { %v12060_v7 = vpop.f32.mrb[73].mxu1  ;;  %4749 = vxpose.xlu0.b32.start.end [1/1] (short) (narrow) %v4263_v34, 8 }
 0x7a0   :  { %v4266_v56 = vpop.f32.mrb[74].mxu1 }
 0x7a1   :  { %v12061_v40 = vpop.f32.mrb[75].mxu1 }
 0x7d6   :  { %v4285_v18 = vpop.trf.xlu1 }
 0x7d8   :  { %v4317_v9 = vpop.trf.xlu0 }
 0x7de   :  { %v4349_v16 = vpop.trf.xlu0 }
 0x7df   :  { %v4781_v35 = vcombine.low %v4285_v18, %v4349_v16  ;;  %v4782_v2 = vcombine.high %v4285_v18, %v4349_v16 }
 0x7e1   :  { %v4789_v4 = vrot.slane %v4781_v35, %v13147_v17  ;;  %v4796_v63 = vrot.slane %v4782_v2, %v13147_v17 }
 0x7e2   :  { %v4381_v50 = vpop.trf.xlu0 }
 0x7e3   :  { %v4797_v32 = vcombine.low %v4317_v9, %v4381_v50  ;;  %v4798_v41 = vcombine.high %v4317_v9, %v4381_v50 }
 0x7e5   :  { %v4805_v1 = vrot.slane %v4797_v32, %v13147_v17  ;;  %v4812_v19 = vrot.slane %v4798_v41, %v13147_v17 }
 0x7e6   :  { %v4413_v8 = vpop.trf.xlu1 }
 0x7e7   :  { %v4845_v13 = vcombine.low %v4789_v4, %v4805_v1  ;;  %v4846_v51 = vcombine.high %v4789_v4, %v4805_v1  ;;  %v4861_v52 = vcombine.low %v4796_v63, %v4812_v19  ;;  %v4862_v11 = vcombine.high %v4796_v63, %v4812_v19 }
 0x7e8   :  { %v4445_v48 = vpop.trf.xlu0 }
 0x7e9   :  { %v4853_v53 = vrot.slane %v4845_v13, %v13154_v36  ;;  %v4860_v12 = vrot.slane %v4846_v51, %v13154_v36  ;;  %v4869_v60 = vrot.slane %v4861_v52, %v13154_v36  ;;  %v4876_v29 = vrot.slane %v4862_v11, %v13154_v36 }
 0x7eb   :  { %v11511_v21 = vcombine.low %v4853_v53, %v4860_v12  ;;  %v11513_v0 = vcombine.high %v4853_v53, %v4860_v12  ;;  %v11515_v20 = vcombine.low %v4869_v60, %v4876_v29  ;;  %v11517_v54 = vcombine.high %v4869_v60, %v4876_v29 }
 0x7ed   :  { %v5061_v14 = vrot.slane %v11511_v21, %v13147_v17  ;;  %v5077_v27 = vrot.slane %v11513_v0, %v13147_v17  ;;  %v5093_v46 = vrot.slane %v11515_v20, %v13147_v17  ;;  %v5109_v47 = vrot.slane %v11517_v54, %v13147_v17 }
 0x7ee   :  { %v4477_v24 = vpop.trf.xlu1 }
 0x7ef   :  { %v4813_v22 = vcombine.low %v4413_v8, %v4477_v24  ;;  %v4814_v30 = vcombine.high %v4413_v8, %v4477_v24  ;;  %v5117_v58 = vcombine.low %v5061_v14, %v5077_v27  ;;  %v5149_v33 = vcombine.low %v5093_v46, %v5109_v47 }
 0x7f0   :  { %v5118_v31 = vcombine.high %v5061_v14, %v5077_v27  ;;  %v5150_v6 = vcombine.high %v5093_v46, %v5109_v47  ;;  %v4509_v25 = vpop.trf.xlu0 }
 0x7f1   :  { %v4821_v37 = vrot.slane %v4813_v22, %v13147_v17  ;;  %v4828_v59 = vrot.slane %v4814_v30, %v13147_v17  ;;  %v14039_v15 = vrot.slane %v5117_v58, %v13154_v36  ;;  %v14042_v5 = vrot.slane %v5149_v33, %v13154_v36 }
 0x7f2   :  { %v4829_v55 = vcombine.low %v4445_v48, %v4509_v25  ;;  %v4830_v61 = vcombine.high %v4445_v48, %v4509_v25  ;;  %v5132_v49 = vrot.slane %v5118_v31, %v13154_v36  ;;  %v5164_v38 = vrot.slane %v5150_v6, %v13154_v36 }
 0x7f3   :  { %v5182_v26 = vcombine.high %v14039_v15, %v14042_v5  ;;  %v5181_v39 = vcombine.low %v14039_v15, %v14042_v5 }
 0x7f4   :  { %v4837_v43 = vrot.slane %v4829_v55, %v13147_v17  ;;  %v4844_v23 = vrot.slane %v4830_v61, %v13147_v17  ;;  %v5183_v34 = vcombine.low %v5132_v49, %v5164_v38  ;;  %v5184_v7 = vcombine.high %v5132_v49, %v5164_v38 }
 0x7f5   :  { %5326 = vrot.lane.b32.xlu1 %v5182_v26, %s12880_s27 }
 0x7f6   :  { %v4877_v56 = vcombine.low %v4821_v37, %v4837_v43  ;;  %v4878_v40 = vcombine.high %v4821_v37, %v4837_v43  ;;  %v4893_v9 = vcombine.low %v4828_v59, %v4844_v23  ;;  %v4894_v18 = vcombine.high %v4828_v59, %v4844_v23  ;;  %5330 = vrot.lane.b32.xlu0 %v5183_v34, %s12890_s25  ;;  %v4541_v4 = vpop.trf.xlu1 }
 0x7f8   :  { %v4885_v16 = vrot.slane %v4877_v56, %v13154_v36  ;;  %v4892_v35 = vrot.slane %v4878_v40, %v13154_v36  ;;  %v4901_v2 = vrot.slane %v4893_v9, %v13154_v36  ;;  %v4908_v50 = vrot.slane %v4894_v18, %v13154_v36  ;;  %v4573_v19 = vpop.trf.xlu0 }
 0x7f9   :  { %5334 = vrot.lane.b32.xlu1 %v5184_v7, %s12896_s10 }
 0x7fa   :  { %v11512_v63 = vcombine.low %v4885_v16, %v4892_v35  ;;  %v11514_v32 = vcombine.high %v4885_v16, %v4892_v35  ;;  %v11516_v41 = vcombine.low %v4901_v2, %v4908_v50  ;;  %v11518_v1 = vcombine.high %v4901_v2, %v4908_v50  ;;  %v12458_v35 = vld [vmem:[#allocation8] sm:$0xff]  }
 0x7fb   :  { %12063 = vmatpush3.bf16.msra.mxu0 %v12458_v35 }
 0x7fc   :  { %v5068_v13 = vrot.slane %v11512_v63, %v13147_v17  ;;  %v5084_v51 = vrot.slane %v11514_v32, %v13147_v17  ;;  %v5100_v52 = vrot.slane %v11516_v41, %v13147_v17  ;;  %v5116_v11 = vrot.slane %v11518_v1, %v13147_v17  ;;  %v12459_v32 = vld [vmem:[#allocation8 + $0x8] sm:$0xff]   ;;  %12064 = vmatprep.subr.bf16.mxu0 %v12881_v3 }
 0x7fe   :  { %v4605_v8 = vpop.trf.xlu1  ;;  %v5133_v53 = vcombine.low %v5068_v13, %v5084_v51  ;;  %v5165_v12 = vcombine.low %v5100_v52, %v5116_v11  ;;  %v5134_v60 = vcombine.high %v5068_v13, %v5084_v51  ;;  %v5166_v29 = vcombine.high %v5100_v52, %v5116_v11  ;;  %v12460_v11 = vld [vmem:[#allocation8 + $0x10] sm:$0xff]  }
 0x7ff   :  { %v4917_v21 = vcombine.low %v4541_v4, %v4605_v8  ;;  %v4918_v0 = vcombine.high %v4541_v4, %v4605_v8  ;;  %12065 = vmatpush3.bf16.msra.mxu0 %v12459_v32 }
 0x800   :  { %v5141_v20 = vrot.slane %v5133_v53, %v13154_v36  ;;  %v5173_v54 = vrot.slane %v5165_v12, %v13154_v36  ;;  %v5148_v48 = vrot.slane %v5134_v60, %v13154_v36  ;;  %v5180_v14 = vrot.slane %v5166_v29, %v13154_v36  ;;  %v4637_v27 = vpop.trf.xlu0  ;;  %12066 = vmatprep.subr.bf16.mxu0 %v12881_v3  ;;  %v12461_v60 = vld [vmem:[#allocation8 + $0x18] sm:$0xff]  }
 0x801   :  { %v4925_v46 = vrot.slane %v4917_v21, %v13147_v17  ;;  %v4933_v47 = vcombine.low %v4573_v19, %v4637_v27  ;;  %v4934_v24 = vcombine.high %v4573_v19, %v4637_v27  ;;  %v4932_v22 = vrot.slane %v4918_v0, %v13147_v17  ;;  %v12462_v21 = vld [vmem:[#allocation8 + $0x20] sm:$0xff]  }
 0x802   :  { %v5185_v30 = vcombine.low %v5141_v20, %v5173_v54  ;;  %v5188_v58 = vcombine.high %v5148_v48, %v5180_v14  ;;  %v5186_v6 = vcombine.high %v5141_v20, %v5173_v54  ;;  %v5187_v61 = vcombine.low %v5148_v48, %v5180_v14  ;;  %v12463_v48 = vld [vmem:[#allocation8 + $0x28] sm:$0xff]  }
 0x803   :  { %v4941_v33 = vrot.slane %v4933_v47, %v13147_v17  ;;  %v4948_v31 = vrot.slane %v4934_v24, %v13147_v17  ;;  %12067 = vmatpush3.bf16.msra.mxu0 %v12460_v11 }
 0x804   :  { %5338 = vrot.lane.b32.xlu1 %v5185_v30, %s12888_s23  ;;  %5350 = vrot.lane.b32.xlu0 %v5188_v58, %s12894_s5 }
 0x805   :  { %v4981_v25 = vcombine.low %v4925_v46, %v4941_v33  ;;  %v4982_v37 = vcombine.high %v4925_v46, %v4941_v33  ;;  %v4997_v59 = vcombine.low %v4932_v22, %v4948_v31  ;;  %v4998_v55 = vcombine.high %v4932_v22, %v4948_v31  ;;  %12068 = vmatprep.subr.bf16.mxu0 %v12881_v3 }
 0x806   :  { %v4669_v12 = vpop.trf.xlu1 }
 0x807   :  { %v4989_v49 = vrot.slane %v4981_v25, %v13154_v36  ;;  %v4996_v38 = vrot.slane %v4982_v37, %v13154_v36  ;;  %v5005_v26 = vrot.slane %v4997_v59, %v13154_v36  ;;  %v5012_v43 = vrot.slane %v4998_v55, %v13154_v36  ;;  %12069 = vmatpush3.bf16.msra.mxu0 %v12461_v60  ;;  %v12464_v25 = vld [vmem:[#allocation8 + $0x30] sm:$0xff]  }
 0x808   :  { %5342 = vrot.lane.b32.xlu1 %v5186_v6, %s12895_s9  ;;  %12070 = vmatprep.subr.bf16.mxu0 %v12881_v3 }
 0x809   :  { %v11519_v23 = vcombine.low %v4989_v49, %v4996_v38  ;;  %v11521_v34 = vcombine.high %v4989_v49, %v4996_v38  ;;  %v11523_v7 = vcombine.low %v5005_v26, %v5012_v43  ;;  %v11525_v56 = vcombine.high %v5005_v26, %v5012_v43 }
 0x80b   :  { %v5197_v40 = vrot.slane %v11519_v23, %v13147_v17  ;;  %v5213_v9 = vrot.slane %v11521_v34, %v13147_v17  ;;  %v5229_v18 = vrot.slane %v11523_v7, %v13147_v17  ;;  %v5245_v16 = vrot.slane %v11525_v56, %v13147_v17  ;;  %12071 = vmatpush3.bf16.msra.mxu0 %v12462_v21 }
 0x80c   :  { %5346 = vrot.lane.b32.xlu1 %v5187_v61, %s12886_s21  ;;  %12072 = vmatprep.subr.bf16.mxu0 %v12881_v3 }
 0x80d   :  { %v5253_v2 = vcombine.low %v5197_v40, %v5213_v9  ;;  %v5285_v50 = vcombine.low %v5229_v18, %v5245_v16  ;;  %v5254_v4 = vcombine.high %v5197_v40, %v5213_v9  ;;  %v5286_v63 = vcombine.high %v5229_v18, %v5245_v16  ;;  %v12465_v40 = vld [vmem:[#allocation8 + $0x38] sm:$0xff]  }
 0x80e   :  { %v4733_v0 = vpop.trf.xlu1 }
 0x80f   :  { %v5261_v41 = vrot.slane %v5253_v2, %v13154_v36  ;;  %v5293_v1 = vrot.slane %v5285_v50, %v13154_v36  ;;  %v5268_v19 = vrot.slane %v5254_v4, %v13154_v36  ;;  %v5300_v13 = vrot.slane %v5286_v63, %v13154_v36  ;;  %12073 = vmatpush3.bf16.msra.mxu0 %v12463_v48 }
 0x810   :  { %v4949_v20 = vcombine.low %v4669_v12, %v4733_v0  ;;  %v4950_v54 = vcombine.high %v4669_v12, %v4733_v0  ;;  %12074 = vmatprep.subr.bf16.mxu0 %v12881_v3 }
 0x811   :  { %v5317_v51 = vcombine.low %v5261_v41, %v5293_v1  ;;  %v5318_v52 = vcombine.high %v5261_v41, %v5293_v1  ;;  %v5319_v8 = vcombine.low %v5268_v19, %v5300_v13  ;;  %v5320_v53 = vcombine.high %v5268_v19, %v5300_v13 }
 0x812   :  { %v4957_v47 = vrot.slane %v4949_v20, %v13147_v17  ;;  %v4964_v24 = vrot.slane %v4950_v54, %v13147_v17 }
 0x813   :  { %5354 = vrot.lane.b32.xlu1 %v5317_v51, %s12870_s1  ;;  %5358 = vrot.lane.b32.xlu0 %v5318_v52, %s12893_s29 }
 0x814   :  { %12075 = vmatpush3.bf16.msra.mxu0 %v12464_v25 }
 0x815   :  { %12076 = vmatprep.subr.bf16.mxu0 %v12881_v3 }
 0x817   :  { %5362 = vrot.lane.b32.xlu1 %v5319_v8, %s12892_s28  ;;  %5366 = vrot.lane.b32.xlu0 %v5320_v53, %s12891_s26  ;;  %v4701_v29 = vpop.trf.xlu0 }
 0x818   :  { %12077 = vmatpush3.bf16.msra.mxu0 %v12465_v40  ;;  %v12467_v40 = vld [vmem:[#allocation10 + $0x8] sm:$0xff]  }
 0x819   :  { %12102 = vmatprep.subr.bf16.mxu0 %v12881_v3 }
 0x81f   :  { %v4765_v14 = vpop.trf.xlu0 }
 0x820   :  { %v4965_v27 = vcombine.low %v4701_v29, %v4765_v14  ;;  %v4966_v46 = vcombine.high %v4701_v29, %v4765_v14 }
 0x822   :  { %v4973_v22 = vrot.slane %v4965_v27, %v13147_v17  ;;  %v4980_v30 = vrot.slane %v4966_v46, %v13147_v17 }
 0x824   :  { %v5013_v58 = vcombine.low %v4957_v47, %v4973_v22  ;;  %v5014_v33 = vcombine.high %v4957_v47, %v4973_v22  ;;  %v5029_v31 = vcombine.low %v4964_v24, %v4980_v30  ;;  %v5030_v6 = vcombine.high %v4964_v24, %v4980_v30 }
 0x826   :  { %v5021_v37 = vrot.slane %v5013_v58, %v13154_v36  ;;  %v5028_v59 = vrot.slane %v5014_v33, %v13154_v36  ;;  %v5037_v55 = vrot.slane %v5029_v31, %v13154_v36  ;;  %v5044_v61 = vrot.slane %v5030_v6, %v13154_v36 }
 0x828   :  { %v11520_v49 = vcombine.low %v5021_v37, %v5028_v59  ;;  %v11522_v38 = vcombine.high %v5021_v37, %v5028_v59  ;;  %v11524_v26 = vcombine.low %v5037_v55, %v5044_v61  ;;  %v11526_v43 = vcombine.high %v5037_v55, %v5044_v61  ;;  %v14140_v61 = vld [vmem:[#allocation13] sm:$0xff] }
 0x829   :  { %v5433_v55 = vsub.s32 3, %v13074_v44 }
 0x82a   :  { %v5204_v23 = vrot.slane %v11520_v49, %v13147_v17  ;;  %v5220_v34 = vrot.slane %v11522_v38, %v13147_v17  ;;  %v5236_v7 = vrot.slane %v11524_v26, %v13147_v17  ;;  %v5252_v56 = vrot.slane %v11526_v43, %v13147_v17 }
 0x82b   :  { %v5434_v49 = vrot.slane %v14140_v61, %v5433_v55 }
 0x82c   :  { %v5269_v9 = vcombine.low %v5204_v23, %v5220_v34  ;;  %v5301_v18 = vcombine.low %v5236_v7, %v5252_v56  ;;  %v5270_v16 = vcombine.high %v5204_v23, %v5220_v34  ;;  %v5302_v35 = vcombine.high %v5236_v7, %v5252_v56  ;;  %v12466_v56 = vld [vmem:[#allocation10] sm:$0xff]  }
 0x82d   :  { %12083 = vmatpush3.bf16.msra.mxu1 %v12466_v56 }
 0x82e   :  { %v5277_v2 = vrot.slane %v5269_v9, %v13154_v36  ;;  %v5309_v50 = vrot.slane %v5301_v18, %v13154_v36  ;;  %v5284_v32 = vrot.slane %v5270_v16, %v13154_v36  ;;  %v5316_v41 = vrot.slane %v5302_v35, %v13154_v36  ;;  %12084 = vmatprep.subr.bf16.mxu1 %v12881_v3 }
 0x830   :  { %v5322_v4 = vcombine.high %v5277_v2, %v5309_v50  ;;  %v5321_v63 = vcombine.low %v5277_v2, %v5309_v50  ;;  %v5324_v1 = vcombine.high %v5284_v32, %v5316_v41  ;;  %v5323_v19 = vcombine.low %v5284_v32, %v5316_v41  ;;  %v12468_v50 = vld [vmem:[#allocation10 + $0x10] sm:$0xff]   ;;  %v12473_v41 = vld [vmem:[#allocation10 + $0x38] sm:$0xff]  }
 0x831   :  { %12085 = vmatpush3.bf16.msra.mxu1 %v12467_v40  ;;  %v12472_v32 = vld [vmem:[#allocation10 + $0x30] sm:$0xff]  }
 0x832   :  { %5374 = vrot.lane.b32.xlu0 %v5322_v4, %s12884_s6  ;;  %5370 = vrot.lane.b32.xlu1 %v5321_v63, %s12889_s24  ;;  %v12470_v4 = vld [vmem:[#allocation10 + $0x20] sm:$0xff]   ;;  %v12471_v63 = vld [vmem:[#allocation10 + $0x28] sm:$0xff]  }
 0x833   :  { %12086 = vmatprep.subr.bf16.mxu1 %v12881_v3 }
 0x835   :  { %12087 = vmatpush3.bf16.msra.mxu1 %v12468_v50  ;;  %v12488_v50 = vld [vmem:[#allocation7 + $0xdc] ss:$12 sps:$4 sm:$0xff]  }
 0x836   :  { %5382 = vrot.lane.b32.xlu0 %v5324_v1, %s12885_s20  ;;  %5378 = vrot.lane.b32.xlu1 %v5323_v19, %s12887_s22  ;;  %v12474_v1 = vld [vmem:[#allocation11] sm:$0xff]  }
 0x837   :  { %12088 = vmatprep.subr.bf16.mxu1 %v12881_v3 }
 0x867   :  { %v5327_v13 = vpop.permute.xlu1 %5326 }
 0x868   :  { %v5385_v8 = vsel %vm2079_vm3, %v5181_v39, %v5327_v13  ;;  %v5331_v53 = vpop.permute.xlu0 %5330 }
 0x869   :  { %v5387_v60 = vsel %vm5386_vm4, %v5385_v8, %v5331_v53 }
 0x86b   :  { %v5335_v51 = vpop.permute.xlu1 %5334 }
 0x86c   :  { %v5389_v29 = vsel %vm5388_vm5, %v5387_v60, %v5335_v51 }
 0x876   :  { %v5339_v52 = vpop.permute.xlu1 %5338  ;;  %v5351_v21 = vpop.permute.xlu0 %5350 }
 0x877   :  { %v5391_v0 = vsel %vm5390_vm6, %v5389_v29, %v5339_v52  ;;  %v5538_v52 = vsub.s32 4, %v13074_v44 }
 0x879   :  { %v5539_v8 = vrot.slane %v14140_v61, %v5538_v52 }
 0x87a   :  { %v5343_v11 = vpop.permute.xlu1 %5342 }
 0x87b   :  { %v5393_v20 = vsel %vm5392_vm7, %v5391_v0, %v5343_v11  ;;  %v5543_v11 = vsub.s32 5, %v13074_v44 }
 0x87d   :  { %v5544_v60 = vrot.slane %v14140_v61, %v5543_v11 }
 0x87e   :  { %v5347_v12 = vpop.permute.xlu1 %5346 }
 0x87f   :  { %v5395_v15 = vsel %vm15301_vm8, %v5393_v20, %v5347_v12  ;;  %vm5412_vm8 = vcmask 982016   ;;  %v12475_v20 = vld [vmem:[#allocation11 + $0x8] sm:$0xff]  }
 0x880   :  { %v5397_v39 = vsel %vm15300_vm9, %v5395_v15, %v5351_v21  ;;  %vm5410_vm9 = vcmask 916480   ;;  %v12477_v15 = vld [vmem:[#allocation11 + $0x18] sm:$0xff]  }
 0x885   :  { %v5355_v54 = vpop.permute.xlu1 %5354  ;;  %v5359_v5 = vpop.permute.xlu0 %5358 }
 0x886   :  { %v5399_v48 = vsel %vm5398_vm10, %v5397_v39, %v5355_v54  ;;  %v12476_v54 = vld [vmem:[#allocation11 + $0x10] sm:$0xff]   ;;  %v12479_v39 = vld [vmem:[#allocation11 + $0x28] sm:$0xff]  }
 0x887   :  { %v5401_v27 = vsel %vm5400_vm11, %v5399_v48, %v5359_v5  ;;  %v12478_v5 = vld [vmem:[#allocation11 + $0x20] sm:$0xff]   ;;  %v12480_v48 = vld [vmem:[#allocation11 + $0x30] sm:$0xff]  }
 0x889   :  { %v5363_v14 = vpop.permute.xlu1 %5362  ;;  %v5367_v46 = vpop.permute.xlu0 %5366 }
 0x88a   :  { %v5403_v47 = vsel %vm5402_vm12, %v5401_v27, %v5363_v14  ;;  %v12481_v14 = vld [vmem:[#allocation11 + $0x38] sm:$0xff]   ;;  %v11535_v27 = vld [vmem:[%s15298_s7] ss:$0 sm:$0xff] }
 0x88b   :  { %v5405_v24 = vsel %vm5404_vm13, %v5403_v47, %v5367_v46 }
 0x8a4   :  { %v5375_v22 = vpop.permute.xlu0 %5374  ;;  %v5371_v30 = vpop.permute.xlu1 %5370 }
 0x8a5   :  { %v5407_v58 = vsel %vm5406_vm14, %v5405_v24, %v5371_v30 }
 0x8a6   :  { %v5409_v31 = vsel %vm5408_vm15, %v5407_v58, %v5375_v22 }
 0x8a8   :  { %v5383_v33 = vpop.permute.xlu0 %5382  ;;  %v5379_v6 = vpop.permute.xlu1 %5378 }
 0x8a9   :  { %v5411_v25 = vsel %vm5410_vm9, %v5409_v31, %v5379_v6 }
 0x8aa   :  { %v5413_v37 = vsel %vm5412_vm8, %v5411_v25, %v5383_v33 }
 0x8ab   :  { %v5414_v59 = vpack.c.bf16 %v5413_v37, %v5413_v37 }
 0x8ad   :  { %12079 = vmatmul.mubr.bf16.vlgmr.msra.gmra.mrb[60].mxu0 %v5414_v59 }
 0x8ae   :  { %12118 = vmatprep.mubr.msk.bf16.mxu0 %vm12883_vm1, %v12881_v3  ;;  %12103 = vmatpush3.bf16.msra.mxu0 %v12474_v1 }
 0x8af   :  { %12104 = vmatprep.subr.bf16.mxu0 %v12881_v3 }
 0x8b2   :  { %12105 = vmatpush3.bf16.msra.mxu0 %v12475_v20  ;;  %v12501_v20 = vld [vmem:[#allocation7 + $0x128] ss:$12 sps:$4 sm:$0xff]  }
 0x8b3   :  { %12106 = vmatprep.subr.bf16.mxu0 %v12881_v3 }
 0x8b6   :  { %12107 = vmatpush3.bf16.msra.mxu0 %v12476_v54  ;;  %v12502_v54 = vld [vmem:[#allocation7 + $0x138] ss:$12 sps:$4 sm:$0xff]  }
 0x8b7   :  { %12108 = vmatprep.subr.bf16.mxu0 %v12881_v3 }
 0x8ba   :  { %12109 = vmatpush3.bf16.msra.mxu0 %v12477_v15  ;;  %v12508_v15 = vld [vmem:[#allocation7 + $0x154] ss:$12 sps:$4 sm:$0xff]  }
 0x8bb   :  { %12110 = vmatprep.subr.bf16.mxu0 %v12881_v3 }
 0x8be   :  { %12111 = vmatpush3.bf16.msra.mxu0 %v12478_v5  ;;  %v12505_v5 = vld [vmem:[#allocation7 + $0x140] ss:$12 sps:$4 sm:$0xff]  }
 0x8bf   :  { %12112 = vmatprep.subr.bf16.mxu0 %v12881_v3 }
 0x8c2   :  { %12113 = vmatpush3.bf16.msra.mxu0 %v12479_v39  ;;  %v12506_v39 = vld [vmem:[#allocation7 + $0x150] ss:$12 sps:$4 sm:$0xff]  }
 0x8c3   :  { %12114 = vmatprep.subr.bf16.mxu0 %v12881_v3 }
 0x8c6   :  { %12115 = vmatpush3.bf16.msra.mxu0 %v12480_v48  ;;  %v12512_v48 = vld [vmem:[#allocation7 + $0x16c] ss:$12 sps:$4 sm:$0xff]  }
 0x8c7   :  { %12116 = vmatprep.subr.bf16.mxu0 %v12881_v3 }
 0x8ca   :  { %12117 = vmatpush3.bf16.msra.mxu0 %v12481_v14  ;;  %v12509_v14 = vld [vmem:[#allocation7 + $0x158] ss:$12 sps:$4 sm:$0xff]  }
 0x8cb   :  { %12122 = vmatprep.subr.bf16.mxu0 %v12881_v3 }
 0x980   :  { %v5517_v38 = vpop.f32.mrb[60].mxu0 }
 0x981   :  { %v5518_v26 = vadd.f32 %v5517_v38, %v5434_v49  ;;  %v12080_v43 = vpop.f32.mrb[61].mxu0 }
 0x982   :  { %v5520_v23 = vpop.f32.mrb[62].mxu0  ;;  %v5684_v43 = vsub.s32 6, %v13074_v44 }
 0x983   :  { %v5523_v34 = vadd.f32 %v5518_v26, %v13065_v42  ;;  %v12081_v7 = vpop.f32.mrb[63].mxu0  ;;  %v12469_v42 = vld [vmem:[#allocation10 + $0x18] sm:$0xff]  }
 0x984   :  { %12089 = vmatpush3.bf16.msra.mxu1 %v12469_v42  ;;  %v5685_v23 = vrot.slane %v14140_v61, %v5684_v43  ;;  %v12489_v42 = vld [vmem:[#allocation7 + $0xe0] ss:$12 sps:$4 sm:$0xff]  }
 0x985   :  { %5524 = vadd.xlane.f32.xlu1 %v5523_v34  ;;  %12090 = vmatprep.subr.bf16.mxu1 %v12881_v3 }
 0x988   :  { %12091 = vmatpush3.bf16.msra.mxu1 %v12470_v4  ;;  %v12486_v4 = vld [vmem:[#allocation7 + $0xd8] ss:$12 sps:$4 sm:$0xff]  }
 0x989   :  { %12092 = vmatprep.subr.bf16.mxu1 %v12881_v3 }
 0x98c   :  { %12093 = vmatpush3.bf16.msra.mxu1 %v12471_v63  ;;  %v12492_v63 = vld [vmem:[#allocation7 + $0xf4] ss:$12 sps:$4 sm:$0xff]  }
 0x98d   :  { %12094 = vmatprep.subr.bf16.mxu1 %v12881_v3 }
 0x990   :  { %12095 = vmatpush3.bf16.msra.mxu1 %v12472_v32  ;;  %v12490_v32 = vld [vmem:[#allocation7 + $0xf0] ss:$12 sps:$4 sm:$0xff]  }
 0x991   :  { %12096 = vmatprep.subr.bf16.mxu1 %v12881_v3 }
 0x994   :  { %12097 = vmatpush3.bf16.msra.mxu1 %v12473_v41 }
 0xa12   :  { %v5525_v9 = vpop.xlane.xlu1 %5524 }
 0xa13   :  { %v5526_v18 = vmul.f32 0.03125, %v5525_v9 }
 0xa15   :  { %v5527_v16 = vsub.f32 %v5523_v34, %v5526_v18 }
 0xa17   :  { %v5528_v35 = vsel %vm15302_vm0, %v5527_v16, 0.0  ;;  %v12482_v16 = vld [vmem:[#allocation7 + $0xc0] ss:$12 sps:$4 sm:$0xff]  }
 0xa18   :  { %v5529_v2 = vmul.f32 %v5528_v35, %v5528_v35 }
 0xa1a   :  { %5530 = vadd.xlane.f32.xlu0 %v5529_v2  ;;  %v12485_v2 = vld [vmem:[#allocation7 + $0xc8] ss:$12 sps:$4 sm:$0xff]  }
 0xaa7   :  { %v5531_v19 = vpop.xlane.xlu0 %5530 }
 0xaa8   :  { %v5532_v13 = vmul.f32 0.03125, %v5531_v19 }
 0xaaa   :  { %v5533_v51 = vadd.f32 1e-12, %v5532_v13 }
 0xaac   :  { %12604 = vrsqrt.f32 %v5533_v51 }
 0xab6   :  { %v12605_v53 = vpop.eup %12604 }
 0xab7   :  { %v5535_v12 = vmul.f32 %v12605_v53, %v5528_v35  ;;  %v12484_v35 = vld [vmem:[#allocation7 + $0xc4] ss:$12 sps:$4 sm:$0xff]   ;;  %v12494_v53 = vld [vmem:[#allocation7 + $0x108] ss:$12 sps:$4 sm:$0xff]  }
 0xab8   :  { %5962 = vmatprep.subr.bf16.mxu1 %v12484_v35 }
 0xab9   :  { %v5540_v29 = vmul.f32 %v5539_v8, %v5535_v12  ;;  %v12493_v8 = vld [vmem:[#allocation7 + $0xf8] ss:$12 sps:$4 sm:$0xff]  }
 0xaba   :  { %v12496_v12 = vld [vmem:[#allocation7 + $0x10c] ss:$12 sps:$4 sm:$0xff]  }
 0xabb   :  { %v5545_v21 = vadd.f32 %v5544_v60, %v5540_v29  ;;  %v12497_v60 = vld [vmem:[#allocation7 + $0x110] ss:$12 sps:$4 sm:$0xff]  }
 0xabc   :  { %v12500_v29 = vld [vmem:[#allocation7 + $0x124] ss:$12 sps:$4 sm:$0xff]  }
 0xabd   :  { %v5546_v0 = vpack.c.bf16 %v5545_v21, %v5545_v21 }
 0xabf   :  { %12099 = vmatmul.mubr.bf16.vlgmr.msra.gmra.mrb[76].mxu1 %v5546_v0  ;;  %v12504_v0 = vld [vmem:[#allocation7 + $0x13c] ss:$12 sps:$4 sm:$0xff]  }
 0xac0   :  { %5994 = vmatprep.mubr.bf16.mxu1 %v12882_v28  ;;  %5963 = vmatpush1.bf16.msra.mxu1 %v12482_v16 }
 0xac1   :  { %5964 = vmatprep.subr.bf16.mxu1 %v12488_v50 }
 0xac4   :  { %5965 = vmatpush1.bf16.msra.mxu1 %v12486_v4 }
 0xac5   :  { %5966 = vmatprep.subr.bf16.mxu1 %v12492_v63 }
 0xac8   :  { %5967 = vmatpush1.bf16.msra.mxu1 %v12490_v32 }
 0xac9   :  { %5968 = vmatprep.subr.bf16.mxu1 %v12496_v12 }
 0xacc   :  { %5969 = vmatpush1.bf16.msra.mxu1 %v12494_v53 }
 0xacd   :  { %5970 = vmatprep.subr.bf16.mxu1 %v12500_v29 }
 0xb92   :  { %v5650_v46 = vpop.f32.mrb[76].mxu1 }
 0xb93   :  { %v5651_v47 = vadd.f32 %v11535_v27, %v5650_v46  ;;  %v12100_v24 = vpop.f32.mrb[77].mxu1  ;;  %v12510_v27 = vld [vmem:[#allocation7 + $0x168] ss:$12 sps:$4 sm:$0xff]   ;;  %v12513_v46 = vld [vmem:[#allocation7 + $0x170] ss:$12 sps:$4 sm:$0xff]  }
 0xb94   :  { %v5653_v22 = vpop.f32.mrb[78].mxu1 }
 0xb95   :  { %v5657_v30 = vmul.f32 0.044715, %v5651_v47  ;;  %v12101_v58 = vpop.f32.mrb[79].mxu1  ;;  %v5656_v59 = vmul.f32 0.5, %v5651_v47 }
 0xb96   :  { %v151_v58 = vld [vmem:[#allocation13 + $0x8] sm:$0xff] }
 0xb97   :  { %v5658_v33 = vmul.f32 %v5657_v30, %v5651_v47  ;;  %v5789_v30 = vsub.s32 7, %v13074_v44 }
 0xb99   :  { %v5659_v31 = vmul.f32 %v5658_v33, %v5651_v47  ;;  %v5790_v33 = vrot.slane %v14140_v61, %v5789_v30 }
 0xb9b   :  { %v5660_v6 = vadd.f32 %v5659_v31, %v5651_v47 }
 0xb9d   :  { %v5661_v25 = vmul.f32 0.7978846, %v5660_v6 }
 0xb9f   :  { %12606 = vtanh.f32 %v5661_v25  ;;  %v5795_v25 = vrot.slane %v151_v58, %v13095_v57 }
 0xba9   :  { %v12607_v37 = vpop.eup %12606 }
 0xbaa   :  { %v5663_v49 = vadd.f32 1.0, %v12607_v37 }
 0xbac   :  { %v5664_v38 = vmul.f32 %v5663_v49, %v5656_v59 }
 0xbae   :  { %v5665_v26 = vpack.c.bf16 %v5664_v38, %v5664_v38  ;;  %v14205_v38 = vld [vmem:[#allocation13 + $0x10] sm:$0xff] }
 0xbaf   :  { %v6051_v61 = vrot.slane %v14205_v38, %v401_v45  ;;  %v6046_v45 = vrot.slane %v14205_v38, %v13095_v57 }
 0xbb0   :  { %12119 = vmatmul.mubr.bf16.vlgmr.msra.gmra.mrb[64].mxu0 %v5665_v26 }
 0xbb1   :  { %12138 = vmatprep.mubr.msk.bf16.mxu0 %vm12883_vm1, %v12881_v3  ;;  %12123 = vmatpush3.bf16.msra.mxu0 %v12485_v2 }
 0xbb2   :  { %12124 = vmatprep.subr.bf16.mxu0 %v12881_v3 }
 0xbb5   :  { %12125 = vmatpush3.bf16.msra.mxu0 %v12489_v42 }
 0xbb6   :  { %12126 = vmatprep.subr.bf16.mxu0 %v12881_v3 }
 0xbb9   :  { %12127 = vmatpush3.bf16.msra.mxu0 %v12493_v8 }
 0xbba   :  { %12128 = vmatprep.subr.bf16.mxu0 %v12881_v3 }
 0xbbd   :  { %12129 = vmatpush3.bf16.msra.mxu0 %v12497_v60 }
 0xbbe   :  { %12130 = vmatprep.subr.bf16.mxu0 %v12881_v3 }
 0xbc1   :  { %12131 = vmatpush3.bf16.msra.mxu0 %v12501_v20 }
 0xbc2   :  { %12132 = vmatprep.subr.bf16.mxu0 %v12881_v3 }
 0xbc5   :  { %12133 = vmatpush3.bf16.msra.mxu0 %v12505_v5 }
 0xbc6   :  { %12134 = vmatprep.subr.bf16.mxu0 %v12881_v3 }
 0xbc9   :  { %12135 = vmatpush3.bf16.msra.mxu0 %v12509_v14 }
 0xbca   :  { %12136 = vmatprep.subr.bf16.mxu0 %v12881_v3 }
 0xbcd   :  { %12137 = vmatpush3.bf16.msra.mxu0 %v12513_v46 }
 0xbce   :  { %12166 = vmatprep.subr.bf16.mxu0 %v12881_v3 }
 0xc83   :  { %v5768_v34 = vpop.f32.mrb[64].mxu0 }
 0xc84   :  { %v5769_v7 = vadd.f32 %v5768_v34, %v5685_v23  ;;  %v12120_v56 = vpop.f32.mrb[65].mxu0 }
 0xc85   :  { %v5771_v40 = vpop.f32.mrb[66].mxu0 }
 0xc86   :  { %v5774_v9 = vadd.f32 %v5769_v7, %v5545_v21  ;;  %v12121_v18 = vpop.f32.mrb[67].mxu0  ;;  %v12498_v21 = vld [vmem:[#allocation7 + $0x120] ss:$12 sps:$4 sm:$0xff]  }
 0xc87   :  { %5971 = vmatpush1.bf16.msra.mxu1 %v12498_v21 }
 0xc88   :  { %5775 = vadd.xlane.f32.xlu0 %v5774_v9  ;;  %5972 = vmatprep.subr.bf16.mxu1 %v12504_v0 }
 0xc8b   :  { %5973 = vmatpush1.bf16.msra.mxu1 %v12502_v54 }
 0xc8c   :  { %5974 = vmatprep.subr.bf16.mxu1 %v12508_v15 }
 0xc8f   :  { %5975 = vmatpush1.bf16.msra.mxu1 %v12506_v39 }
 0xc90   :  { %5976 = vmatprep.subr.bf16.mxu1 %v12512_v48 }
 0xc93   :  { %5977 = vmatpush1.bf16.msra.mxu1 %v12510_v27 }
 0xc94   :  { %12142 = vmatprep.subr.bf16.mxu1 %v12881_v3 }
 0xd15   :  { %v5776_v41 = vpop.xlane.xlu0 %5775 }
 0xd16   :  { %v5777_v1 = vmul.f32 0.03125, %v5776_v41 }
 0xd18   :  { %v5778_v19 = vsub.f32 %v5774_v9, %v5777_v1 }
 0xd1a   :  { %v5779_v13 = vsel %vm15302_vm0, %v5778_v19, 0.0  ;;  %vm15304_vm0 = vcmask 457728  }
 0xd1b   :  { %v5780_v51 = vmul.f32 %v5779_v13, %v5779_v13 }
 0xd1d   :  { %5781 = vadd.xlane.f32.xlu1 %v5780_v51 }
 0xdaa   :  { %v5782_v47 = vpop.xlane.xlu1 %5781 }
 0xdab   :  { %v5783_v24 = vmul.f32 0.03125, %v5782_v47 }
 0xdad   :  { %v5784_v22 = vadd.f32 1e-12, %v5783_v24 }
 0xdaf   :  { %12608 = vrsqrt.f32 %v5784_v22 }
 0xdb9   :  { %v12609_v31 = vpop.eup %12608 }
 0xdba   :  { %v5786_v6 = vmul.f32 %v12609_v31, %v5779_v13 }
 0xdbc   :  { %v5791_v37 = vmul.f32 %v5790_v33, %v5786_v6 }
 0xdbe   :  { %v14197_v59 = vadd.f32 %v5795_v25, %v5791_v37 }
 0xdc0   :  { %v5800_v49 = vpack.c.bf16 %v14197_v59, %v14197_v59 }
 0xdc2   :  { %5995 = vmatmul.mubr.bf16.vlgmr.msra.gmra.mrb[80].mxu1 %v5800_v49  ;;  %12139 = vmatmul.mubr.bf16.vlgmr.msra.gmra.mrb[68].mxu0 %v5800_v49 }
 0xdc3   :  { %12144 = vmatprep.mubr.msk.bf16.mxu1 %vm12883_vm1, %v12881_v3  ;;  %12168 = vmatprep.mubr.msk.bf16.mxu0 %vm12883_vm1, %v12881_v3 }
 0xe95   :  { %v5996_v26 = vpop.f32.mrb[80].mxu1  ;;  %v14210_v23 = vpop.f32.mrb[68].mxu0 }
 0xe96   :  { %v5998_v34 = vpop.f32.mrb[81].mxu1  ;;  %v12140_v7 = vpop.f32.mrb[69].mxu0  ;;  %v14244_v35 = vadd.f32 %v6046_v45, %v5996_v26 }
 0xe97   :  { %v14212_v56 = vadd.f32 %v6051_v61, %v5998_v34  ;;  %v6000_v40 = vpop.f32.mrb[82].mxu1  ;;  %v6040_v9 = vpop.f32.mrb[70].mxu0 }
 0xe98   :  { %v6001_v18 = vpop.f32.mrb[83].mxu1  ;;  %v12141_v16 = vpop.f32.mrb[71].mxu0 }
 0xe99   :  { %6388 = vrot.lane.b32.xlu1 %v14212_v56, %s12887_s22  ;;  %6385 = vrot.lane.b32.xlu0 %v14212_v56, %s12885_s20 }
 0xe9d   :  { %6391 = vrot.lane.b32.xlu1 %v14212_v56, %s12884_s6  ;;  %6394 = vrot.lane.b32.xlu0 %v14212_v56, %s12889_s24 }
 0xea1   :  { %6397 = vrot.lane.b32.xlu1 %v14212_v56, %s12891_s26  ;;  %6400 = vrot.lane.b32.xlu0 %v14212_v56, %s12892_s28 }
 0xea5   :  { %6403 = vrot.lane.b32.xlu1 %v14212_v56, %s12893_s29  ;;  %6406 = vrot.lane.b32.xlu0 %v14212_v56, %s12870_s1 }
 0xea9   :  { %6409 = vrot.lane.b32.xlu1 %v14212_v56, %s12894_s5  ;;  %6412 = vrot.lane.b32.xlu0 %v14212_v56, %s12886_s21 }
 0xead   :  { %6415 = vrot.lane.b32.xlu1 %v14212_v56, %s12895_s9  ;;  %6418 = vrot.lane.b32.xlu0 %v14212_v56, %s12888_s23 }
 0xeb1   :  { %6421 = vrot.lane.b32.xlu1 %v14212_v56, %s12896_s10  ;;  %6424 = vrot.lane.b32.xlu0 %v14212_v56, %s12890_s25 }
 0xeb5   :  { %6427 = vrot.lane.b32.xlu1 %v14212_v56, %s12880_s27  ;;  %6062 = vrot.lane.b32.xlu0 %v14244_v35, %s12887_s22 }
 0xeb9   :  { %6059 = vrot.lane.b32.xlu1 %v14244_v35, %s12885_s20  ;;  %6071 = vrot.lane.b32.xlu0 %v14244_v35, %s12891_s26 }
 0xebd   :  { %6065 = vrot.lane.b32.xlu1 %v14244_v35, %s12884_s6  ;;  %6077 = vrot.lane.b32.xlu0 %v14244_v35, %s12893_s29 }
 0xec1   :  { %6068 = vrot.lane.b32.xlu1 %v14244_v35, %s12889_s24  ;;  %6083 = vrot.lane.b32.xlu0 %v14244_v35, %s12894_s5 }
 0xec5   :  { %6074 = vrot.lane.b32.xlu1 %v14244_v35, %s12892_s28  ;;  %6089 = vrot.lane.b32.xlu0 %v14244_v35, %s12895_s9 }
 0xec9   :  { %6080 = vrot.lane.b32.xlu1 %v14244_v35, %s12870_s1 }
 0xecd   :  { %6086 = vrot.lane.b32.xlu1 %v14244_v35, %s12886_s21 }
 0xf0b   :  { %v6389_v2 = vpop.permute.xlu1 %6388  ;;  %v6386_v50 = vpop.permute.xlu0 %6385 }
 0xf0c   :  { %v6430_v60 = vcombine.low %v14212_v56, %v6389_v2  ;;  %v6431_v21 = vcombine.high %v14212_v56, %v6389_v2 }
 0xf0e   :  { %v6438_v47 = vrot.slane %v6430_v60, %v13147_v17  ;;  %v6445_v33 = vrot.slane %v6431_v21, %v13147_v17 }
 0xf0f   :  { %v6392_v42 = vpop.permute.xlu1 %6391  ;;  %v6395_v4 = vpop.permute.xlu0 %6394 }
 0xf10   :  { %v6446_v12 = vcombine.low %v6386_v50, %v6392_v42  ;;  %v6447_v5 = vcombine.high %v6386_v50, %v6392_v42 }
 0xf12   :  { %v6454_v48 = vrot.slane %v6446_v12, %v13147_v17  ;;  %v6461_v49 = vrot.slane %v6447_v5, %v13147_v17 }
 0xf13   :  { %v6398_v63 = vpop.permute.xlu1 %6397  ;;  %v6401_v32 = vpop.permute.xlu0 %6400 }
 0xf14   :  { %v6462_v29 = vcombine.low %v6395_v4, %v6401_v32  ;;  %v6463_v14 = vcombine.high %v6395_v4, %v6401_v32  ;;  %v6494_v7 = vcombine.low %v6438_v47, %v6454_v48 }
 0xf16   :  { %v6470_v24 = vrot.slane %v6462_v29, %v13147_v17  ;;  %v6477_v56 = vrot.slane %v6463_v14, %v13147_v17  ;;  %v6502_v12 = vrot.slane %v6494_v7, %v13154_v36 }
 0xf17   :  { %v6404_v41 = vpop.permute.xlu1 %6403  ;;  %v6407_v1 = vpop.permute.xlu0 %6406 }
 0xf18   :  { %v6478_v53 = vcombine.low %v6398_v63, %v6404_v41  ;;  %v6479_v0 = vcombine.high %v6398_v63, %v6404_v41 }
 0xf1a   :  { %v6486_v39 = vrot.slane %v6478_v53, %v13147_v17  ;;  %v6493_v31 = vrot.slane %v6479_v0, %v13147_v17 }
 0xf1b   :  { %v6410_v19 = vpop.permute.xlu1 %6409  ;;  %v6413_v13 = vpop.permute.xlu0 %6412 }
 0xf1c   :  { %v6566_v27 = vcombine.low %v6407_v1, %v6413_v13  ;;  %v6567_v6 = vcombine.high %v6407_v1, %v6413_v13  ;;  %v6526_v61 = vcombine.low %v6470_v24, %v6486_v39  ;;  %v6527_v50 = vcombine.high %v6470_v24, %v6486_v39 }
 0xf1d   :  { %v6542_v42 = vcombine.low %v6477_v56, %v6493_v31  ;;  %v6495_v13 = vcombine.high %v6438_v47, %v6454_v48  ;;  %v6543_v60 = vcombine.high %v6477_v56, %v6493_v31 }
 0xf1e   :  { %v6574_v40 = vrot.slane %v6566_v27, %v13147_v17  ;;  %v6581_v4 = vrot.slane %v6567_v6, %v13147_v17  ;;  %v6534_v32 = vrot.slane %v6526_v61, %v13154_v36  ;;  %v6541_v14 = vrot.slane %v6527_v50, %v13154_v36 }
 0xf1f   :  { %v6416_v51 = vpop.permute.xlu1 %6415  ;;  %v6419_v8 = vpop.permute.xlu0 %6418  ;;  %v6509_v31 = vrot.slane %v6495_v13, %v13154_v36 }
 0xf20   :  { %v6582_v20 = vcombine.low %v6410_v19, %v6416_v51  ;;  %v6583_v46 = vcombine.high %v6410_v19, %v6416_v51  ;;  %v6510_v51 = vcombine.low %v6445_v33, %v6461_v49  ;;  %v6559_v39 = vcombine.high %v6502_v12, %v6534_v32 }
 0xf21   :  { %v6558_v48 = vcombine.low %v6502_v12, %v6534_v32  ;;  %v6560_v56 = vcombine.low %v6509_v31, %v6541_v14 }
 0xf22   :  { %v6590_v25 = vrot.slane %v6582_v20, %v13147_v17  ;;  %v6597_v9 = vrot.slane %v6583_v46, %v13147_v17  ;;  %v6550_v20 = vrot.slane %v6542_v42, %v13154_v36 }
 0xf23   :  { %v6422_v54 = vpop.permute.xlu1 %6421  ;;  %v6425_v15 = vpop.permute.xlu0 %6424 }
 0xf24   :  { %v6598_v22 = vcombine.low %v6419_v8, %v6425_v15  ;;  %v6599_v58 = vcombine.high %v6419_v8, %v6425_v15  ;;  %v6630_v63 = vcombine.low %v6574_v40, %v6590_v25  ;;  %v6631_v8 = vcombine.high %v6574_v40, %v6590_v25 }
 0xf25   :  { %v6646_v53 = vcombine.low %v6581_v4, %v6597_v9  ;;  %v6647_v5 = vcombine.high %v6581_v4, %v6597_v9 }
 0xf26   :  { %v6606_v18 = vrot.slane %v6598_v22, %v13147_v17  ;;  %v6613_v16 = vrot.slane %v6599_v58, %v13147_v17  ;;  %v6638_v0 = vrot.slane %v6630_v63, %v13154_v36  ;;  %v6645_v24 = vrot.slane %v6631_v8, %v13154_v36 }
 0xf27   :  { %v6428_v37 = vpop.permute.xlu1 %6427  ;;  %v6654_v47 = vrot.slane %v6646_v53, %v13154_v36  ;;  %v6511_v22 = vcombine.high %v6445_v33, %v6461_v49  ;;  %v6518_v58 = vrot.slane %v6510_v51, %v13154_v36  ;;  %v6661_v40 = vrot.slane %v6647_v5, %v13154_v36  ;;  %v14314_v51 = vpop.permute.xlu0 %6062 }
 0xf28   :  { %v6614_v26 = vcombine.low %v6422_v54, %v6428_v37  ;;  %v6615_v34 = vcombine.high %v6422_v54, %v6428_v37 }
 0xf29   :  { %v6562_v7 = vcombine.low %v6518_v58, %v6550_v20  ;;  %v6525_v33 = vrot.slane %v6511_v22, %v13154_v36  ;;  %v6563_v63 = vcombine.high %v6518_v58, %v6550_v20 }
 0xf2a   :  { %v6622_v45 = vrot.slane %v6614_v26, %v13147_v17  ;;  %v6629_v2 = vrot.slane %v6615_v34, %v13147_v17  ;;  %v6557_v34 = vrot.slane %v6543_v60, %v13154_v36 }
 0xf2b   :  { %v14312_v13 = vpop.permute.xlu1 %6059  ;;  %v14318_v53 = vpop.permute.xlu0 %6071 }
 0xf2c   :  { %v6662_v41 = vcombine.low %v6606_v18, %v6622_v45  ;;  %v6663_v1 = vcombine.high %v6606_v18, %v6622_v45  ;;  %v6678_v19 = vcombine.low %v6613_v16, %v6629_v2  ;;  %v6679_v21 = vcombine.high %v6613_v16, %v6629_v2 }
 0xf2d   :  { %v6564_v45 = vcombine.low %v6525_v33, %v6557_v34  ;;  %v6561_v2 = vcombine.high %v6509_v31, %v6541_v14 }
 0xf2e   :  { %v6670_v29 = vrot.slane %v6662_v41, %v13154_v36  ;;  %v6686_v54 = vrot.slane %v6678_v19, %v13154_v36  ;;  %v6677_v15 = vrot.slane %v6663_v1, %v13154_v36  ;;  %v6693_v6 = vrot.slane %v6679_v21, %v13154_v36 }
 0xf2f   :  { %v6565_v1 = vcombine.high %v6525_v33, %v6557_v34  ;;  %v14316_v8 = vpop.permute.xlu1 %6065  ;;  %v14322_v60 = vpop.permute.xlu0 %6077 }
 0xf30   :  { %v6695_v27 = vcombine.high %v6638_v0, %v6670_v29  ;;  %v6694_v46 = vcombine.low %v6638_v0, %v6670_v29  ;;  %v6698_v61 = vcombine.low %v6654_v47, %v6686_v54  ;;  %v6696_v26 = vcombine.low %v6645_v24, %v6677_v15 }
 0xf31   :  { %v6700_v18 = vcombine.low %v6661_v40, %v6693_v6  ;;  %v6697_v16 = vcombine.high %v6645_v24, %v6677_v15  ;;  %v6699_v4 = vcombine.high %v6654_v47, %v6686_v54  ;;  %v6701_v41 = vcombine.high %v6661_v40, %v6693_v6 }
 0xf32   :  { %v6703_v25 = vpack.c.bf16 %v6695_v27, %v6559_v39  ;;  %v6702_v37 = vpack.c.bf16 %v6694_v46, %v6558_v48  ;;  %v6706_v49 = vpack.c.bf16 %v6698_v61, %v6562_v7  ;;  %v6704_v9 = vpack.c.bf16 %v6696_v26, %v6560_v56 }
 0xf33   :  { %v6708_v50 = vpack.c.bf16 %v6700_v18, %v6564_v45  ;;  %v6705_v42 = vpack.c.bf16 %v6697_v16, %v6561_v2  ;;  %v6707_v32 = vpack.c.bf16 %v6699_v4, %v6563_v63  ;;  %v6709_v19 = vpack.c.bf16 %v6701_v41, %v6565_v1  ;;  %v14320_v12 = vpop.permute.xlu1 %6068  ;;  %v14326_v21 = vpop.permute.xlu0 %6083 }
 0xf34   :  { %7220 = vxpose.xlu1.c.b16.start.end [1/1] (short) (narrow) %v6703_v25, 16  ;;  %7204 = vxpose.xlu0.c.b16.start.end [1/1] (short) (narrow) %v6702_v37, 16 }
 0xf37   :  { %v14324_v29 = vpop.permute.xlu1 %6074  ;;  %v14330_v20 = vpop.permute.xlu0 %6089 }
 0xf38   :  { %7268 = vxpose.xlu1.c.b16.start.end [1/1] (short) (narrow) %v6706_v49, 16  ;;  %7236 = vxpose.xlu0.c.b16.start.end [1/1] (short) (narrow) %v6704_v9, 16 }
 0xf3b   :  { %v14328_v0 = vpop.permute.xlu1 %6080 }
 0xf3c   :  { %7300 = vxpose.xlu1.c.b16.start.end [1/1] (short) (narrow) %v6708_v50, 16  ;;  %7252 = vxpose.xlu0.c.b16.start.end [1/1] (short) (narrow) %v6705_v42, 16 }
 0xf3f   :  { %v14332_v54 = vpop.permute.xlu1 %6086 }
 0xf40   :  { %6092 = vrot.lane.b32.xlu1 %v14244_v35, %s12888_s23  ;;  %7284 = vxpose.xlu0.c.b16.start.end [1/1] (short) (narrow) %v6707_v32, 16 }
 0xf44   :  { %6098 = vrot.lane.b32.xlu1 %v14244_v35, %s12890_s25  ;;  %7316 = vxpose.xlu0.c.b16.start.end [1/1] (short) (narrow) %v6709_v19, 16 }
 0xf4d   :  { %6095 = vrot.lane.b32.xlu0 %v14244_v35, %s12896_s10 }
 0xf51   :  { %6101 = vrot.lane.b32.xlu0 %v14244_v35, %s12880_s27 }
 0xf9a   :  { %v7228_v15 = vpop.trf.xlu1  ;;  %v7212_v5 = vpop.trf.xlu0 }
 0xf9e   :  { %v7276_v39 = vpop.trf.xlu1  ;;  %v7244_v48 = vpop.trf.xlu0 }
 0xf9f   :  { %v7332_v24 = vcombine.low %v7212_v5, %v7276_v39 }
 0xfa1   :  { %v7339_v6 = vrot.slane %v7332_v24, %v13147_v17 }
 0xfa2   :  { %v7260_v14 = vpop.trf.xlu0  ;;  %v7308_v27 = vpop.trf.xlu1 }
 0xfa3   :  { %v7340_v46 = vcombine.low %v7244_v48, %v7308_v27 }
 0xfa5   :  { %v7347_v22 = vrot.slane %v7340_v46, %v13147_v17  ;;  %v6056_v46 = vrot.slane %v14205_v38, %v406_v62 }
 0xfa6   :  { %v7292_v47 = vpop.trf.xlu0 }
 0xfa7   :  { %v7366_v58 = vcombine.low %v7228_v15, %v7292_v47  ;;  %v7348_v37 = vcombine.low %v7339_v6, %v7347_v22  ;;  %v7349_v61 = vcombine.high %v7339_v6, %v7347_v22  ;;  %v14350_v22 = vadd.f32 %v6056_v46, %v14210_v23 }
 0xfa9   :  { %v7373_v26 = vrot.slane %v7366_v58, %v13147_v17  ;;  %v7356_v40 = vrot.slane %v7348_v37, %v13154_v36  ;;  %v7363_v33 = vrot.slane %v7349_v61, %v13154_v36  ;;  %v6104_v58 = vcombine.low %v14244_v35, %v14314_v51 }
 0xfaa   :  { %v7324_v31 = vpop.trf.xlu0  ;;  %v6105_v37 = vcombine.high %v14244_v35, %v14314_v51  ;;  %v6121_v61 = vcombine.high %v14312_v13, %v14316_v8  ;;  %v6153_v35 = vcombine.high %v14318_v53, %v14322_v60  ;;  %v6256_v51 = vcombine.low %v14326_v21, %v14330_v20 }
 0xfab   :  { %v7374_v25 = vcombine.low %v7260_v14, %v7324_v31  ;;  %v7404_v42 = vshrl.u32 %v7356_v40, 16  ;;  %v7420_v4 = vshrl.u32 %v7363_v33, 16  ;;  %v7364_v63 = vcombine.high %v7356_v40, %v12882_v28 }
 0xfac   :  { %v7365_v5 = vcombine.high %v7363_v33, %v12882_v28  ;;  %v6120_v31 = vcombine.low %v14312_v13, %v14316_v8  ;;  %v6137_v13 = vcombine.high %v14320_v12, %v14324_v29  ;;  %v6241_v8 = vcombine.high %v14328_v0, %v14332_v54 }
 0xfad   :  { %v7381_v34 = vrot.slane %v7374_v25, %v13147_v17  ;;  %v7412_v15 = vshrl.u32 %v7364_v63, 16 }
 0xfae   :  { %v7428_v27 = vshrl.u32 %v7365_v5, 16 }
 0xfaf   :  { %v7382_v7 = vcombine.low %v7373_v26, %v7381_v34  ;;  %v7383_v56 = vcombine.high %v7373_v26, %v7381_v34  ;;  %v6152_v26 = vcombine.low %v14318_v53, %v14322_v60  ;;  %v6136_v34 = vcombine.low %v14320_v12, %v14324_v29 }
 0xfb0   :  { %v6257_v12 = vcombine.high %v14326_v21, %v14330_v20 }
 0xfb1   :  { %v7390_v49 = vrot.slane %v7382_v7, %v13154_v36  ;;  %v7397_v9 = vrot.slane %v7383_v56, %v13154_v36  ;;  %v6240_v7 = vcombine.low %v14328_v0, %v14332_v54  ;;  %v6144_v53 = vrot.slane %v6136_v34, %v13147_v17 }
 0xfb2   :  { %v6093_v38 = vpop.permute.xlu1 %6092 }
 0xfb3   :  { %v7418_v18 = vpack.i.b16 %v7397_v9, %v7363_v33  ;;  %v7402_v16 = vpack.i.b16 %v7390_v49, %v7356_v40  ;;  %v7405_v45 = vshrl.u32 %v7390_v49, 16  ;;  %v7421_v2 = vshrl.u32 %v7397_v9, 16 }
 0xfb4   :  { %v7398_v50 = vcombine.high %v7390_v49, %v12882_v28  ;;  %v7399_v19 = vcombine.high %v7397_v9, %v12882_v28  ;;  %v6112_v33 = vrot.slane %v6104_v58, %v13147_v17  ;;  %v6128_v49 = vrot.slane %v6120_v31, %v13147_v17 }
 0xfb5   :  { %7496 = vxpose.xlu0.c.b16.start.end [1/1] (short) (narrow) %v7418_v18, 16  ;;  %7432 = vxpose.xlu1.c.b16.start.end [1/1] (short) (narrow) %v7402_v16, 16  ;;  %v7406_v32 = vpack.i.b16 %v7405_v45, %v7404_v42  ;;  %v7422_v41 = vpack.i.b16 %v7421_v2, %v7420_v4  ;;  %v6119_v16 = vrot.slane %v6105_v37, %v13147_v17 }
 0xfb6   :  { %v7413_v1 = vshrl.u32 %v7398_v50, 16  ;;  %v7410_v48 = vpack.i.b16 %v7398_v50, %v7364_v63  ;;  %v7429_v14 = vshrl.u32 %v7399_v19, 16  ;;  %v7426_v24 = vpack.i.b16 %v7399_v19, %v7365_v5  ;;  %v6099_v6 = vpop.permute.xlu1 %6098 }
 0xfb7   :  { %v6272_v56 = vcombine.low %v6093_v38, %v6099_v6  ;;  %v6273_v9 = vcombine.high %v6093_v38, %v6099_v6  ;;  %v6135_v45 = vrot.slane %v6121_v61, %v13147_v17  ;;  %v6160_v2 = vrot.slane %v6152_v26, %v13147_v17 }
 0xfb8   :  { %v7414_v39 = vpack.i.b16 %v7413_v1, %v7412_v15  ;;  %v7430_v47 = vpack.i.b16 %v7429_v14, %v7428_v27  ;;  %v6248_v60 = vrot.slane %v6240_v7, %v13147_v17  ;;  %v6168_v54 = vcombine.low %v6112_v33, %v6128_v49 }
 0xfb9   :  { %7448 = vxpose.xlu0.c.b16.start.end [1/1] (short) (narrow) %v7406_v32, 16  ;;  %7512 = vxpose.xlu1.c.b16.start.end [1/1] (short) (narrow) %v7422_v41, 16  ;;  %v6280_v29 = vrot.slane %v6272_v56, %v13147_v17  ;;  %v6169_v50 = vcombine.high %v6112_v33, %v6128_v49  ;;  %v6167_v42 = vrot.slane %v6153_v35, %v13147_v17 }
 0xfba   :  { %v6151_v4 = vrot.slane %v6137_v13, %v13147_v17  ;;  %v6264_v63 = vrot.slane %v6256_v51, %v13147_v17  ;;  %v6255_v32 = vrot.slane %v6241_v8, %v13147_v17  ;;  %v6287_v41 = vrot.slane %v6273_v9, %v13147_v17 }
 0xfbb   :  { %v6184_v21 = vcombine.low %v6119_v16, %v6135_v45  ;;  %v6185_v20 = vcombine.high %v6119_v16, %v6135_v45  ;;  %v6200_v19 = vcombine.low %v6144_v53, %v6160_v2  ;;  %v6271_v5 = vrot.slane %v6257_v12, %v13147_v17 }
 0xfbc   :  { %v6201_v27 = vcombine.high %v6144_v53, %v6160_v2  ;;  %v6216_v46 = vcombine.low %v6151_v4, %v6167_v42  ;;  %v6183_v31 = vrot.slane %v6169_v50, %v13154_v36 }
 0xfbd   :  { %7480 = vxpose.xlu1.c.b16.start.end [1/1] (short) (narrow) %v7414_v39, 16  ;;  %7464 = vxpose.xlu0.c.b16.start.end [1/1] (short) (narrow) %v7410_v48, 16  ;;  %v6304_v39 = vcombine.low %v6248_v60, %v6264_v63  ;;  %v6320_v38 = vcombine.low %v6255_v32, %v6271_v5  ;;  %v6192_v6 = vrot.slane %v6184_v21, %v13154_v36 }
 0xfbe   :  { %v6199_v61 = vrot.slane %v6185_v20, %v13154_v36  ;;  %v6215_v56 = vrot.slane %v6201_v27, %v13154_v36 }
 0xfbf   :  { %v6096_v62 = vpop.permute.xlu0 %6095  ;;  %v6312_v26 = vrot.slane %v6304_v39, %v13154_v36  ;;  %v6328_v35 = vrot.slane %v6320_v38, %v13154_v36 }
 0xfc0   :  { %v6235_v50 = vcombine.high %v6183_v31, %v6215_v56 }
 0xfc1   :  { %7544 = vxpose.xlu1.c.b16.start.end [1/1] (short) (narrow) %v7430_v47, 16  ;;  %7528 = vxpose.xlu0.c.b16.start.end [1/1] (short) (narrow) %v7426_v24, 16  ;;  %v6217_v47 = vcombine.high %v6151_v4, %v6167_v42  ;;  %v6305_v24 = vcombine.high %v6248_v60, %v6264_v63 }
 0xfc3   :  { %v6102_v23 = vpop.permute.xlu0 %6101  ;;  %v6231_v33 = vrot.slane %v6217_v47, %v13154_v36  ;;  %v6319_v49 = vrot.slane %v6305_v24, %v13154_v36 }
 0xfc4   :  { %v6288_v25 = vcombine.low %v6096_v62, %v6102_v23  ;;  %v6289_v40 = vcombine.high %v6096_v62, %v6102_v23  ;;  %v6176_v62 = vrot.slane %v6168_v54, %v13154_v36  ;;  %v6321_v23 = vcombine.high %v6255_v32, %v6271_v5 }
 0xfc5   :  { %6714 = vrot.lane.b32.xlu1 %v14350_v22, %s12887_s22  ;;  %v6234_v54 = vcombine.low %v6183_v31, %v6215_v56  ;;  %v6238_v63 = vcombine.low %v6199_v61, %v6231_v33  ;;  %v6239_v32 = vcombine.high %v6199_v61, %v6231_v33 }
 0xfc6   :  { %v6296_v18 = vrot.slane %v6288_v25, %v13147_v17  ;;  %v6303_v0 = vrot.slane %v6289_v40, %v13147_v17  ;;  %v6208_v25 = vrot.slane %v6200_v19, %v13154_v36  ;;  %v6224_v40 = vrot.slane %v6216_v46, %v13154_v36 }
 0xfc7   :  { %v6335_v13 = vrot.slane %v6321_v23, %v13154_v36 }
 0xfc8   :  { %v6336_v1 = vcombine.low %v6280_v29, %v6296_v18  ;;  %v6337_v15 = vcombine.high %v6280_v29, %v6296_v18  ;;  %v6352_v48 = vcombine.low %v6287_v41, %v6303_v0  ;;  %v6353_v14 = vcombine.high %v6287_v41, %v6303_v0 }
 0xfc9   :  { %6717 = vrot.lane.b32.xlu1 %v14350_v22, %s12884_s6  ;;  %v6232_v9 = vcombine.low %v6176_v62, %v6208_v25  ;;  %v6233_v18 = vcombine.high %v6176_v62, %v6208_v25  ;;  %v6236_v42 = vcombine.low %v6192_v6, %v6224_v40  ;;  %v6237_v4 = vcombine.high %v6192_v6, %v6224_v40 }
 0xfca   :  { %6711 = vrot.lane.b32.xlu0 %v14350_v22, %s12885_s20  ;;  %v6344_v58 = vrot.slane %v6336_v1, %v13154_v36  ;;  %v6351_v37 = vrot.slane %v6337_v15, %v13154_v36  ;;  %v6360_v34 = vrot.slane %v6352_v48, %v13154_v36  ;;  %v6367_v7 = vrot.slane %v6353_v14, %v13154_v36 }
 0xfcc   :  { %v6368_v51 = vcombine.low %v6312_v26, %v6344_v58  ;;  %v6369_v8 = vcombine.high %v6312_v26, %v6344_v58  ;;  %v6370_v16 = vcombine.low %v6319_v49, %v6351_v37  ;;  %v6371_v45 = vcombine.high %v6319_v49, %v6351_v37 }
 0xfcd   :  { %6723 = vrot.lane.b32.xlu1 %v14350_v22, %s12891_s26  ;;  %v6372_v2 = vcombine.low %v6328_v35, %v6360_v34  ;;  %v6373_v53 = vcombine.high %v6328_v35, %v6360_v34  ;;  %v6374_v12 = vcombine.low %v6335_v13, %v6367_v7  ;;  %v6375_v60 = vcombine.high %v6335_v13, %v6367_v7 }
 0xfce   :  { %6720 = vrot.lane.b32.xlu0 %v14350_v22, %s12889_s24  ;;  %v6376_v41 = vpack.c.bf16 %v6368_v51, %v6232_v9  ;;  %v6377_v1 = vpack.c.bf16 %v6369_v8, %v6233_v18  ;;  %v6378_v21 = vpack.c.bf16 %v6370_v16, %v6234_v54  ;;  %v6379_v20 = vpack.c.bf16 %v6371_v45, %v6235_v50 }
 0xfcf   :  { %v6380_v19 = vpack.c.bf16 %v6372_v2, %v6236_v42  ;;  %v6381_v15 = vpack.c.bf16 %v6373_v53, %v6237_v4  ;;  %v6382_v5 = vpack.c.bf16 %v6374_v12, %v6238_v63  ;;  %v6383_v39 = vpack.c.bf16 %v6375_v60, %v6239_v32 }
 0xfd0   :  { %v14438_v27 = vpack.i.b16 %v6377_v1, %v6376_v41  ;;  %v7040_v46 = vshrl.u32 %v6376_v41, 16  ;;  %v14440_v47 = vpack.i.b16 %v6379_v20, %v6378_v21  ;;  %v7041_v37 = vshrl.u32 %v6377_v1, 16 }
 0xfd1   :  { %6729 = vrot.lane.b32.xlu1 %v14350_v22, %s12893_s29  ;;  %v14442_v38 = vpack.i.b16 %v6381_v15, %v6380_v19  ;;  %v14444_v23 = vpack.i.b16 %v6383_v39, %v6382_v5  ;;  %v7048_v61 = vshrl.u32 %v6378_v21, 16  ;;  %v7049_v7 = vshrl.u32 %v6379_v20, 16 }
 0xfd2   :  { %6726 = vrot.lane.b32.xlu0 %v14350_v22, %s12892_s28  ;;  %v7056_v56 = vshrl.u32 %v6380_v19, 16  ;;  %v7057_v40 = vshrl.u32 %v6381_v15, 16  ;;  %v7064_v33 = vshrl.u32 %v6382_v5, 16  ;;  %v7065_v8 = vshrl.u32 %v6383_v39, 16 }
 0xfd3   :  { %v7068_v9 = vcombine.low %v14438_v27, %v14442_v38  ;;  %v7084_v18 = vcombine.low %v14440_v47, %v14444_v23  ;;  %v14456_v54 = vpack.i.b16 %v7049_v7, %v7048_v61 }
 0xfd4   :  { %v14464_v32 = vpack.i.b16 %v7057_v40, %v7056_v56  ;;  %v14466_v41 = vpack.i.b16 %v7065_v8, %v7064_v33 }
 0xfd5   :  { %6735 = vrot.lane.b32.xlu1 %v14350_v22, %s12894_s5  ;;  %v7076_v1 = vrot.slane %v7068_v9, %v13147_v17  ;;  %v7092_v21 = vrot.slane %v7084_v18, %v13147_v17 }
 0xfd6   :  { %6732 = vrot.lane.b32.xlu0 %v14350_v22, %s12870_s1 }
 0xfd9   :  { %6741 = vrot.lane.b32.xlu1 %v14350_v22, %s12895_s9 }
 0xfda   :  { %6738 = vrot.lane.b32.xlu0 %v14350_v22, %s12886_s21 }
 0xfdd   :  { %6747 = vrot.lane.b32.xlu1 %v14350_v22, %s12896_s10 }
 0xfde   :  { %6744 = vrot.lane.b32.xlu0 %v14350_v22, %s12888_s23 }
 0xfe1   :  { %6753 = vrot.lane.b32.xlu1 %v14350_v22, %s12880_s27 }
 0xfe2   :  { %6750 = vrot.lane.b32.xlu0 %v14350_v22, %s12890_s25 }
0x101b   :  { %v7440_v29 = vpop.trf.xlu1  ;;  %v7504_v0 = vpop.trf.xlu0 }
0x101c   :  { %v7564_v26 = vshrl.u32 %v7440_v29, 16  ;;  %v7580_v34 = vshrl.u32 %v7504_v0, 16 }
0x101f   :  { %v7520_v48 = vpop.trf.xlu1  ;;  %v7456_v14 = vpop.trf.xlu0 }
0x1020   :  { %v7581_v24 = vshrl.u32 %v7520_v48, 16  ;;  %v7565_v62 = vshrl.u32 %v7456_v14, 16  ;;  %v7578_v58 = vpack.i.b16 %v7520_v48, %v7504_v0  ;;  %v7562_v31 = vpack.i.b16 %v7456_v14, %v7440_v29 }
0x1021   :  { %v14454_v0 = vpack.i.b16 %v7041_v37, %v7040_v46 }
0x1022   :  { %v14446_v49 = vpack.i.b16 %v7581_v24, %v7580_v34  ;;  %v14448_v35 = vpack.i.b16 %v7565_v62, %v7564_v26  ;;  %v7592_v16 = vcombine.low %v7562_v31, %v7578_v58  ;;  %v7100_v24 = vcombine.low %v7076_v1, %v7092_v21 }
0x1023   :  { %v7488_v6 = vpop.trf.xlu1  ;;  %v7472_v25 = vpop.trf.xlu0  ;;  %v7101_v62 = vcombine.high %v7076_v1, %v7092_v21  ;;  %v7593_v37 = vcombine.high %v7562_v31, %v7578_v58 }
0x1024   :  { %v7573_v13 = vshrl.u32 %v7488_v6, 16  ;;  %v7572_v51 = vshrl.u32 %v7472_v25, 16  ;;  %v7570_v53 = vpack.i.b16 %v7488_v6, %v7472_v25  ;;  %v7660_v50 = vcombine.low %v14448_v35, %v14446_v49 }
0x1025   :  { %v7600_v20 = vrot.slane %v7592_v16, %v13147_v17  ;;  %v7136_v6 = vcombine.low %v14454_v0, %v14464_v32  ;;  %v7152_v25 = vcombine.low %v14456_v54, %v14466_v41  ;;  %v7108_v8 = vrot.slane %v7100_v24, %v13154_v36 }
0x1026   :  { %v14460_v42 = vpack.i.b16 %v7573_v13, %v7572_v51  ;;  %v14475_v14 = vrot.slane %v7660_v50, %v13147_v17  ;;  %v14502_v51 = vrot.slane %v7593_v37, %v13147_v17  ;;  %v7115_v9 = vrot.slane %v7101_v62, %v13154_v36 }
0x1027   :  { %v7552_v45 = vpop.trf.xlu1  ;;  %v7536_v2 = vpop.trf.xlu0  ;;  %v14496_v58 = vrot.slane %v7136_v6, %v13147_v17  ;;  %v14499_v31 = vrot.slane %v7152_v25, %v13147_v17  ;;  %v7132_v6 = vcombine.high %v7108_v8, %v12882_v28 }
0x1028   :  { %v7589_v12 = vshrl.u32 %v7552_v45, 16  ;;  %v7586_v60 = vpack.i.b16 %v7552_v45, %v7536_v2  ;;  %v7588_v29 = vshrl.u32 %v7536_v2, 16  ;;  %v7133_v50 = vcombine.high %v7115_v9, %v12882_v28 }
0x102a   :  { %v14462_v4 = vpack.i.b16 %v7589_v12, %v7588_v29  ;;  %v7608_v63 = vcombine.low %v7570_v53, %v7586_v60  ;;  %v7609_v5 = vcombine.high %v7570_v53, %v7586_v60  ;;  %v7069_v53 = vcombine.high %v14438_v27, %v14442_v38 }
0x102b   :  { %v7085_v12 = vcombine.high %v14440_v47, %v14444_v23  ;;  %v7168_v60 = vcombine.low %v14496_v58, %v14499_v31 }
0x102c   :  { %v7616_v19 = vrot.slane %v7608_v63, %v13147_v17  ;;  %v7676_v15 = vcombine.low %v14460_v42, %v14462_v4  ;;  %v14489_v7 = vrot.slane %v7609_v5, %v13147_v17  ;;  %v7083_v63 = vrot.slane %v7069_v53, %v13147_v17 }
0x102d   :  { %v7176_v23 = vrot.slane %v7168_v60, %v13154_v36  ;;  %v7099_v1 = vrot.slane %v7085_v12, %v13147_v17 }
0x102e   :  { %v7624_v39 = vcombine.low %v7600_v20, %v7616_v19  ;;  %v7625_v48 = vcombine.high %v7600_v20, %v7616_v19  ;;  %v14478_v46 = vrot.slane %v7676_v15, %v13147_v17  ;;  %v7640_v45 = vcombine.low %v14502_v51, %v14489_v7 }
0x102f   :  { %v7116_v5 = vcombine.low %v7083_v63, %v7099_v1  ;;  %v7117_v37 = vcombine.high %v7083_v63, %v7099_v1 }
0x1030   :  { %v7632_v61 = vrot.slane %v7624_v39, %v13154_v36  ;;  %v7639_v26 = vrot.slane %v7625_v48, %v13154_v36  ;;  %v7692_v34 = vcombine.low %v14475_v14, %v14478_v46  ;;  %v7648_v27 = vrot.slane %v7640_v45, %v13154_v36 }
0x1031   :  { %v7124_v25 = vrot.slane %v7116_v5, %v13154_v36 }
0x1032   :  { %v7732_v56 = vsel %vm2083_vm2, %v7632_v61, 0  ;;  %v7916_v40 = vsel %vm2083_vm2, %v7639_v26, 0  ;;  %v7700_v33 = vrot.slane %v7692_v34, %v13154_v36  ;;  %v7657_v13 = vcombine.high %v7639_v26, %v12882_v28 }
0x1033   :  { %12143 = vmatpush3.bf16.msra.mxu1 %v7732_v56  ;;  %12167 = vmatpush3.bf16.msra.mxu0 %v7916_v40  ;;  %v7656_v29 = vcombine.high %v7632_v61, %v12882_v28  ;;  %v8100_v20 = vsel %vm2083_vm2, %v7648_v27, 0  ;;  %v7658_v48 = vcombine.high %v7648_v27, %v12882_v28  ;;  %v7641_v61 = vcombine.high %v14502_v51, %v14489_v7 }
0x1034   :  { %12148 = vmatprep.subr.bf16.mxu1 %v12881_v3  ;;  %12178 = vmatprep.subr.bf16.mxu0 %v12881_v3  ;;  %v7778_v18 = vsel %vm2083_vm2, %v7700_v33, 0  ;;  %v8008_v16 = vsel %vm2083_vm2, %v7657_v13, 0  ;;  %v7724_v39 = vcombine.high %v7700_v33, %v12882_v28  ;;  %v7693_v56 = vcombine.high %v14475_v14, %v14478_v46 }
0x1035   :  { %v7824_v21 = vsel %vm2083_vm2, %v7656_v29, 0  ;;  %v8192_v34 = vsel %vm2083_vm2, %v7658_v48, 0  ;;  %v7137_v40 = vcombine.high %v14454_v0, %v14464_v32  ;;  %v7169_v7 = vcombine.high %v14496_v58, %v14499_v31 }
0x1036   :  { %12145 = vmatmul.mubr.msk.bf16.vlgmr.msra.gmra.mrb[84].mxu1 %vm2079_vm3, %v7108_v8  ;;  %12169 = vmatmul.mubr.msk.bf16.vlgmr.msra.gmra.mrb[72].mxu0 %vm2079_vm3, %v7115_v9  ;;  %v7870_v26 = vsel %vm2083_vm2, %v7724_v39, 0  ;;  %v7153_v13 = vcombine.high %v14456_v54, %v14466_v41  ;;  %v14582_v14 = vrot.slane %v7117_v37, %v13154_v36  ;;  %v7661_v0 = vcombine.high %v14448_v35, %v14446_v49 }
0x1037   :  { %12149 = vmatpush3.bf16.msra.mxu1 %v7778_v18  ;;  %12179 = vmatpush3.bf16.msra.mxu0 %v8008_v16  ;;  %v14514_v2 = vpop.permute.xlu1 %6714  ;;  %v7677_v32 = vcombine.high %v14460_v42, %v14462_v4  ;;  %v7655_v54 = vrot.slane %v7641_v61, %v13154_v36  ;;  %v7707_v41 = vrot.slane %v7693_v56, %v13154_v36 }
0x1038   :  { %12150 = vmatprep.mubr.msk.bf16.mxu1 %vm12883_vm1, %v12881_v3  ;;  %12154 = vmatprep.subr.bf16.mxu1 %v12881_v3  ;;  %v14594_v46 = vrot.slane %v7137_v40, %v13147_v17  ;;  %v7134_v49 = vcombine.high %v7124_v25, %v12882_v28  ;;  %v7183_v35 = vrot.slane %v7169_v7, %v13154_v36 }
0x1039   :  { %12180 = vmatprep.mubr.msk.bf16.mxu0 %vm12883_vm1, %v12881_v3  ;;  %12190 = vmatprep.subr.bf16.mxu0 %v12881_v3  ;;  %v14603_v42 = vrot.slane %v7153_v13, %v13147_v17  ;;  %v7200_v18 = vcombine.high %v7176_v23, %v12882_v28  ;;  %v14614_v16 = vcombine.high %v14582_v14, %v12882_v28  ;;  %v8284_v53 = vsel %vm2083_vm2, %v7655_v54, 0 }
0x103a   :  { %v6756_v45 = vcombine.low %v14350_v22, %v14514_v2  ;;  %v14620_v12 = vrot.slane %v7661_v0, %v13147_v17  ;;  %v14623_v60 = vrot.slane %v7677_v32, %v13147_v17  ;;  %v6757_v29 = vcombine.high %v14350_v22, %v14514_v2 }
0x103b   :  { %v14530_v38 = vpop.permute.xlu1 %6717  ;;  %v7659_v39 = vcombine.high %v7655_v54, %v12882_v28  ;;  %v7201_v48 = vcombine.high %v7183_v35, %v12882_v28 }
0x103c   :  { %v14532_v47 = vpop.permute.xlu0 %6711  ;;  %v6764_v5 = vrot.slane %v6756_v45, %v13147_v17 }
0x103d   :  { %v6772_v58 = vcombine.low %v14532_v47, %v14530_v38  ;;  %v6773_v27 = vcombine.high %v14532_v47, %v14530_v38 }
0x103e   :  { %12151 = vmatmul.mubr.msk.bf16.vlgmr.msra.gmra.mrb[88].mxu1 %vm2079_vm3, %v7176_v23  ;;  %12181 = vmatmul.mubr.msk.bf16.vlgmr.msra.gmra.mrb[76].mxu0 %vm2079_vm3, %v7133_v50  ;;  %v7962_v23 = vsel %vm2083_vm2, %v7707_v41, 0  ;;  %v7725_v50 = vcombine.high %v7707_v41, %v12882_v28 }
0x103f   :  { %12155 = vmatpush3.bf16.msra.mxu1 %v7824_v21  ;;  %12191 = vmatpush3.bf16.msra.mxu0 %v8100_v20  ;;  %v14542_v19 = vpop.permute.xlu1 %6723  ;;  %v14634_v63 = vrot.slane %v6772_v58, %v13147_v17 }
0x1040   :  { %v14544_v15 = vpop.permute.xlu0 %6720  ;;  %12156 = vmatprep.mubr.msk.bf16.mxu1 %vm12883_vm1, %v12881_v3  ;;  %12160 = vmatprep.subr.bf16.mxu1 %v12881_v3  ;;  %v8054_v37 = vsel %vm2083_vm2, %v7725_v50, 0 }
0x1041   :  { %12192 = vmatprep.mubr.msk.bf16.mxu0 %vm12883_vm1, %v12881_v3  ;;  %12202 = vmatprep.subr.bf16.mxu0 %v12881_v3  ;;  %v6820_v61 = vcombine.low %v6764_v5, %v14634_v63 }
0x1043   :  { %v14554_v24 = vpop.permute.xlu1 %6729 }
0x1044   :  { %v14556_v62 = vpop.permute.xlu0 %6726  ;;  %v6804_v4 = vcombine.low %v14542_v19, %v14554_v24  ;;  %v6805_v38 = vcombine.high %v14542_v19, %v14554_v24  ;;  %v7708_v19 = vcombine.low %v14620_v12, %v14623_v60  ;;  %v14655_v24 = vrot.slane %v6757_v29, %v13147_v17 }
0x1045   :  { %v6788_v8 = vcombine.low %v14544_v15, %v14556_v62 }
0x1046   :  { %12157 = vmatmul.mubr.msk.bf16.vlgmr.msra.gmra.mrb[92].mxu1 %vm2079_vm3, %v7132_v6  ;;  %12193 = vmatmul.mubr.msk.bf16.vlgmr.msra.gmra.mrb[80].mxu0 %vm2079_vm3, %v7124_v25  ;;  %v6812_v47 = vrot.slane %v6804_v4, %v13147_v17  ;;  %v14658_v6 = vrot.slane %v6773_v27, %v13147_v17  ;;  %v6789_v25 = vcombine.high %v14544_v15, %v14556_v62 }
0x1047   :  { %12161 = vmatpush3.bf16.msra.mxu1 %v7870_v26  ;;  %12203 = vmatpush3.bf16.msra.mxu0 %v8192_v34  ;;  %v14570_v33 = vpop.permute.xlu1 %6735  ;;  %v6796_v21 = vrot.slane %v6788_v8, %v13147_v17  ;;  %v6821_v26 = vcombine.high %v6764_v5, %v14634_v63  ;;  %v14669_v7 = vrot.slane %v6805_v38, %v13147_v17 }
0x1048   :  { %v14576_v51 = vpop.permute.xlu0 %6732  ;;  %12162 = vmatprep.mubr.msk.bf16.mxu1 %vm12883_vm1, %v12881_v3  ;;  %12172 = vmatprep.subr.bf16.mxu1 %v12881_v3  ;;  %v6836_v50 = vcombine.low %v14655_v24, %v14658_v6 }
0x1049   :  { %12204 = vmatprep.mubr.msk.bf16.mxu0 %vm12883_vm1, %v12881_v3  ;;  %12214 = vmatprep.subr.bf16.mxu0 %v12881_v3  ;;  %v6852_v13 = vcombine.low %v6796_v21, %v6812_v47 }
0x104b   :  { %v14598_v31 = vpop.permute.xlu1 %6741  ;;  %v6860_v45 = vrot.slane %v6852_v13, %v13154_v36 }
0x104c   :  { %v14609_v9 = vpop.permute.xlu0 %6738  ;;  %v6908_v1 = vcombine.low %v14570_v33, %v14598_v31  ;;  %v6909_v62 = vcombine.high %v14570_v33, %v14598_v31 }
0x104d   :  { %v6892_v22 = vcombine.low %v14576_v51, %v14609_v9  ;;  %v6893_v54 = vcombine.high %v14576_v51, %v14609_v9  ;;  %v6853_v9 = vcombine.high %v6796_v21, %v6812_v47 }
0x104e   :  { %12163 = vmatmul.mubr.msk.bf16.vlgmr.msra.gmra.mrb[96].mxu1 %vm2079_vm3, %v7200_v18  ;;  %12205 = vmatmul.mubr.msk.bf16.vlgmr.msra.gmra.mrb[84].mxu0 %vm2079_vm3, %v7134_v49  ;;  %v6916_v34 = vrot.slane %v6908_v1, %v13147_v17  ;;  %v14676_v49 = vrot.slane %v6789_v25, %v13147_v17  ;;  %v8376_v18 = vsel %vm2083_vm2, %v7659_v39, 0  ;;  %v7716_v1 = vrot.slane %v7708_v19, %v13154_v36 }
0x104f   :  { %12173 = vmatpush3.bf16.msra.mxu1 %v7962_v23  ;;  %12215 = vmatpush3.bf16.msra.mxu0 %v8284_v53  ;;  %v6748_v2 = vpop.permute.xlu1 %6747  ;;  %v6900_v56 = vrot.slane %v6892_v22, %v13147_v17  ;;  %v6828_v23 = vrot.slane %v6820_v61, %v13154_v36  ;;  %v6835_v22 = vrot.slane %v6821_v26, %v13154_v36 }
0x1050   :  { %v6745_v20 = vpop.permute.xlu0 %6744  ;;  %12174 = vmatprep.mubr.msk.bf16.mxu1 %vm12883_vm1, %v12881_v3  ;;  %12184 = vmatprep.subr.bf16.mxu1 %v12881_v3  ;;  %v6867_v21 = vrot.slane %v6853_v9, %v13154_v36 }
0x1051   :  { %12216 = vmatprep.mubr.msk.bf16.mxu0 %vm12883_vm1, %v12881_v3  ;;  %12226 = vmatprep.subr.bf16.mxu0 %v12881_v3  ;;  %v6956_v33 = vcombine.low %v6900_v56, %v6916_v34  ;;  %v6957_v53 = vcombine.high %v6900_v56, %v6916_v34  ;;  %v6885_v39 = vcombine.high %v6828_v23, %v6860_v45  ;;  %v8146_v56 = vsel %vm2083_vm2, %v7716_v1, 0 }
0x1053   :  { %v6754_v40 = vpop.permute.xlu1 %6753  ;;  %v6971_v5 = vrot.slane %v6957_v53, %v13154_v36 }
0x1054   :  { %v6940_v0 = vcombine.low %v6748_v2, %v6754_v40  ;;  %v6941_v32 = vcombine.high %v6748_v2, %v6754_v40  ;;  %v6751_v15 = vpop.permute.xlu0 %6750  ;;  %v6964_v2 = vrot.slane %v6956_v33, %v13154_v36 }
0x1055   :  { %v6924_v41 = vcombine.low %v6745_v20, %v6751_v15  ;;  %v6925_v58 = vcombine.high %v6745_v20, %v6751_v15  ;;  %v6868_v20 = vcombine.low %v14676_v49, %v14669_v7  ;;  %v6869_v15 = vcombine.high %v14676_v49, %v14669_v7 }
0x1056   :  { %v6948_v4 = vrot.slane %v6940_v0, %v13147_v17  ;;  %v6955_v8 = vrot.slane %v6941_v32, %v13147_v17  ;;  %12175 = vmatmul.mubr.msk.bf16.vlgmr.msra.gmra.mrb[100].mxu1 %vm2079_vm3, %v7183_v35  ;;  %12217 = vmatmul.mubr.msk.bf16.vlgmr.msra.gmra.mrb[88].mxu0 %vm2079_vm3, %v14582_v14  ;;  %v6923_v14 = vrot.slane %v6909_v62, %v13147_v17 }
0x1057   :  { %v6932_v31 = vrot.slane %v6924_v41, %v13147_v17  ;;  %v6939_v51 = vrot.slane %v6925_v58, %v13147_v17  ;;  %12185 = vmatpush3.bf16.msra.mxu1 %v8054_v37  ;;  %12227 = vmatpush3.bf16.msra.mxu0 %v8376_v18  ;;  %v6907_v35 = vrot.slane %v6893_v54, %v13147_v17 }
0x1058   :  { %12186 = vmatprep.mubr.msk.bf16.mxu1 %vm12883_vm1, %v12881_v3  ;;  %12196 = vmatprep.subr.bf16.mxu1 %v12881_v3  ;;  %v6884_v37 = vcombine.low %v6828_v23, %v6860_v45  ;;  %v6876_v62 = vrot.slane %v6868_v20, %v13154_v36  ;;  %v6887_v41 = vcombine.high %v6835_v22, %v6867_v21 }
0x1059   :  { %v6988_v29 = vcombine.low %v6932_v31, %v6948_v4  ;;  %v6989_v27 = vcombine.high %v6932_v31, %v6948_v4  ;;  %12228 = vmatprep.mubr.msk.bf16.mxu0 %vm12883_vm1, %v12881_v3  ;;  %v7004_v63 = vcombine.low %v6939_v51, %v6955_v8  ;;  %12238 = vmatprep.subr.bf16.mxu0 %v12881_v3 }
0x105a   :  { %v6972_v25 = vcombine.low %v6907_v35, %v6923_v14  ;;  %v7005_v34 = vcombine.high %v6939_v51, %v6955_v8  ;;  %v6973_v54 = vcombine.high %v6907_v35, %v6923_v14  ;;  %v6886_v58 = vcombine.low %v6835_v22, %v6867_v21 }
0x105b   :  { %v6996_v38 = vrot.slane %v6988_v29, %v13154_v36  ;;  %v7003_v47 = vrot.slane %v6989_v27, %v13154_v36  ;;  %v7012_v26 = vrot.slane %v7004_v63, %v13154_v36  ;;  %v6837_v4 = vcombine.high %v14655_v24, %v14658_v6 }
0x105c   :  { %v6844_v8 = vrot.slane %v6836_v50, %v13154_v36  ;;  %v7019_v7 = vrot.slane %v7005_v34, %v13154_v36  ;;  %v7726_v49 = vcombine.high %v7716_v1, %v12882_v28  ;;  %v6987_v9 = vrot.slane %v6973_v54, %v13154_v36 }
0x105d   :  { %v7021_v19 = vcombine.high %v6964_v2, %v6996_v38  ;;  %v7020_v61 = vcombine.low %v6964_v2, %v6996_v38  ;;  %v7023_v40 = vcombine.high %v6971_v5, %v7003_v47  ;;  %v7022_v32 = vcombine.low %v6971_v5, %v7003_v47 }
0x105e   :  { %12187 = vmatmul.mubr.msk.bf16.vlgmr.msra.gmra.mrb[104].mxu1 %vm2079_vm3, %v7201_v48  ;;  %12229 = vmatmul.mubr.msk.bf16.vlgmr.msra.gmra.mrb[92].mxu0 %vm2079_vm3, %v14614_v16  ;;  %v7184_v48 = vcombine.low %v14594_v46, %v14603_v42  ;;  %v6980_v16 = vrot.slane %v6972_v25, %v13154_v36  ;;  %v6883_v53 = vrot.slane %v6869_v15, %v13154_v36  ;;  %v8238_v35 = vsel %vm2083_vm2, %v7726_v49, 0 }
0x105f   :  { %12197 = vmatpush3.bf16.msra.mxu1 %v8146_v56  ;;  %v7029_v13 = vpack.c.bf16 %v7021_v19, %v6885_v39  ;;  %v7028_v0 = vpack.c.bf16 %v7020_v61, %v6884_v37  ;;  %12198 = vmatprep.mubr.msk.bf16.mxu1 %vm12883_vm1, %v12881_v3  ;;  %v7031_v18 = vpack.c.bf16 %v7023_v40, %v6887_v41 }
0x1060   :  { %12208 = vmatprep.subr.bf16.mxu1 %v12881_v3  ;;  %12240 = vmatprep.mubr.msk.bf16.mxu0 %vm12883_vm1, %v12881_v3  ;;  %v7030_v33 = vpack.c.bf16 %v7022_v32, %v6886_v58  ;;  %v7025_v31 = vcombine.high %v6980_v16, %v7012_v26  ;;  %v7024_v51 = vcombine.low %v6980_v16, %v7012_v26 }
0x1061   :  { %8672 = vxpose.xlu0.c.b16.start.end [1/1] (short) (narrow) %v7029_v13, 16  ;;  %8656 = vxpose.xlu1.c.b16.start.end [1/1] (short) (narrow) %v7028_v0, 16  ;;  %v7192_v45 = vrot.slane %v7184_v48, %v13154_v36  ;;  %v6889_v24 = vcombine.high %v6844_v8, %v6876_v62  ;;  %v6888_v6 = vcombine.low %v6844_v8, %v6876_v62 }
0x1062   :  { %v6851_v14 = vrot.slane %v6837_v4, %v13154_v36  ;;  %v7027_v29 = vcombine.high %v6987_v9, %v7019_v7  ;;  %v7709_v27 = vcombine.high %v14620_v12, %v14623_v60  ;;  %v7026_v63 = vcombine.low %v6987_v9, %v7019_v7 }
0x1063   :  { %v7033_v23 = vpack.c.bf16 %v7025_v31, %v6889_v24  ;;  %v7032_v50 = vpack.c.bf16 %v7024_v51, %v6888_v6  ;;  %v7202_v21 = vcombine.high %v7192_v45, %v12882_v28  ;;  %v7185_v60 = vcombine.high %v14594_v46, %v14603_v42 }
0x1064   :  { %v6891_v1 = vcombine.high %v6851_v14, %v6883_v53  ;;  %v6890_v22 = vcombine.low %v6851_v14, %v6883_v53  ;;  %v7723_v2 = vrot.slane %v7709_v27, %v13154_v36 }
0x1065   :  { %8704 = vxpose.xlu0.c.b16.start.end [1/1] (short) (narrow) %v7031_v18, 16  ;;  %8688 = vxpose.xlu1.c.b16.start.end [1/1] (short) (narrow) %v7030_v33, 16  ;;  %v7199_v5 = vrot.slane %v7185_v60, %v13154_v36 }
0x1066   :  { %12199 = vmatmul.mubr.msk.bf16.vlgmr.msra.gmra.mrb[108].mxu1 %vm2079_vm3, %v7192_v45  ;;  %v7035_v38 = vpack.c.bf16 %v7027_v29, %v6891_v1  ;;  %v7034_v47 = vpack.c.bf16 %v7026_v63, %v6890_v22  ;;  %v8330_v12 = vsel %vm2083_vm2, %v7723_v2, 0  ;;  %v7727_v20 = vcombine.high %v7723_v2, %v12882_v28 }
0x1067   :  { %12209 = vmatpush3.bf16.msra.mxu1 %v8238_v35  ;;  %12210 = vmatprep.mubr.msk.bf16.mxu1 %vm12883_vm1, %v12881_v3  ;;  %v7203_v25 = vcombine.high %v7199_v5, %v12882_v28 }
0x1068   :  { %12220 = vmatprep.subr.bf16.mxu1 %v12881_v3  ;;  %v8422_v39 = vsel %vm2083_vm2, %v7727_v20, 0  ;;  %vm15303_vm2 = vcmask 392192  }
0x1069   :  { %8736 = vxpose.xlu0.c.b16.start.end [1/1] (short) (narrow) %v7033_v23, 16  ;;  %8720 = vxpose.xlu1.c.b16.start.end [1/1] (short) (narrow) %v7032_v50, 16 }
0x106d   :  { %8768 = vxpose.xlu0.c.b16.start.end [1/1] (short) (narrow) %v7035_v38, 16  ;;  %8752 = vxpose.xlu1.c.b16.start.end [1/1] (short) (narrow) %v7034_v47, 16 }
0x106e   :  { %12211 = vmatmul.mubr.msk.bf16.vlgmr.msra.gmra.mrb[112].mxu1 %vm2079_vm3, %v7202_v21 }
0x106f   :  { %12221 = vmatpush3.bf16.msra.mxu1 %v8330_v12  ;;  %12222 = vmatprep.mubr.msk.bf16.mxu1 %vm12883_vm1, %v12881_v3 }
0x1070   :  { %12232 = vmatprep.subr.bf16.mxu1 %v12881_v3 }
0x1076   :  { %12223 = vmatmul.mubr.msk.bf16.vlgmr.msra.gmra.mrb[116].mxu1 %vm2079_vm3, %v7199_v5 }
0x1077   :  { %12233 = vmatpush3.bf16.msra.mxu1 %v8422_v39  ;;  %12234 = vmatprep.mubr.msk.bf16.mxu1 %vm12883_vm1, %v12881_v3 }
0x1078   :  { %12244 = vmatprep.subr.bf16.mxu1 %v12881_v3 }
0x107e   :  { %12235 = vmatmul.mubr.msk.bf16.vlgmr.msra.gmra.mrb[120].mxu1 %vm2079_vm3, %v7203_v25 }
0x107f   :  { %12246 = vmatprep.mubr.msk.bf16.mxu1 %vm12883_vm1, %v12881_v3 }
0x10c7   :  { %v8680_v46 = vpop.trf.xlu0  ;;  %v8664_v42 = vpop.trf.xlu1 }
0x10cb   :  { %v8712_v19 = vpop.trf.xlu0  ;;  %v8696_v37 = vpop.trf.xlu1 }
0x10cf   :  { %v8744_v61 = vpop.trf.xlu0  ;;  %v8728_v34 = vpop.trf.xlu1 }
0x10d0   :  { %v8818_v26 = vcombine.low %v8680_v46, %v8744_v61  ;;  %v8784_v56 = vcombine.low %v8664_v42, %v8728_v34 }
0x10d2   :  { %v8825_v0 = vrot.slane %v8818_v26, %v13147_v17  ;;  %v8791_v32 = vrot.slane %v8784_v56, %v13147_v17 }
0x10d3   :  { %v8776_v40 = vpop.trf.xlu0  ;;  %v8760_v13 = vpop.trf.xlu1 }
0x10d4   :  { %v8826_v15 = vcombine.low %v8712_v19, %v8776_v40  ;;  %v8792_v62 = vcombine.low %v8696_v37, %v8760_v13 }
0x10d6   :  { %v8833_v54 = vrot.slane %v8826_v15, %v13147_v17  ;;  %v8799_v48 = vrot.slane %v8792_v62, %v13147_v17 }
0x10d8   :  { %v8834_v16 = vcombine.low %v8825_v0, %v8833_v54  ;;  %v8835_v41 = vcombine.high %v8825_v0, %v8833_v54  ;;  %v8800_v58 = vcombine.low %v8791_v32, %v8799_v48  ;;  %v8801_v4 = vcombine.high %v8791_v32, %v8799_v48 }
0x10da   :  { %v8842_v8 = vrot.slane %v8834_v16, %v13154_v36  ;;  %v14765_v7 = vrot.slane %v8835_v41, %v13154_v36  ;;  %v8808_v49 = vrot.slane %v8800_v58, %v13154_v36  ;;  %v14769_v18 = vrot.slane %v8801_v4, %v13154_v36 }
0x10dc   :  { %v8856_v33 = vshrl.u32 %v8808_v49, 16  ;;  %v8857_v31 = vshrl.u32 %v8842_v8, 16  ;;  %v8816_v51 = vcombine.high %v8808_v49, %v12882_v28  ;;  %v8850_v9 = vcombine.high %v8842_v8, %v12882_v28 }
0x10dd   :  { %v8854_v45 = vpack.i.b16 %v8842_v8, %v8808_v49  ;;  %v8870_v53 = vpack.i.b16 %v14765_v7, %v14769_v18  ;;  %v8872_v24 = vshrl.u32 %v14769_v18, 16  ;;  %v8873_v6 = vshrl.u32 %v14765_v7, 16 }
0x10de   :  { %v8858_v14 = vpack.i.b16 %v8857_v31, %v8856_v33  ;;  %v8864_v35 = vshrl.u32 %v8816_v51, 16  ;;  %v8865_v29 = vshrl.u32 %v8850_v9, 16  ;;  %v8862_v27 = vpack.i.b16 %v8850_v9, %v8816_v51 }
0x10df   :  { %8884 = vxpose.xlu1.c.b16.start.end [1/1] (short) (narrow) %v8854_v45, 16  ;;  %v14777_v23 = vpack.i.b16 %v8873_v6, %v8872_v24  ;;  %v14781_v50 = vcombine.high %v14769_v18, %v12882_v28  ;;  %v14785_v63 = vcombine.high %v14765_v7, %v12882_v28 }
0x10e0   :  { %8900 = vxpose.xlu0.c.b16.start.end [1/1] (short) (narrow) %v8858_v14, 16  ;;  %v8866_v1 = vpack.i.b16 %v8865_v29, %v8864_v35 }
0x10e1   :  { %v8878_v22 = vpack.i.b16 %v14785_v63, %v14781_v50  ;;  %v8880_v2 = vshrl.u32 %v14781_v50, 16  ;;  %v8881_v38 = vshrl.u32 %v14785_v63, 16 }
0x10e3   :  { %8916 = vxpose.xlu1.c.b16.start.end [1/1] (short) (narrow) %v8862_v27, 16  ;;  %v14791_v47 = vpack.i.b16 %v8881_v38, %v8880_v2 }
0x10e4   :  { %8932 = vxpose.xlu0.c.b16.start.end [1/1] (short) (narrow) %v8866_v1, 16 }
0x1109   :  { %v14793_v21 = vpop.f32.mrb[84].mxu1  ;;  %v14795_v12 = vpop.f32.mrb[72].mxu0 }
0x110a   :  { %v12146_v60 = vpop.f32.mrb[85].mxu1  ;;  %v12170_v20 = vpop.f32.mrb[73].mxu0  ;;  %v8464_v5 = vsel %vm2079_vm3, %v14793_v21, -inf  ;;  %v8476_v19 = vsel %vm2079_vm3, %v14795_v12, -inf }
0x110b   :  { %v7771_v39 = vpop.f32.mrb[86].mxu1  ;;  %8465 = vmax.xlane.f32.xlu0 %v8464_v5  ;;  %v7955_v25 = vpop.f32.mrb[74].mxu0 }
0x110c   :  { %v12147_v46 = vpop.f32.mrb[87].mxu1  ;;  %v12171_v42 = vpop.f32.mrb[75].mxu0 }
0x110f   :  { %8477 = vmax.xlane.f32.xlu0 %v8476_v19 }
0x1111   :  { %v14801_v37 = vpop.f32.mrb[88].mxu1  ;;  %v14803_v61 = vpop.f32.mrb[76].mxu0 }
0x1112   :  { %v12152_v34 = vpop.f32.mrb[89].mxu1  ;;  %v12182_v26 = vpop.f32.mrb[77].mxu0  ;;  %v8467_v56 = vsel %vm2079_vm3, %v14801_v37, -inf  ;;  %v8482_v40 = vsel %vm2079_vm3, %v14803_v61, -inf }
0x1113   :  { %v7817_v13 = vpop.f32.mrb[90].mxu1  ;;  %8468 = vmax.xlane.f32.xlu1 %v8467_v56  ;;  %8483 = vmax.xlane.f32.xlu0 %v8482_v40  ;;  %v8047_v0 = vpop.f32.mrb[78].mxu0 }
0x1114   :  { %v12153_v32 = vpop.f32.mrb[91].mxu1  ;;  %v12183_v15 = vpop.f32.mrb[79].mxu0 }
0x1119   :  { %v14809_v62 = vpop.f32.mrb[92].mxu1  ;;  %v14811_v54 = vpop.f32.mrb[80].mxu0 }
0x111a   :  { %v12158_v48 = vpop.f32.mrb[93].mxu1  ;;  %v12194_v16 = vpop.f32.mrb[81].mxu0  ;;  %v8470_v41 = vsel %vm2079_vm3, %v14809_v62, -inf  ;;  %v8488_v58 = vsel %vm2079_vm3, %v14811_v54, -inf }
0x111b   :  { %v7863_v4 = vpop.f32.mrb[94].mxu1  ;;  %8471 = vmax.xlane.f32.xlu0 %v8470_v41  ;;  %8489 = vmax.xlane.f32.xlu1 %v8488_v58  ;;  %v8139_v8 = vpop.f32.mrb[82].mxu0 }
0x111c   :  { %v12159_v49 = vpop.f32.mrb[95].mxu1  ;;  %v12195_v33 = vpop.f32.mrb[83].mxu0 }
0x1121   :  { %v14817_v31 = vpop.f32.mrb[96].mxu1  ;;  %v14819_v51 = vpop.f32.mrb[84].mxu0 }
0x1122   :  { %v12164_v9 = vpop.f32.mrb[97].mxu1  ;;  %v12206_v45 = vpop.f32.mrb[85].mxu0  ;;  %v8473_v24 = vsel %vm2079_vm3, %v14817_v31, -inf  ;;  %v8494_v27 = vsel %vm2079_vm3, %v14819_v51, -inf }
0x1123   :  { %v7909_v6 = vpop.f32.mrb[98].mxu1  ;;  %8474 = vmax.xlane.f32.xlu1 %v8473_v24  ;;  %v8231_v14 = vpop.f32.mrb[86].mxu0 }
0x1124   :  { %v12165_v35 = vpop.f32.mrb[99].mxu1  ;;  %v12207_v29 = vpop.f32.mrb[87].mxu0 }
0x1127   :  { %8495 = vmax.xlane.f32.xlu1 %v8494_v27 }
0x1129   :  { %v14825_v1 = vpop.f32.mrb[100].mxu1  ;;  %v14827_v2 = vpop.f32.mrb[88].mxu0 }
0x112a   :  { %v12176_v38 = vpop.f32.mrb[101].mxu1  ;;  %v12218_v60 = vpop.f32.mrb[89].mxu0  ;;  %v8479_v20 = vsel %vm2079_vm3, %v14825_v1, -inf  ;;  %v8500_v42 = vsel %vm2079_vm3, %v14827_v2, -inf }
0x112b   :  { %v8001_v5 = vpop.f32.mrb[102].mxu1  ;;  %8480 = vmax.xlane.f32.xlu1 %v8479_v20  ;;  %v8323_v39 = vpop.f32.mrb[90].mxu0 }
0x112c   :  { %v12177_v25 = vpop.f32.mrb[103].mxu1  ;;  %v12219_v46 = vpop.f32.mrb[91].mxu0 }
0x112f   :  { %8501 = vmax.xlane.f32.xlu1 %v8500_v42 }
0x1131   :  { %v14833_v19 = vpop.f32.mrb[104].mxu1  ;;  %v14835_v34 = vpop.f32.mrb[92].mxu0 }
0x1132   :  { %v12188_v26 = vpop.f32.mrb[105].mxu1  ;;  %v12230_v56 = vpop.f32.mrb[93].mxu0  ;;  %v8485_v40 = vsel %vm2079_vm3, %v14833_v19, -inf }
0x1133   :  { %v8093_v13 = vpop.f32.mrb[106].mxu1  ;;  %8486 = vmax.xlane.f32.xlu0 %v8485_v40  ;;  %v8415_v0 = vpop.f32.mrb[94].mxu0  ;;  %v8506_v56 = vsel %vm2079_vm3, %v14835_v34, -inf }
0x1134   :  { %v12189_v32 = vpop.f32.mrb[107].mxu1  ;;  %v12231_v15 = vpop.f32.mrb[95].mxu0 }
0x1139   :  { %v14839_v48 = vpop.f32.mrb[108].mxu1 }
0x113a   :  { %v12200_v16 = vpop.f32.mrb[109].mxu1  ;;  %v8491_v41 = vsel %vm2079_vm3, %v14839_v48, -inf }
0x113b   :  { %v8185_v58 = vpop.f32.mrb[110].mxu1  ;;  %8492 = vmax.xlane.f32.xlu0 %v8491_v41 }
0x113c   :  { %v12201_v4 = vpop.f32.mrb[111].mxu1 }
0x1141   :  { %v14843_v8 = vpop.f32.mrb[112].mxu1 }
0x1142   :  { %v12212_v49 = vpop.f32.mrb[113].mxu1  ;;  %v8497_v33 = vsel %vm2079_vm3, %v14843_v8, -inf }
0x1143   :  { %v8277_v9 = vpop.f32.mrb[114].mxu1  ;;  %8498 = vmax.xlane.f32.xlu0 %v8497_v33 }
0x1144   :  { %v12213_v45 = vpop.f32.mrb[115].mxu1 }
0x1145   :  { %v8892_v24 = vpop.trf.xlu1 }
0x1146   :  { %v8908_v6 = vpop.trf.xlu0  ;;  %v9016_v14 = vshrl.u32 %v8892_v24, 16 }
0x1147   :  { %v9017_v35 = vshrl.u32 %v8908_v6, 16  ;;  %v14847_v29 = vpack.i.b16 %v8908_v6, %v8892_v24 }
0x1149   :  { %v14849_v27 = vpop.f32.mrb[116].mxu1  ;;  %v14851_v38 = vpack.i.b16 %v9017_v35, %v9016_v14  ;;  %v14868_v15 = vpop.trf.xlu1 }
0x114a   :  { %v12224_v60 = vpop.f32.mrb[117].mxu1  ;;  %v8503_v20 = vsel %vm2079_vm3, %v14849_v27, -inf  ;;  %v14865_v13 = vpop.trf.xlu0 }
0x114b   :  { %v8369_v5 = vpop.f32.mrb[118].mxu1  ;;  %8504 = vmax.xlane.f32.xlu0 %v8503_v20 }
0x114c   :  { %v12225_v39 = vpop.f32.mrb[119].mxu1 }
0x1151   :  { %v14855_v25 = vpop.f32.mrb[120].mxu1 }
0x1152   :  { %v12236_v46 = vpop.f32.mrb[121].mxu1  ;;  %v8509_v40 = vsel %vm2079_vm3, %v14855_v25, -inf }
0x1153   :  { %v8461_v42 = vpop.f32.mrb[122].mxu1 }
0x1154   :  { %v12237_v26 = vpop.f32.mrb[123].mxu1 }
0x115c   :  { %8948 = vxpose.xlu1.c.b16.start.end [1/1] (short) (narrow) %v8870_v53, 16 }
0x1169   :  { %8507 = vmax.xlane.f32.xlu1 %v8506_v56 }
0x1178   :  { %8964 = vxpose.xlu0.c.b16.start.end [1/1] (short) (narrow) %v14777_v23, 16 }
0x1185   :  { %8510 = vmax.xlane.f32.xlu0 %v8509_v40 }
0x1198   :  { %v8466_v0 = vpop.xlane.xlu0 %8465 }
0x1199   :  { %v8512_v32 = vsub.f32 %v14793_v21, %v8466_v0 }
0x119b   :  { %v8528_v16 = vmul.f32 1.442695, %v8512_v32 }
0x119c   :  { %v8478_v7 = vpop.xlane.xlu0 %8477 }
0x119d   :  { %12610 = vpow2.f32 %v8528_v16  ;;  %v8516_v18 = vsub.f32 %v14795_v12, %v8478_v7 }
0x119f   :  { %v8536_v53 = vmul.f32 1.442695, %v8516_v18 }
0x11a0   :  { %v8469_v41 = vpop.xlane.xlu1 %8468  ;;  %v8484_v58 = vpop.xlane.xlu0 %8483 }
0x11a1   :  { %12612 = vpow2.f32 %v8536_v53  ;;  %v8513_v23 = vsub.f32 %v14801_v37, %v8469_v41  ;;  %v8518_v4 = vsub.f32 %v14803_v61, %v8484_v58 }
0x11a3   :  { %v8530_v49 = vmul.f32 1.442695, %v8513_v23  ;;  %v8540_v33 = vmul.f32 1.442695, %v8518_v4 }
0x11a5   :  { %12614 = vpow2.f32 %v8530_v49 }
0x11a6   :  { %12616 = vpow2.f32 %v8540_v33 }
0x11a7   :  { %v14873_v21 = vpop.eup %12610 }
0x11a8   :  { %v8472_v9 = vpop.xlane.xlu0 %8471  ;;  %v8490_v45 = vpop.xlane.xlu1 %8489  ;;  %v8560_v24 = vsel %vm2079_vm3, %v14873_v21, 0.0 }
0x11a9   :  { %v8514_v12 = vsub.f32 %v14809_v62, %v8472_v9  ;;  %v8520_v6 = vsub.f32 %v14811_v54, %v8490_v45  ;;  %8561 = vadd.xlane.f32.xlu1 %v8560_v24 }
0x11ab   :  { %v14879_v14 = vpop.eup %12612  ;;  %v8532_v37 = vmul.f32 1.442695, %v8514_v12  ;;  %v8544_v61 = vmul.f32 1.442695, %v8520_v6 }
0x11ac   :  { %v8572_v35 = vsel %vm2079_vm3, %v14879_v14, 0.0 }
0x11ad   :  { %12618 = vpow2.f32 %v8532_v37  ;;  %8573 = vadd.xlane.f32.xlu1 %v8572_v35 }
0x11ae   :  { %12620 = vpow2.f32 %v8544_v61 }
0x11af   :  { %v14883_v60 = vpop.eup %12614 }
0x11b0   :  { %v14885_v20 = vpop.eup %12616  ;;  %v8475_v5 = vpop.xlane.xlu1 %8474  ;;  %v8563_v62 = vsel %vm2079_vm3, %v14883_v60, 0.0 }
0x11b1   :  { %v8515_v54 = vsub.f32 %v14817_v31, %v8475_v5  ;;  %8564 = vadd.xlane.f32.xlu0 %v8563_v62  ;;  %v8578_v39 = vsel %vm2079_vm3, %v14885_v20, 0.0 }
0x11b2   :  { %8579 = vadd.xlane.f32.xlu1 %v8578_v39 }
0x11b3   :  { %v8534_v46 = vmul.f32 1.442695, %v8515_v54 }
0x11b4   :  { %v8496_v42 = vpop.xlane.xlu1 %8495 }
0x11b5   :  { %12622 = vpow2.f32 %v8534_v46  ;;  %v8522_v26 = vsub.f32 %v14819_v51, %v8496_v42 }
0x11b7   :  { %v14893_v56 = vpop.eup %12618  ;;  %v8548_v40 = vmul.f32 1.442695, %v8522_v26 }
0x11b8   :  { %v8481_v0 = vpop.xlane.xlu1 %8480  ;;  %v8566_v32 = vsel %vm2079_vm3, %v14893_v56, 0.0  ;;  %v14897_v16 = vpop.eup %12620 }
0x11b9   :  { %12624 = vpow2.f32 %v8548_v40  ;;  %v8517_v31 = vsub.f32 %v14825_v1, %v8481_v0  ;;  %8567 = vadd.xlane.f32.xlu1 %v8566_v32  ;;  %v8584_v18 = vsel %vm2079_vm3, %v14897_v16, 0.0 }
0x11bb   :  { %v8538_v7 = vmul.f32 1.442695, %v8517_v31 }
0x11bc   :  { %v8502_v35 = vpop.xlane.xlu1 %8501 }
0x11bd   :  { %12626 = vpow2.f32 %v8538_v7  ;;  %8585 = vadd.xlane.f32.xlu1 %v8584_v18 }
0x11bf   :  { %v14902_v51 = vpop.eup %12622 }
0x11c0   :  { %v8487_v53 = vpop.xlane.xlu0 %8486  ;;  %v8569_v41 = vsel %vm2079_vm3, %v14902_v51, 0.0 }
0x11c1   :  { %v8519_v58 = vsub.f32 %v14833_v19, %v8487_v53  ;;  %8570 = vadd.xlane.f32.xlu0 %v8569_v41  ;;  %v8524_v53 = vsub.f32 %v14827_v2, %v8502_v35 }
0x11c2   :  { %v8956_v54 = vpop.trf.xlu1 }
0x11c3   :  { %v14907_v23 = vpop.eup %12624  ;;  %v8542_v4 = vmul.f32 1.442695, %v8519_v58  ;;  %v9032_v39 = vshrl.u32 %v8956_v54, 16  ;;  %v8552_v41 = vmul.f32 1.442695, %v8524_v53 }
0x11c4   :  { %v8590_v1 = vsel %vm2079_vm3, %v14907_v23, 0.0 }
0x11c5   :  { %12628 = vpow2.f32 %v8542_v4  ;;  %8591 = vadd.xlane.f32.xlu1 %v8590_v1 }
0x11c7   :  { %v14911_v49 = vpop.eup %12626 }
0x11c8   :  { %v8493_v33 = vpop.xlane.xlu0 %8492  ;;  %v8575_v9 = vsel %vm2079_vm3, %v14911_v49, 0.0 }
0x11c9   :  { %v8521_v45 = vsub.f32 %v14839_v48, %v8493_v33  ;;  %8576 = vadd.xlane.f32.xlu0 %v8575_v9 }
0x11cb   :  { %v8546_v24 = vmul.f32 1.442695, %v8521_v45 }
0x11cd   :  { %12630 = vpow2.f32 %v8546_v24 }
0x11cf   :  { %v14916_v19 = vpop.eup %12628 }
0x11d0   :  { %v8499_v12 = vpop.xlane.xlu0 %8498  ;;  %v8581_v6 = vsel %vm2079_vm3, %v14916_v19, 0.0 }
0x11d1   :  { %v8523_v37 = vsub.f32 %v14843_v8, %v8499_v12  ;;  %8582 = vadd.xlane.f32.xlu0 %v8581_v6 }
0x11d3   :  { %v8550_v61 = vmul.f32 1.442695, %v8523_v37 }
0x11d5   :  { %12632 = vpow2.f32 %v8550_v61 }
0x11d6   :  { %12634 = vpow2.f32 %v8552_v41 }
0x11d7   :  { %v14921_v5 = vpop.eup %12630 }
0x11d8   :  { %v8587_v48 = vsel %vm2079_vm3, %v14921_v5, 0.0  ;;  %v8505_v62 = vpop.xlane.xlu0 %8504 }
0x11d9   :  { %8588 = vadd.xlane.f32.xlu0 %v8587_v48  ;;  %v8525_v2 = vsub.f32 %v14849_v27, %v8505_v62 }
0x11db   :  { %v8554_v50 = vmul.f32 1.442695, %v8525_v2 }
0x11de   :  { %v8972_v46 = vpop.trf.xlu0 }
0x11df   :  { %v14925_v42 = vpop.eup %12632  ;;  %v9033_v26 = vshrl.u32 %v8972_v46, 16  ;;  %v14927_v40 = vpack.i.b16 %v8972_v46, %v8956_v54 }
0x11e0   :  { %v8593_v8 = vsel %vm2079_vm3, %v14925_v42, 0.0  ;;  %v14946_v33 = vpop.eup %12634 }
0x11e1   :  { %v14931_v0 = vpack.i.b16 %v9033_v26, %v9032_v39  ;;  %v9044_v32 = vcombine.low %v14847_v29, %v14927_v40  ;;  %v9045_v31 = vcombine.high %v14847_v29, %v14927_v40  ;;  %8594 = vadd.xlane.f32.xlu0 %v8593_v8  ;;  %v8596_v9 = vsel %vm2079_vm3, %v14946_v33, 0.0 }
0x11e3   :  { %v9112_v7 = vcombine.low %v14851_v38, %v14931_v0  ;;  %v9113_v18 = vcombine.high %v14851_v38, %v14931_v0 }
0x11e5   :  { %v9127_v29 = vrot.slane %v9113_v18, %v13147_v17 }
0x11f2   :  { %8980 = vxpose.xlu1.c.b16.start.end [1/1] (short) (narrow) %v8878_v22, 16 }
0x11f6   :  { %v8508_v58 = vpop.xlane.xlu1 %8507 }
0x11f7   :  { %v8526_v4 = vsub.f32 %v14835_v34, %v8508_v58 }
0x11f9   :  { %v8556_v1 = vmul.f32 1.442695, %v8526_v4 }
0x11fb   :  { %12636 = vpow2.f32 %v8556_v1 }
0x11fc   :  { %12638 = vpow2.f32 %v8554_v50  ;;  %v9025_v50 = vshrl.u32 %v14865_v13, 16 }
0x11ff   :  { %8597 = vadd.xlane.f32.xlu1 %v8596_v9 }
0x1205   :  { %v14950_v45 = vpop.eup %12636 }
0x1206   :  { %v8602_v24 = vsel %vm2079_vm3, %v14950_v45, 0.0  ;;  %v14957_v12 = vpop.eup %12638 }
0x1207   :  { %8603 = vadd.xlane.f32.xlu1 %v8602_v24  ;;  %v8599_v6 = vsel %vm2079_vm3, %v14957_v12, 0.0 }
0x120e   :  { %8996 = vxpose.xlu0.c.b16.start.end [1/1] (short) (narrow) %v14791_v47, 16 }
0x1212   :  { %v8511_v63 = vpop.xlane.xlu0 %8510 }
0x1213   :  { %v8527_v22 = vsub.f32 %v14855_v25, %v8511_v63  ;;  %v9024_v63 = vshrl.u32 %v14868_v15, 16 }
0x1215   :  { %v8558_v34 = vmul.f32 1.442695, %v8527_v22 }
0x1217   :  { %12640 = vpow2.f32 %v8558_v34 }
0x121b   :  { %8600 = vadd.xlane.f32.xlu0 %v8599_v6 }
0x1221   :  { %v14961_v27 = vpop.eup %12640 }
0x1222   :  { %v8605_v37 = vsel %vm2079_vm3, %v14961_v27, 0.0 }
0x1223   :  { %8606 = vadd.xlane.f32.xlu0 %v8605_v37  ;;  %v14977_v37 = vpack.i.b16 %v14865_v13, %v14868_v15  ;;  %v9052_v13 = vrot.slane %v9044_v32, %v13147_v17 }
0x1236   :  { %v8562_v61 = vpop.xlane.xlu1 %8561 }
0x1237   :  { %12642 = vrcp.f32 %v8562_v61 }
0x123a   :  { %v8574_v8 = vpop.xlane.xlu1 %8573 }
0x123e   :  { %v8565_v47 = vpop.xlane.xlu0 %8564 }
0x123f   :  { %12644 = vrcp.f32 %v8565_v47  ;;  %v8580_v53 = vpop.xlane.xlu1 %8579 }
0x1241   :  { %v12643_v35 = vpop.eup %12642 }
0x1242   :  { %v8624_v25 = vmul.f32 %v12643_v35, %v14873_v21 }
0x1244   :  { %v8640_v48 = vpack.c.bf16 %v8624_v25, %v8624_v25  ;;  %v14981_v25 = vpack.i.b16 %v9025_v50, %v9024_v63 }
0x1246   :  { %v9184_v62 = vsel %vm2079_vm3, %v8640_v48, 0  ;;  %v8568_v58 = vpop.xlane.xlu1 %8567 }
0x1247   :  { %12239 = vmatpush3.bf16.xpose.msra.mxu0 %v9184_v62  ;;  %12646 = vrcp.f32 %v8568_v58 }
0x1248   :  { %12250 = vmatprep.subr.bf16.mxu0 %v12881_v3 }
0x1249   :  { %v12645_v54 = vpop.eup %12644 }
0x124a   :  { %v8625_v39 = vmul.f32 %v12645_v54, %v14883_v60  ;;  %v8586_v4 = vpop.xlane.xlu1 %8585 }
0x124c   :  { %v8641_v46 = vpack.c.bf16 %v8625_v39, %v8625_v39 }
0x124e   :  { %v9230_v26 = vsel %vm2079_vm3, %v8641_v46, 0  ;;  %v8571_v41 = vpop.xlane.xlu0 %8570 }
0x124f   :  { %12245 = vmatpush3.bf16.xpose.msra.mxu1 %v9230_v26  ;;  %12648 = vrcp.f32 %v8571_v41 }
0x1250   :  { %12256 = vmatprep.subr.bf16.mxu1 %v12881_v3  ;;  %12650 = vrcp.f32 %v8574_v8 }
0x1251   :  { %v12647_v34 = vpop.eup %12646 }
0x1252   :  { %v8592_v9 = vpop.xlane.xlu1 %8591  ;;  %v8626_v54 = vmul.f32 %v12647_v34, %v14893_v56  ;;  %v9120_v56 = vrot.slane %v9112_v7, %v13147_v17 }
0x1254   :  { %v8642_v8 = vpack.c.bf16 %v8626_v54, %v8626_v54 }
0x1256   :  { %v8577_v21 = vpop.xlane.xlu0 %8576 }
0x1257   :  { %12652 = vrcp.f32 %v8577_v21 }
0x1258   :  { %v8988_v60 = vpop.trf.xlu1  ;;  %12654 = vrcp.f32 %v8580_v53 }
0x1259   :  { %v9040_v22 = vshrl.u32 %v8988_v60, 16  ;;  %v12649_v35 = vpop.eup %12648 }
0x125a   :  { %v8627_v46 = vmul.f32 %v12649_v35, %v14902_v51  ;;  %v12651_v41 = vpop.eup %12650  ;;  %v9276_v51 = vsel %vm2079_vm3, %v8642_v8, 0 }
0x125b   :  { %v8628_v53 = vmul.f32 %v12651_v41, %v14879_v14 }
0x125e   :  { %v8583_v1 = vpop.xlane.xlu0 %8582 }
0x125f   :  { %12656 = vrcp.f32 %v8583_v1 }
0x1260   :  { %12658 = vrcp.f32 %v8586_v4 }
0x1261   :  { %v12653_v50 = vpop.eup %12652 }
0x1262   :  { %v8629_v1 = vmul.f32 %v12653_v50, %v14911_v49  ;;  %v12655_v14 = vpop.eup %12654 }
0x1263   :  { %v8630_v35 = vmul.f32 %v12655_v14, %v14885_v20 }
0x1266   :  { %v8589_v2 = vpop.xlane.xlu0 %8588 }
0x1267   :  { %12660 = vrcp.f32 %v8589_v2 }
0x1268   :  { %12662 = vrcp.f32 %v8592_v9 }
0x126e   :  { %v14971_v24 = vpop.xlane.xlu0 %8594 }
0x126f   :  { %12664 = vrcp.f32 %v14971_v24 }
0x1274   :  { %v9004_v6 = vpop.trf.xlu0 }
0x1275   :  { %v9041_v61 = vshrl.u32 %v9004_v6, 16  ;;  %v14979_v47 = vpack.i.b16 %v9004_v6, %v8988_v60  ;;  %v8643_v60 = vpack.c.bf16 %v8627_v46, %v8627_v46  ;;  %v8645_v6 = vpack.c.bf16 %v8629_v1, %v8629_v1 }
0x1277   :  { %v14983_v48 = vpack.i.b16 %v9041_v61, %v9040_v22  ;;  %v9060_v62 = vcombine.low %v14977_v37, %v14979_v47  ;;  %v9322_v7 = vsel %vm2079_vm3, %v8643_v60, 0  ;;  %v8644_v22 = vpack.c.bf16 %v8628_v53, %v8628_v53  ;;  %v12657_v61 = vpop.eup %12656 }
0x1278   :  { %v9414_v2 = vsel %vm2079_vm3, %v8645_v6, 0  ;;  %v8631_v54 = vmul.f32 %v12657_v61, %v14916_v19  ;;  %v12659_v20 = vpop.eup %12658  ;;  %v9061_v24 = vcombine.high %v14977_v37, %v14979_v47 }
0x1279   :  { %v9068_v15 = vrot.slane %v9060_v62, %v13147_v17  ;;  %v9128_v39 = vcombine.low %v14981_v25, %v14983_v48  ;;  %v9368_v4 = vsel %vm2079_vm3, %v8644_v22, 0  ;;  %v8632_v8 = vmul.f32 %v12659_v20, %v14897_v16 }
0x127a   :  { %v8647_v9 = vpack.c.bf16 %v8631_v54, %v8631_v54  ;;  %v9075_v37 = vrot.slane %v9061_v24, %v13147_v17 }
0x127b   :  { %v9076_v26 = vcombine.low %v9052_v13, %v9068_v15  ;;  %v9136_v58 = vrot.slane %v9128_v39, %v13147_v17  ;;  %v9077_v62 = vcombine.high %v9052_v13, %v9068_v15  ;;  %v8646_v39 = vpack.c.bf16 %v8630_v35, %v8630_v35  ;;  %v12661_v15 = vpop.eup %12660 }
0x127c   :  { %v8648_v16 = vpack.c.bf16 %v8632_v8, %v8632_v8 }
0x127d   :  { %v9084_v32 = vrot.slane %v9076_v26, %v13154_v36  ;;  %v9144_v21 = vcombine.low %v9120_v56, %v9136_v58  ;;  %v9145_v46 = vcombine.high %v9120_v56, %v9136_v58  ;;  %v9091_v13 = vrot.slane %v9077_v62, %v13154_v36 }
0x127e   :  { %v9460_v19 = vsel %vm2079_vm3, %v8646_v39, 0  ;;  %v9506_v56 = vsel %vm2079_vm3, %v8647_v9, 0  ;;  %v8633_v58 = vmul.f32 %v12661_v15, %v14921_v5  ;;  %v9059_v5 = vrot.slane %v9045_v31, %v13147_v17 }
0x127f   :  { %12241 = vmatmul.mubr.msk.bf16.vlgmr.msra.gmra.mrb[96].mxu0 %vm2079_vm3, %v9084_v32  ;;  %v9152_v63 = vrot.slane %v9144_v21, %v13154_v36  ;;  %v9108_v34 = vcombine.high %v9084_v32, %v12882_v28  ;;  %v9159_v41 = vrot.slane %v9145_v46, %v13154_v36  ;;  %v12663_v32 = vpop.eup %12662  ;;  %v9129_v21 = vcombine.high %v14981_v25, %v14983_v48 }
0x1280   :  { %12251 = vmatpush3.bf16.xpose.msra.mxu0 %v9276_v51  ;;  %12252 = vmatprep.mubr.msk.bf16.mxu0 %vm12883_vm1, %v12881_v3  ;;  %v9109_v47 = vcombine.high %v9091_v13, %v12882_v28  ;;  %v8649_v60 = vpack.c.bf16 %v8633_v58, %v8633_v58  ;;  %v12665_v50 = vpop.eup %12664  ;;  %v9552_v53 = vsel %vm2079_vm3, %v8648_v16, 0  ;;  %v8634_v25 = vmul.f32 %v12663_v32, %v14907_v23 }
0x1281   :  { %12262 = vmatprep.subr.bf16.mxu0 %v12881_v3  ;;  %12247 = vmatmul.mubr.msk.bf16.vlgmr.msra.gmra.mrb[124].mxu1 %vm2079_vm3, %v9152_v63  ;;  %v9176_v49 = vcombine.high %v9152_v63, %v12882_v28  ;;  %v15058_v48 = vrot.slane %v9129_v21, %v13147_v17  ;;  %v9177_v63 = vcombine.high %v9159_v41, %v12882_v28 }
0x1282   :  { %12257 = vmatpush3.bf16.xpose.msra.mxu1 %v9322_v7  ;;  %12258 = vmatprep.mubr.msk.bf16.mxu1 %vm12883_vm1, %v12881_v3  ;;  %v9092_v7 = vcombine.low %v9059_v5, %v9075_v37  ;;  %v9598_v23 = vsel %vm2079_vm3, %v8649_v60, 0  ;;  %v8635_v40 = vmul.f32 %v12665_v50, %v14925_v42  ;;  %v8650_v31 = vpack.c.bf16 %v8634_v25, %v8634_v25 }
0x1283   :  { %12268 = vmatprep.subr.bf16.mxu1 %v12881_v3  ;;  %v9160_v22 = vcombine.low %v9127_v29, %v15058_v48 }
0x1284   :  { %v9100_v38 = vrot.slane %v9092_v7, %v13154_v36  ;;  %v8651_v0 = vpack.c.bf16 %v8635_v40, %v8635_v40  ;;  %v9644_v18 = vsel %vm2079_vm3, %v8650_v31, 0 }
0x1285   :  { %v9168_v42 = vrot.slane %v9160_v22, %v13154_v36 }
0x1287   :  { %12253 = vmatmul.mubr.msk.bf16.vlgmr.msra.gmra.mrb[100].mxu0 %vm2079_vm3, %v9108_v34  ;;  %v9690_v34 = vsel %vm2079_vm3, %v8651_v0, 0  ;;  %v9178_v62 = vcombine.high %v9168_v42, %v12882_v28 }
0x1288   :  { %12263 = vmatpush3.bf16.xpose.msra.mxu0 %v9368_v4  ;;  %12264 = vmatprep.mubr.msk.bf16.mxu0 %vm12883_vm1, %v12881_v3 }
0x1289   :  { %12274 = vmatprep.subr.bf16.mxu0 %v12881_v3  ;;  %12259 = vmatmul.mubr.msk.bf16.vlgmr.msra.gmra.mrb[128].mxu1 %vm2079_vm3, %v9176_v49 }
0x128a   :  { %12269 = vmatpush3.bf16.xpose.msra.mxu1 %v9414_v2  ;;  %12270 = vmatprep.mubr.msk.bf16.mxu1 %vm12883_vm1, %v12881_v3  ;;  %v9093_v2 = vcombine.high %v9059_v5, %v9075_v37 }
0x128b   :  { %12280 = vmatprep.subr.bf16.mxu1 %v12881_v3 }
0x128c   :  { %v8598_v26 = vpop.xlane.xlu1 %8597  ;;  %v9107_v39 = vrot.slane %v9093_v2, %v13154_v36 }
0x128d   :  { %12666 = vrcp.f32 %v8598_v26 }
0x128e   :  { %v9111_v9 = vcombine.high %v9107_v39, %v12882_v28 }
0x128f   :  { %12265 = vmatmul.mubr.msk.bf16.vlgmr.msra.gmra.mrb[104].mxu0 %vm2079_vm3, %v9091_v13 }
0x1290   :  { %12275 = vmatpush3.bf16.xpose.msra.mxu0 %v9460_v19  ;;  %12276 = vmatprep.mubr.msk.bf16.mxu0 %vm12883_vm1, %v12881_v3  ;;  %v9161_v19 = vcombine.high %v9127_v29, %v15058_v48 }
0x1291   :  { %12286 = vmatprep.subr.bf16.mxu0 %v12881_v3  ;;  %12271 = vmatmul.mubr.msk.bf16.vlgmr.msra.gmra.mrb[132].mxu1 %vm2079_vm3, %v9159_v41 }
0x1292   :  { %12281 = vmatpush3.bf16.xpose.msra.mxu1 %v9506_v56  ;;  %12282 = vmatprep.mubr.msk.bf16.mxu1 %vm12883_vm1, %v12881_v3 }
0x1293   :  { %12292 = vmatprep.subr.bf16.mxu1 %v12881_v3 }
0x1294   :  { %v8604_v51 = vpop.xlane.xlu1 %8603 }
0x1295   :  { %12668 = vrcp.f32 %v8604_v51 }
0x1297   :  { %12277 = vmatmul.mubr.msk.bf16.vlgmr.msra.gmra.mrb[108].mxu0 %vm2079_vm3, %v9109_v47  ;;  %v12667_v1 = vpop.eup %12666 }
0x1298   :  { %12287 = vmatpush3.bf16.xpose.msra.mxu0 %v9552_v53  ;;  %12288 = vmatprep.mubr.msk.bf16.mxu0 %vm12883_vm1, %v12881_v3  ;;  %v8636_v14 = vmul.f32 %v12667_v1, %v14946_v33  ;;  %v9110_v33 = vcombine.high %v9100_v38, %v12882_v28 }
0x1299   :  { %12298 = vmatprep.subr.bf16.mxu0 %v12881_v3  ;;  %12283 = vmatmul.mubr.msk.bf16.vlgmr.msra.gmra.mrb[136].mxu1 %vm2079_vm3, %v9177_v63 }
0x129a   :  { %12293 = vmatpush3.bf16.xpose.msra.mxu1 %v9598_v23  ;;  %12294 = vmatprep.mubr.msk.bf16.mxu1 %vm12883_vm1, %v12881_v3  ;;  %v8652_v6 = vpack.c.bf16 %v8636_v14, %v8636_v14 }
0x129b   :  { %12304 = vmatprep.subr.bf16.mxu1 %v12881_v3 }
0x129c   :  { %v9736_v4 = vsel %vm2079_vm3, %v8652_v6, 0 }
0x129f   :  { %12289 = vmatmul.mubr.msk.bf16.vlgmr.msra.gmra.mrb[112].mxu0 %vm2079_vm3, %v9100_v38  ;;  %v12669_v61 = vpop.eup %12668 }
0x12a0   :  { %12299 = vmatpush3.bf16.xpose.msra.mxu0 %v9644_v18  ;;  %12300 = vmatprep.mubr.msk.bf16.mxu0 %vm12883_vm1, %v12881_v3  ;;  %v8638_v35 = vmul.f32 %v12669_v61, %v14950_v45 }
0x12a1   :  { %12310 = vmatprep.subr.bf16.mxu0 %v12881_v3  ;;  %12295 = vmatmul.mubr.msk.bf16.vlgmr.msra.gmra.mrb[140].mxu1 %vm2079_vm3, %v9168_v42 }
0x12a2   :  { %12305 = vmatpush3.bf16.xpose.msra.mxu1 %v9690_v34  ;;  %12306 = vmatprep.mubr.msk.bf16.mxu1 %vm12883_vm1, %v12881_v3  ;;  %v8654_v54 = vpack.c.bf16 %v8638_v35, %v8638_v35 }
0x12a3   :  { %12316 = vmatprep.subr.bf16.mxu1 %v12881_v3 }
0x12a4   :  { %v9828_v45 = vsel %vm2079_vm3, %v8654_v54, 0 }
0x12a7   :  { %12301 = vmatmul.mubr.msk.bf16.vlgmr.msra.gmra.mrb[116].mxu0 %vm2079_vm3, %v9110_v33 }
0x12a8   :  { %12311 = vmatpush3.bf16.xpose.msra.mxu0 %v9736_v4  ;;  %v8601_v49 = vpop.xlane.xlu0 %8600  ;;  %12312 = vmatprep.mubr.msk.bf16.mxu0 %vm12883_vm1, %v12881_v3 }
0x12a9   :  { %12670 = vrcp.f32 %v8601_v49  ;;  %12322 = vmatprep.subr.bf16.mxu0 %v12881_v3  ;;  %12307 = vmatmul.mubr.msk.bf16.vlgmr.msra.gmra.mrb[144].mxu1 %vm2079_vm3, %v9178_v62 }
0x12aa   :  { %12318 = vmatprep.mubr.msk.bf16.mxu1 %vm12883_vm1, %v12881_v3 }
0x12af   :  { %12313 = vmatmul.mubr.msk.bf16.vlgmr.msra.gmra.mrb[120].mxu0 %vm2079_vm3, %v9107_v39 }
0x12b0   :  { %12323 = vmatpush3.bf16.xpose.msra.mxu0 %v9828_v45  ;;  %v8607_v20 = vpop.xlane.xlu0 %8606  ;;  %12324 = vmatprep.mubr.msk.bf16.mxu0 %vm12883_vm1, %v12881_v3 }
0x12b1   :  { %12672 = vrcp.f32 %v8607_v20  ;;  %12334 = vmatprep.subr.bf16.mxu0 %v12881_v3 }
0x12b3   :  { %v12671_v46 = vpop.eup %12670 }
0x12b4   :  { %v8637_v13 = vmul.f32 %v12671_v46, %v14957_v12  ;;  %v9175_v12 = vrot.slane %v9161_v19, %v13154_v36 }
0x12b6   :  { %v8653_v15 = vpack.c.bf16 %v8637_v13, %v8637_v13  ;;  %v9179_v58 = vcombine.high %v9175_v12, %v12882_v28 }
0x12b7   :  { %12325 = vmatmul.mubr.msk.bf16.vlgmr.msra.gmra.mrb[124].mxu0 %vm2079_vm3, %v9111_v9 }
0x12b8   :  { %v9782_v26 = vsel %vm2079_vm3, %v8653_v15, 0  ;;  %12350 = vmatprep.mubr.msk.bf16.mxu0 %vm12883_vm1, %v12881_v3 }
0x12b9   :  { %12317 = vmatpush3.bf16.xpose.msra.mxu1 %v9782_v26 }
0x12ba   :  { %12328 = vmatprep.subr.bf16.mxu1 %v12881_v3 }
0x12bb   :  { %v12673_v8 = vpop.eup %12672 }
0x12bc   :  { %v8639_v41 = vmul.f32 %v12673_v8, %v14961_v27 }
0x12be   :  { %v8655_v24 = vpack.c.bf16 %v8639_v41, %v8639_v41 }
0x12c0   :  { %12319 = vmatmul.mubr.msk.bf16.vlgmr.msra.gmra.mrb[148].mxu1 %vm2079_vm3, %v9175_v12  ;;  %v9874_v56 = vsel %vm2079_vm3, %v8655_v24, 0 }
0x12c1   :  { %12329 = vmatpush3.bf16.xpose.msra.mxu1 %v9874_v56  ;;  %12330 = vmatprep.mubr.msk.bf16.mxu1 %vm12883_vm1, %v12881_v3 }
0x12c2   :  { %12354 = vmatprep.subr.bf16.mxu1 %v12881_v3 }
0x12c8   :  { %12331 = vmatmul.mubr.msk.bf16.vlgmr.msra.gmra.mrb[152].mxu1 %vm2079_vm3, %v9179_v58 }
0x12c9   :  { %12370 = vmatprep.mubr.msk.bf16.mxu1 %vm12883_vm1, %v12881_v3 }
0x1352   :  { %v9220_v27 = vpop.f32.mrb[96].mxu0 }
0x1353   :  { %9916 = vxpose.xlu1.b32.start.end [1/1] (short) (narrow) %v9220_v27, 8  ;;  %v12242_v16 = vpop.f32.mrb[97].mxu0 }
0x1354   :  { %v9223_v32 = vpop.f32.mrb[98].mxu0  ;;  %v9266_v21 = vpop.f32.mrb[124].mxu1 }
0x1355   :  { %v12243_v37 = vpop.f32.mrb[99].mxu0  ;;  %9948 = vxpose.xlu0.b32.start.end [1/1] (short) (narrow) %v9266_v21, 8  ;;  %v12248_v47 = vpop.f32.mrb[125].mxu1 }
0x1356   :  { %v9269_v60 = vpop.f32.mrb[126].mxu1 }
0x1357   :  { %v12249_v50 = vpop.f32.mrb[127].mxu1 }
0x135a   :  { %v9312_v5 = vpop.f32.mrb[100].mxu0 }
0x135b   :  { %9980 = vxpose.xlu0.b32.start.end [1/1] (short) (narrow) %v9312_v5, 8  ;;  %v12254_v51 = vpop.f32.mrb[101].mxu0 }
0x135c   :  { %v9315_v53 = vpop.f32.mrb[102].mxu0  ;;  %v9358_v28 = vpop.f32.mrb[128].mxu1 }
0x135d   :  { %v12255_v25 = vpop.f32.mrb[103].mxu0  ;;  %v12260_v48 = vpop.f32.mrb[129].mxu1 }
0x135e   :  { %v9361_v63 = vpop.f32.mrb[130].mxu1 }
0x135f   :  { %10012 = vxpose.xlu0.b32.start.end [1/1] (short) (narrow) %v9358_v28, 8  ;;  %v12261_v7 = vpop.f32.mrb[131].mxu1 }
0x1362   :  { %v9404_v29 = vpop.f32.mrb[104].mxu0 }
0x1363   :  { %10044 = vxpose.xlu1.b32.start.end [1/1] (short) (narrow) %v9404_v29, 8  ;;  %v12266_v23 = vpop.f32.mrb[105].mxu0 }
0x1364   :  { %v9407_v40 = vpop.f32.mrb[106].mxu0  ;;  %v9450_v31 = vpop.f32.mrb[132].mxu1 }
0x1365   :  { %v12267_v1 = vpop.f32.mrb[107].mxu0  ;;  %v12272_v22 = vpop.f32.mrb[133].mxu1  ;;  %10076 = vxpose.xlu0.b32.start.end [1/1] (short) (narrow) %v9450_v31, 8 }
0x1366   :  { %v9453_v38 = vpop.f32.mrb[134].mxu1 }
0x1367   :  { %v12273_v0 = vpop.f32.mrb[135].mxu1 }
0x136a   :  { %v9496_v18 = vpop.f32.mrb[108].mxu0 }
0x136b   :  { %10108 = vxpose.xlu1.b32.start.end [1/1] (short) (narrow) %v9496_v18, 8  ;;  %v12278_v14 = vpop.f32.mrb[109].mxu0 }
0x136c   :  { %v9499_v42 = vpop.f32.mrb[110].mxu0  ;;  %v9542_v34 = vpop.f32.mrb[136].mxu1 }
0x136d   :  { %v12279_v6 = vpop.f32.mrb[111].mxu0  ;;  %v12284_v61 = vpop.f32.mrb[137].mxu1  ;;  %10140 = vxpose.xlu0.b32.start.end [1/1] (short) (narrow) %v9542_v34, 8 }
0x136e   :  { %v9545_v33 = vpop.f32.mrb[138].mxu1 }
0x136f   :  { %v12285_v4 = vpop.f32.mrb[139].mxu1 }
0x1372   :  { %v9588_v35 = vpop.f32.mrb[112].mxu0 }
0x1373   :  { %10172 = vxpose.xlu1.b32.start.end [1/1] (short) (narrow) %v9588_v35, 8  ;;  %v12290_v49 = vpop.f32.mrb[113].mxu0 }
0x1374   :  { %v9591_v62 = vpop.f32.mrb[114].mxu0  ;;  %v9634_v2 = vpop.f32.mrb[140].mxu1 }
0x1375   :  { %v12291_v54 = vpop.f32.mrb[115].mxu0  ;;  %v12296_v39 = vpop.f32.mrb[141].mxu1  ;;  %10204 = vxpose.xlu0.b32.start.end [1/1] (short) (narrow) %v9634_v2, 8 }
0x1376   :  { %v9637_v45 = vpop.f32.mrb[142].mxu1 }
0x1377   :  { %v12297_v20 = vpop.f32.mrb[143].mxu1 }
0x137a   :  { %v9680_v46 = vpop.f32.mrb[116].mxu0 }
0x137b   :  { %10236 = vxpose.xlu1.b32.start.end [1/1] (short) (narrow) %v9680_v46, 8  ;;  %v12302_v13 = vpop.f32.mrb[117].mxu0 }
0x137c   :  { %v9683_v9 = vpop.f32.mrb[118].mxu0  ;;  %v9726_v15 = vpop.f32.mrb[144].mxu1 }
0x137d   :  { %v12303_v26 = vpop.f32.mrb[119].mxu0  ;;  %v12308_v19 = vpop.f32.mrb[145].mxu1  ;;  %10268 = vxpose.xlu0.b32.start.end [1/1] (short) (narrow) %v9726_v15, 8 }
0x137e   :  { %v9729_v8 = vpop.f32.mrb[146].mxu1 }
0x137f   :  { %v12309_v41 = vpop.f32.mrb[147].mxu1 }
0x1382   :  { %v9772_v12 = vpop.f32.mrb[120].mxu0 }
0x1383   :  { %10300 = vxpose.xlu1.b32.start.end [1/1] (short) (narrow) %v9772_v12, 8  ;;  %v12314_v24 = vpop.f32.mrb[121].mxu0 }
0x1384   :  { %v9775_v56 = vpop.f32.mrb[122].mxu0 }
0x1385   :  { %v12315_v58 = vpop.f32.mrb[123].mxu0 }
0x138a   :  { %v9864_v27 = vpop.f32.mrb[124].mxu0 }
0x138b   :  { %10364 = vxpose.xlu1.b32.start.end [1/1] (short) (narrow) %v9864_v27, 8  ;;  %v12326_v16 = vpop.f32.mrb[125].mxu0 }
0x138c   :  { %v9867_v32 = vpop.f32.mrb[126].mxu0 }
0x138d   :  { %v12327_v21 = vpop.f32.mrb[127].mxu0 }
0x1393   :  { %v9818_v37 = vpop.f32.mrb[148].mxu1 }
0x1394   :  { %v12320_v47 = vpop.f32.mrb[149].mxu1  ;;  %10332 = vxpose.xlu0.b32.start.end [1/1] (short) (narrow) %v9818_v37, 8 }
0x1395   :  { %v9821_v60 = vpop.f32.mrb[150].mxu1 }
0x1396   :  { %v12321_v50 = vpop.f32.mrb[151].mxu1 }
0x139b   :  { %v9910_v5 = vpop.f32.mrb[152].mxu1 }
0x139c   :  { %v12332_v51 = vpop.f32.mrb[153].mxu1  ;;  %10396 = vxpose.xlu0.b32.start.end [1/1] (short) (narrow) %v9910_v5, 8 }
0x139d   :  { %v9913_v53 = vpop.f32.mrb[154].mxu1 }
0x139e   :  { %v12333_v28 = vpop.f32.mrb[155].mxu1 }
0x13d3   :  { %v9932_v48 = vpop.trf.xlu1 }
0x13d5   :  { %v9964_v25 = vpop.trf.xlu0 }
0x13db   :  { %v9996_v63 = vpop.trf.xlu0 }
0x13dc   :  { %v10428_v7 = vcombine.low %v9932_v48, %v9996_v63  ;;  %v10429_v29 = vcombine.high %v9932_v48, %v9996_v63 }
0x13de   :  { %v10436_v40 = vrot.slane %v10428_v7, %v13147_v17  ;;  %v10443_v31 = vrot.slane %v10429_v29, %v13147_v17 }
0x13df   :  { %v10028_v23 = vpop.trf.xlu0 }
0x13e0   :  { %v10444_v1 = vcombine.low %v9964_v25, %v10028_v23  ;;  %v10445_v22 = vcombine.high %v9964_v25, %v10028_v23 }
0x13e2   :  { %v10452_v38 = vrot.slane %v10444_v1, %v13147_v17  ;;  %v10459_v0 = vrot.slane %v10445_v22, %v13147_v17 }
0x13e3   :  { %v10060_v6 = vpop.trf.xlu1 }
0x13e4   :  { %v10492_v18 = vcombine.low %v10436_v40, %v10452_v38  ;;  %v10493_v14 = vcombine.high %v10436_v40, %v10452_v38  ;;  %v10508_v42 = vcombine.low %v10443_v31, %v10459_v0  ;;  %v10509_v34 = vcombine.high %v10443_v31, %v10459_v0 }
0x13e5   :  { %v10092_v39 = vpop.trf.xlu0 }
0x13e6   :  { %v10500_v61 = vrot.slane %v10492_v18, %v13154_v36  ;;  %v10507_v33 = vrot.slane %v10493_v14, %v13154_v36  ;;  %v10516_v4 = vrot.slane %v10508_v42, %v13154_v36  ;;  %v10523_v35 = vrot.slane %v10509_v34, %v13154_v36 }
0x13e8   :  { %v11608_v49 = vcombine.low %v10500_v61, %v10507_v33  ;;  %v11610_v62 = vcombine.high %v10500_v61, %v10507_v33  ;;  %v11612_v2 = vcombine.low %v10516_v4, %v10523_v35  ;;  %v11614_v54 = vcombine.high %v10516_v4, %v10523_v35 }
0x13ea   :  { %v10708_v45 = vrot.slane %v11608_v49, %v13147_v17  ;;  %v10724_v20 = vrot.slane %v11610_v62, %v13147_v17  ;;  %v10740_v46 = vrot.slane %v11612_v2, %v13147_v17  ;;  %v10756_v13 = vrot.slane %v11614_v54, %v13147_v17 }
0x13eb   :  { %v10124_v9 = vpop.trf.xlu1 }
0x13ec   :  { %v10460_v15 = vcombine.low %v10060_v6, %v10124_v9  ;;  %v10461_v26 = vcombine.high %v10060_v6, %v10124_v9  ;;  %v10764_v19 = vcombine.low %v10708_v45, %v10724_v20  ;;  %v10796_v8 = vcombine.low %v10740_v46, %v10756_v13 }
0x13ed   :  { %v10765_v41 = vcombine.high %v10708_v45, %v10724_v20  ;;  %v10797_v12 = vcombine.high %v10740_v46, %v10756_v13  ;;  %v10156_v24 = vpop.trf.xlu0 }
0x13ee   :  { %v10468_v56 = vrot.slane %v10460_v15, %v13147_v17  ;;  %v10475_v58 = vrot.slane %v10461_v26, %v13147_v17  ;;  %v15139_v27 = vrot.slane %v10764_v19, %v13154_v36  ;;  %v15142_v16 = vrot.slane %v10796_v8, %v13154_v36 }
0x13ef   :  { %v10476_v32 = vcombine.low %v10092_v39, %v10156_v24  ;;  %v10477_v21 = vcombine.high %v10092_v39, %v10156_v24  ;;  %v10779_v37 = vrot.slane %v10765_v41, %v13154_v36  ;;  %v10811_v47 = vrot.slane %v10797_v12, %v13154_v36 }
0x13f0   :  { %v10829_v60 = vcombine.high %v15139_v27, %v15142_v16  ;;  %v10828_v50 = vcombine.low %v15139_v27, %v15142_v16 }
0x13f1   :  { %v10484_v5 = vrot.slane %v10476_v32, %v13147_v17  ;;  %v10491_v51 = vrot.slane %v10477_v21, %v13147_v17  ;;  %v10830_v53 = vcombine.low %v10779_v37, %v10811_v47  ;;  %v10831_v28 = vcombine.high %v10779_v37, %v10811_v47 }
0x13f2   :  { %10973 = vrot.lane.b32.xlu1 %v10829_v60, %s12880_s27 }
0x13f3   :  { %v10524_v25 = vcombine.low %v10468_v56, %v10484_v5  ;;  %v10525_v48 = vcombine.high %v10468_v56, %v10484_v5  ;;  %v10540_v63 = vcombine.low %v10475_v58, %v10491_v51  ;;  %v10541_v7 = vcombine.high %v10475_v58, %v10491_v51  ;;  %10977 = vrot.lane.b32.xlu0 %v10830_v53, %s12890_s25  ;;  %v10188_v1 = vpop.trf.xlu1 }
0x13f5   :  { %v10532_v29 = vrot.slane %v10524_v25, %v13154_v36  ;;  %v10539_v23 = vrot.slane %v10525_v48, %v13154_v36  ;;  %v10548_v40 = vrot.slane %v10540_v63, %v13154_v36  ;;  %v10555_v31 = vrot.slane %v10541_v7, %v13154_v36  ;;  %v10220_v14 = vpop.trf.xlu0 }
0x13f6   :  { %10981 = vrot.lane.b32.xlu1 %v10831_v28, %s12896_s10 }
0x13f7   :  { %v11609_v22 = vcombine.low %v10532_v29, %v10539_v23  ;;  %v11611_v38 = vcombine.high %v10532_v29, %v10539_v23  ;;  %v11613_v0 = vcombine.low %v10548_v40, %v10555_v31  ;;  %v11615_v18 = vcombine.high %v10548_v40, %v10555_v31  ;;  %v12514_v31 = vld [vmem:[#allocation8 + $0x40] sm:$0xff]  }
0x13f8   :  { %12335 = vmatpush3.bf16.msra.mxu0 %v12514_v31 }
0x13f9   :  { %v10715_v42 = vrot.slane %v11609_v22, %v13147_v17  ;;  %v10731_v34 = vrot.slane %v11611_v38, %v13147_v17  ;;  %v10747_v6 = vrot.slane %v11613_v0, %v13147_v17  ;;  %v10763_v61 = vrot.slane %v11615_v18, %v13147_v17  ;;  %v12515_v18 = vld [vmem:[#allocation8 + $0x48] sm:$0xff]   ;;  %12336 = vmatprep.subr.bf16.mxu0 %v12881_v3 }
0x13fb   :  { %v10252_v33 = vpop.trf.xlu1  ;;  %v10780_v4 = vcombine.low %v10715_v42, %v10731_v34  ;;  %v10812_v35 = vcombine.low %v10747_v6, %v10763_v61  ;;  %v10781_v49 = vcombine.high %v10715_v42, %v10731_v34  ;;  %v10813_v62 = vcombine.high %v10747_v6, %v10763_v61 }
0x13fc   :  { %v10564_v2 = vcombine.low %v10188_v1, %v10252_v33  ;;  %v10565_v54 = vcombine.high %v10188_v1, %v10252_v33  ;;  %12337 = vmatpush3.bf16.msra.mxu0 %v12515_v18 }
0x13fd   :  { %v10788_v39 = vrot.slane %v10780_v4, %v13154_v36  ;;  %v10820_v45 = vrot.slane %v10812_v35, %v13154_v36  ;;  %v10795_v20 = vrot.slane %v10781_v49, %v13154_v36  ;;  %v10827_v46 = vrot.slane %v10813_v62, %v13154_v36  ;;  %v10284_v13 = vpop.trf.xlu0  ;;  %v12516_v4 = vld [vmem:[#allocation8 + $0x50] sm:$0xff]   ;;  %12338 = vmatprep.subr.bf16.mxu0 %v12881_v3 }
0x13fe   :  { %v10572_v9 = vrot.slane %v10564_v2, %v13147_v17  ;;  %v10580_v15 = vcombine.low %v10220_v14, %v10284_v13  ;;  %v10581_v26 = vcombine.high %v10220_v14, %v10284_v13  ;;  %v10579_v19 = vrot.slane %v10565_v54, %v13147_v17  ;;  %v12517_v2 = vld [vmem:[#allocation8 + $0x58] sm:$0xff]   ;;  %v12519_v13 = vld [vmem:[#allocation8 + $0x68] sm:$0xff]  }
0x13ff   :  { %v10832_v8 = vcombine.low %v10788_v39, %v10820_v45  ;;  %v10835_v41 = vcombine.high %v10795_v20, %v10827_v46  ;;  %v10833_v56 = vcombine.high %v10788_v39, %v10820_v45  ;;  %v10834_v47 = vcombine.low %v10795_v20, %v10827_v46  ;;  %v12518_v39 = vld [vmem:[#allocation8 + $0x60] sm:$0xff]  }
0x1400   :  { %v10588_v12 = vrot.slane %v10580_v15, %v13147_v17  ;;  %v10595_v24 = vrot.slane %v10581_v26, %v13147_v17  ;;  %12339 = vmatpush3.bf16.msra.mxu0 %v12516_v4 }
0x1401   :  { %10985 = vrot.lane.b32.xlu1 %v10832_v8, %s12888_s23  ;;  %10997 = vrot.lane.b32.xlu0 %v10835_v41, %s12894_s5 }
0x1402   :  { %v10628_v58 = vcombine.low %v10572_v9, %v10588_v12  ;;  %v10629_v32 = vcombine.high %v10572_v9, %v10588_v12  ;;  %v10644_v21 = vcombine.low %v10579_v19, %v10595_v24  ;;  %v10645_v37 = vcombine.high %v10579_v19, %v10595_v24  ;;  %12340 = vmatprep.subr.bf16.mxu0 %v12881_v3 }
0x1403   :  { %v10316_v62 = vpop.trf.xlu1 }
0x1404   :  { %v10636_v60 = vrot.slane %v10628_v58, %v13154_v36  ;;  %v10643_v5 = vrot.slane %v10629_v32, %v13154_v36  ;;  %v10652_v51 = vrot.slane %v10644_v21, %v13154_v36  ;;  %v10659_v53 = vrot.slane %v10645_v37, %v13154_v36  ;;  %12341 = vmatpush3.bf16.msra.mxu0 %v12517_v2  ;;  %v12520_v21 = vld [vmem:[#allocation8 + $0x70] sm:$0xff]  }
0x1405   :  { %10989 = vrot.lane.b32.xlu1 %v10833_v56, %s12895_s9  ;;  %12342 = vmatprep.subr.bf16.mxu0 %v12881_v3 }
0x1406   :  { %v11616_v28 = vcombine.low %v10636_v60, %v10643_v5  ;;  %v11618_v25 = vcombine.high %v10636_v60, %v10643_v5  ;;  %v11620_v48 = vcombine.low %v10652_v51, %v10659_v53  ;;  %v11622_v63 = vcombine.high %v10652_v51, %v10659_v53 }
0x1408   :  { %v10844_v7 = vrot.slane %v11616_v28, %v13147_v17  ;;  %v10860_v29 = vrot.slane %v11618_v25, %v13147_v17  ;;  %v10876_v23 = vrot.slane %v11620_v48, %v13147_v17  ;;  %v10892_v40 = vrot.slane %v11622_v63, %v13147_v17  ;;  %12343 = vmatpush3.bf16.msra.mxu0 %v12518_v39 }
0x1409   :  { %10993 = vrot.lane.b32.xlu1 %v10834_v47, %s12886_s21  ;;  %12344 = vmatprep.subr.bf16.mxu0 %v12881_v3 }
0x140a   :  { %v10900_v1 = vcombine.low %v10844_v7, %v10860_v29  ;;  %v10932_v22 = vcombine.low %v10876_v23, %v10892_v40  ;;  %v10901_v38 = vcombine.high %v10844_v7, %v10860_v29  ;;  %v10933_v0 = vcombine.high %v10876_v23, %v10892_v40  ;;  %v12521_v23 = vld [vmem:[#allocation8 + $0x78] sm:$0xff]  }
0x140b   :  { %v10380_v45 = vpop.trf.xlu1 }
0x140c   :  { %v10908_v14 = vrot.slane %v10900_v1, %v13154_v36  ;;  %v10940_v42 = vrot.slane %v10932_v22, %v13154_v36  ;;  %v10915_v34 = vrot.slane %v10901_v38, %v13154_v36  ;;  %v10947_v6 = vrot.slane %v10933_v0, %v13154_v36  ;;  %12345 = vmatpush3.bf16.msra.mxu0 %v12519_v13 }
0x140d   :  { %v10596_v20 = vcombine.low %v10316_v62, %v10380_v45  ;;  %v10597_v46 = vcombine.high %v10316_v62, %v10380_v45  ;;  %12346 = vmatprep.subr.bf16.mxu0 %v12881_v3 }
0x140e   :  { %v10964_v61 = vcombine.low %v10908_v14, %v10940_v42  ;;  %v10965_v33 = vcombine.high %v10908_v14, %v10940_v42  ;;  %v10966_v35 = vcombine.low %v10915_v34, %v10947_v6  ;;  %v10967_v49 = vcombine.high %v10915_v34, %v10947_v6 }
0x140f   :  { %v10604_v41 = vrot.slane %v10596_v20, %v13147_v17  ;;  %v10611_v12 = vrot.slane %v10597_v46, %v13147_v17 }
0x1410   :  { %11001 = vrot.lane.b32.xlu1 %v10964_v61, %s12870_s1  ;;  %11005 = vrot.lane.b32.xlu0 %v10965_v33, %s12893_s29 }
0x1411   :  { %12347 = vmatpush3.bf16.msra.mxu0 %v12520_v21 }
0x1412   :  { %12348 = vmatprep.subr.bf16.mxu0 %v12881_v3 }
0x1414   :  { %11009 = vrot.lane.b32.xlu1 %v10966_v35, %s12892_s28  ;;  %11013 = vrot.lane.b32.xlu0 %v10967_v49, %s12891_s26  ;;  %v10348_v54 = vpop.trf.xlu0 }
0x1415   :  { %12349 = vmatpush3.bf16.msra.mxu0 %v12521_v23 }
0x1416   :  { %12374 = vmatprep.subr.bf16.mxu0 %v12881_v3 }
0x141c   :  { %v10412_v9 = vpop.trf.xlu0 }
0x141d   :  { %v10612_v15 = vcombine.low %v10348_v54, %v10412_v9  ;;  %v10613_v26 = vcombine.high %v10348_v54, %v10412_v9 }
0x141f   :  { %v10620_v19 = vrot.slane %v10612_v15, %v13147_v17  ;;  %v10627_v8 = vrot.slane %v10613_v26, %v13147_v17 }
0x1421   :  { %v10660_v24 = vcombine.low %v10604_v41, %v10620_v19  ;;  %v10661_v56 = vcombine.high %v10604_v41, %v10620_v19  ;;  %v10676_v58 = vcombine.low %v10611_v12, %v10627_v8  ;;  %v10677_v32 = vcombine.high %v10611_v12, %v10627_v8 }
0x1423   :  { %v10668_v37 = vrot.slane %v10660_v24, %v13154_v36  ;;  %v10675_v47 = vrot.slane %v10661_v56, %v13154_v36  ;;  %v10684_v60 = vrot.slane %v10676_v58, %v13154_v36  ;;  %v10691_v5 = vrot.slane %v10677_v32, %v13154_v36 }
0x1425   :  { %v11617_v51 = vcombine.low %v10668_v37, %v10675_v47  ;;  %v11619_v53 = vcombine.high %v10668_v37, %v10675_v47  ;;  %v11621_v28 = vcombine.low %v10684_v60, %v10691_v5  ;;  %v11623_v25 = vcombine.high %v10684_v60, %v10691_v5  ;;  %v15239_v60 = vld [vmem:[#allocation13 + $0x10] sm:$0xff] }
0x1426   :  { %v11068_v5 = vrot.slane %v15239_v60, %v5433_v55 }
0x1427   :  { %v10851_v48 = vrot.slane %v11617_v51, %v13147_v17  ;;  %v10867_v63 = vrot.slane %v11619_v53, %v13147_v17  ;;  %v10883_v7 = vrot.slane %v11621_v28, %v13147_v17  ;;  %v10899_v29 = vrot.slane %v11623_v25, %v13147_v17 }
0x1429   :  { %v10916_v40 = vcombine.low %v10851_v48, %v10867_v63  ;;  %v10948_v31 = vcombine.low %v10883_v7, %v10899_v29  ;;  %v10917_v1 = vcombine.high %v10851_v48, %v10867_v63  ;;  %v10949_v22 = vcombine.high %v10883_v7, %v10899_v29  ;;  %v12522_v7 = vld [vmem:[#allocation10 + $0x40] sm:$0xff]   ;;  %v12523_v29 = vld [vmem:[#allocation10 + $0x48] sm:$0xff]  }
0x142a   :  { %12355 = vmatpush3.bf16.msra.mxu1 %v12522_v7 }
0x142b   :  { %v10924_v38 = vrot.slane %v10916_v40, %v13154_v36  ;;  %v10956_v0 = vrot.slane %v10948_v31, %v13154_v36  ;;  %v10931_v42 = vrot.slane %v10917_v1, %v13154_v36  ;;  %v10963_v34 = vrot.slane %v10949_v22, %v13154_v36  ;;  %12356 = vmatprep.subr.bf16.mxu1 %v12881_v3  ;;  %v12524_v22 = vld [vmem:[#allocation10 + $0x50] sm:$0xff]  }
0x142d   :  { %v10969_v18 = vcombine.high %v10924_v38, %v10956_v0  ;;  %v10968_v14 = vcombine.low %v10924_v38, %v10956_v0  ;;  %v10971_v17 = vcombine.high %v10931_v42, %v10963_v34  ;;  %v10970_v6 = vcombine.low %v10931_v42, %v10963_v34  ;;  %v12526_v38 = vld [vmem:[#allocation10 + $0x60] sm:$0xff]   ;;  %v12527_v0 = vld [vmem:[#allocation10 + $0x68] sm:$0xff]  }
0x142e   :  { %12357 = vmatpush3.bf16.msra.mxu1 %v12523_v29  ;;  %v12530_v42 = vld [vmem:[#allocation11 + $0x40] sm:$0xff]  }
0x142f   :  { %11021 = vrot.lane.b32.xlu0 %v10969_v18, %s12884_s6  ;;  %11017 = vrot.lane.b32.xlu1 %v10968_v14, %s12889_s24  ;;  %v12528_v18 = vld [vmem:[#allocation10 + $0x70] sm:$0xff]   ;;  %v12529_v14 = vld [vmem:[#allocation10 + $0x78] sm:$0xff]  }
0x1430   :  { %12358 = vmatprep.subr.bf16.mxu1 %v12881_v3 }
0x1432   :  { %12359 = vmatpush3.bf16.msra.mxu1 %v12524_v22 }
0x1433   :  { %11029 = vrot.lane.b32.xlu0 %v10971_v17, %s12885_s20  ;;  %11025 = vrot.lane.b32.xlu1 %v10970_v6, %s12887_s22 }
0x1434   :  { %12360 = vmatprep.subr.bf16.mxu1 %v12881_v3 }
0x1464   :  { %v10974_v61 = vpop.permute.xlu1 %10973 }
0x1465   :  { %v11032_v49 = vsel %vm2079_vm3, %v10828_v50, %v10974_v61  ;;  %v10978_v36 = vpop.permute.xlu0 %10977  ;;  %v11173_v61 = vrot.slane %v15239_v60, %v5538_v52  ;;  %v12534_v52 = vld [vmem:[#allocation11 + $0x60] sm:$0xff]  }
0x1466   :  { %v11033_v2 = vsel %vm5386_vm4, %v11032_v49, %v10978_v36 }
0x1468   :  { %v10982_v33 = vpop.permute.xlu1 %10981 }
0x1469   :  { %v11034_v54 = vsel %vm5388_vm5, %v11033_v2, %v10982_v33  ;;  %v12531_v2 = vld [vmem:[#allocation11 + $0x48] sm:$0xff]  }
0x1473   :  { %v10986_v4 = vpop.permute.xlu1 %10985  ;;  %v10998_v39 = vpop.permute.xlu0 %10997 }
0x1474   :  { %v11035_v45 = vsel %vm5390_vm6, %v11034_v54, %v10986_v4  ;;  %v12532_v54 = vld [vmem:[#allocation11 + $0x50] sm:$0xff]  }
0x1477   :  { %v10990_v35 = vpop.permute.xlu1 %10989 }
0x1478   :  { %v11036_v20 = vsel %vm5392_vm7, %v11035_v45, %v10990_v35  ;;  %v11178_v35 = vrot.slane %v15239_v60, %v5543_v11  ;;  %v12535_v45 = vld [vmem:[#allocation11 + $0x68] sm:$0xff]   ;;  %v12536_v11 = vld [vmem:[#allocation11 + $0x70] sm:$0xff]  }
0x147b   :  { %v10994_v62 = vpop.permute.xlu1 %10993 }
0x147c   :  { %v11037_v13 = vsel %vm15303_vm2, %v11036_v20, %v10994_v62  ;;  %v12537_v20 = vld [vmem:[#allocation11 + $0x78] sm:$0xff]  }
0x147d   :  { %v11038_v15 = vsel %vm15304_vm0, %v11037_v13, %v10998_v39  ;;  %vm15305_vm0 = vcmp.lt.s32.totalorder %v13050_v10, 32  ;;  %v12533_v39 = vld [vmem:[#allocation11 + $0x58] sm:$0xff]  }
0x1482   :  { %v11002_v46 = vpop.permute.xlu1 %11001  ;;  %v11006_v9 = vpop.permute.xlu0 %11005 }
0x1483   :  { %v11039_v27 = vsel %vm5398_vm10, %v11038_v15, %v11002_v46  ;;  %v11633_v46 = vld [vmem:[%s15298_s7 + $0x8] ss:$0 sm:$0xff]  ;;  %s12899_s7 = smov [#allocation14]  }
0x1484   :  { %v11040_v50 = vsel %vm5400_vm11, %v11039_v27, %v11006_v9  ;;  %s11441_s14 = sshll.u32 %s12899_s7, 4  ;;  %s11442_s14 = int_to_ptr.vmem [resolvable:$true] %s11441_s14 }
0x1485   :  { %s12836_s15 = scalar_lea.vmem %s11442_s14, 128  ;;  %p12841_p1 = scmp.lt.s32.totalorder %s11442_s14, %s11442_s14 }
0x1486   :  { %v11010_v16 = vpop.permute.xlu1 %11009  ;;  %v11014_v26 = vpop.permute.xlu0 %11013  ;;  %p12837_p0 = scmp.ne.s32.totalorder %s11442_s14, %s12836_s15  ;;  %p12842_p2 = scmp.lt.s32.totalorder %s12836_s15, %s12836_s15 }
0x1487   :  { %v11041_v19 = vsel %vm5402_vm12, %v11040_v50, %v11010_v16 }
0x1488   :  { %v11042_v8 = vsel %vm5404_vm13, %v11041_v19, %v11014_v26  ;;  %p12843_p3 = por %p12842_p2, %p12841_p1 }
0x148a   :  { %p12844_p4 = pnand %p12843_p3, %p12837_p0 }
0x14a1   :  { %v11022_v41 = vpop.permute.xlu0 %11021  ;;  %v11018_v12 = vpop.permute.xlu1 %11017 }
0x14a2   :  { %v11043_v24 = vsel %vm5406_vm14, %v11042_v8, %v11018_v12 }
0x14a3   :  { %v11044_v58 = vsel %vm5408_vm15, %v11043_v24, %v11022_v41 }
0x14a5   :  { %v11030_v56 = vpop.permute.xlu0 %11029  ;;  %v11026_v32 = vpop.permute.xlu1 %11025 }
0x14a6   :  { %v11045_v21 = vsel %vm5410_vm9, %v11044_v58, %v11026_v32  ;;  %v11322_v32 = vrot.slane %v15239_v60, %v5684_v43  ;;  %v5799_v43 = vld [vmem:[#allocation13 + $0x18] sm:$0xff] }
0x14a7   :  { %v11046_v37 = vsel %vm5412_vm8, %v11045_v21, %v11030_v56  ;;  %v11432_v22 = vrot.slane %v5799_v43, %v13095_v57 }
0x14a8   :  { %v11047_v47 = vpack.c.bf16 %v11046_v37, %v11046_v37 }
0x14aa   :  { %12351 = vmatmul.mubr.bf16.vlgmr.msra.gmra.mrb[128].mxu0 %v11047_v47 }
0x14ab   :  { %12390 = vmatprep.mubr.msk.bf16.mxu0 %vm12883_vm1, %v12881_v3  ;;  %12375 = vmatpush3.bf16.msra.mxu0 %v12530_v42  ;;  %vm15306_vm1 = vmmov %vm15305_vm0 }
0x14ac   :  { %12376 = vmatprep.subr.bf16.mxu0 %v12881_v3 }
0x14af   :  { %12377 = vmatpush3.bf16.msra.mxu0 %v12531_v2 }
0x14b0   :  { %12378 = vmatprep.subr.bf16.mxu0 %v12881_v3 }
0x14b3   :  { %12379 = vmatpush3.bf16.msra.mxu0 %v12532_v54 }
0x14b4   :  { %12380 = vmatprep.subr.bf16.mxu0 %v12881_v3 }
0x14b7   :  { %12381 = vmatpush3.bf16.msra.mxu0 %v12533_v39 }
0x14b8   :  { %12382 = vmatprep.subr.bf16.mxu0 %v12881_v3 }
0x14bb   :  { %12383 = vmatpush3.bf16.msra.mxu0 %v12534_v52 }
0x14bc   :  { %12384 = vmatprep.subr.bf16.mxu0 %v12881_v3 }
0x14bf   :  { %12385 = vmatpush3.bf16.msra.mxu0 %v12535_v45 }
0x14c0   :  { %12386 = vmatprep.subr.bf16.mxu0 %v12881_v3 }
0x14c3   :  { %12387 = vmatpush3.bf16.msra.mxu0 %v12536_v11 }
0x14c4   :  { %12388 = vmatprep.subr.bf16.mxu0 %v12881_v3 }
0x14c7   :  { %12389 = vmatpush3.bf16.msra.mxu0 %v12537_v20 }
0x157d   :  { %v11151_v51 = vpop.f32.mrb[128].mxu0 }
0x157e   :  { %v11152_v53 = vadd.f32 %v11151_v51, %v11068_v5  ;;  %v12352_v28 = vpop.f32.mrb[129].mxu0 }
0x157f   :  { %v11154_v25 = vpop.f32.mrb[130].mxu0 }
0x1580   :  { %v11157_v48 = vadd.f32 %v11152_v53, %v14197_v59  ;;  %v12353_v63 = vpop.f32.mrb[131].mxu0  ;;  %v12525_v59 = vld [vmem:[#allocation10 + $0x58] sm:$0xff]  }
0x1581   :  { %12361 = vmatpush3.bf16.msra.mxu1 %v12525_v59 }
0x1582   :  { %11158 = vadd.xlane.f32.xlu1 %v11157_v48  ;;  %12362 = vmatprep.subr.bf16.mxu1 %v12881_v3 }
0x1585   :  { %12363 = vmatpush3.bf16.msra.mxu1 %v12526_v38 }
0x1586   :  { %12364 = vmatprep.subr.bf16.mxu1 %v12881_v3 }
0x1589   :  { %12365 = vmatpush3.bf16.msra.mxu1 %v12527_v0 }
0x158a   :  { %12366 = vmatprep.subr.bf16.mxu1 %v12881_v3 }
0x158d   :  { %12367 = vmatpush3.bf16.msra.mxu1 %v12528_v18 }
0x158e   :  { %12368 = vmatprep.subr.bf16.mxu1 %v12881_v3 }
0x1591   :  { %12369 = vmatpush3.bf16.msra.mxu1 %v12529_v14 }
0x160f   :  { %v11159_v23 = vpop.xlane.xlu1 %11158 }
0x1610   :  { %v11160_v40 = vmul.f32 0.03125, %v11159_v23 }
0x1612   :  { %v11161_v31 = vsub.f32 %v11157_v48, %v11160_v40 }
0x1614   :  { %v11162_v55 = vsel %vm15305_vm0, %v11161_v31, 0.0  ;;  %v11427_v31 = vrot.slane %v15239_v60, %v5789_v30 }
0x1615   :  { %v11163_v1 = vmul.f32 %v11162_v55, %v11162_v55 }
0x1617   :  { %11164 = vadd.xlane.f32.xlu0 %v11163_v1 }
0x16a4   :  { %v11165_v34 = vpop.xlane.xlu0 %11164 }
0x16a5   :  { %v11166_v17 = vmul.f32 0.03125, %v11165_v34 }
0x16a7   :  { %v11167_v6 = vadd.f32 1e-12, %v11166_v17 }
0x16a9   :  { %12674 = vrsqrt.f32 %v11167_v6 }
0x16b3   :  { %v12675_v33 = vpop.eup %12674 }
0x16b4   :  { %v11169_v4 = vmul.f32 %v12675_v33, %v11162_v55 }
0x16b6   :  { %v11174_v49 = vmul.f32 %v11173_v61, %v11169_v4 }
0x16b8   :  { %v11179_v36 = vadd.f32 %v11178_v35, %v11174_v49 }
0x16ba   :  { %v11180_v62 = vpack.c.bf16 %v11179_v36, %v11179_v36 }
0x16bc   :  { %12371 = vmatmul.mubr.bf16.vlgmr.msra.gmra.mrb[156].mxu1 %v11180_v62 }
0x178f   :  { %v11286_v13 = vpop.f32.mrb[156].mxu1 }
0x1790   :  { %v11287_v9 = vadd.f32 %v11633_v46, %v11286_v13  ;;  %v12372_v15 = vpop.f32.mrb[157].mxu1 }
0x1791   :  { %v11289_v27 = vpop.f32.mrb[158].mxu1 }
0x1792   :  { %v11293_v16 = vmul.f32 0.044715, %v11287_v9  ;;  %v12373_v50 = vpop.f32.mrb[159].mxu1  ;;  %v11292_v24 = vmul.f32 0.5, %v11287_v9 }
0x1794   :  { %v11294_v26 = vmul.f32 %v11293_v16, %v11287_v9 }
0x1796   :  { %v11295_v19 = vmul.f32 %v11294_v26, %v11287_v9 }
0x1798   :  { %v11296_v8 = vadd.f32 %v11295_v19, %v11287_v9 }
0x179a   :  { %v11297_v41 = vmul.f32 0.7978846, %v11296_v8 }
0x179c   :  { %12676 = vtanh.f32 %v11297_v41 }
0x17a6   :  { %v12677_v12 = vpop.eup %12676 }
0x17a7   :  { %v11299_v56 = vadd.f32 1.0, %v12677_v12 }
0x17a9   :  { %v11300_v3 = vmul.f32 %v11299_v56, %v11292_v24 }
0x17ab   :  { %v11301_v58 = vpack.c.bf16 %v11300_v3, %v11300_v3 }
0x17ad   :  { %12391 = vmatmul.mubr.bf16.vlgmr.msra.gmra.mrb[132].mxu0 %v11301_v58 }
0x1880   :  { %v11405_v21 = vpop.f32.mrb[132].mxu0 }
0x1881   :  { %v11406_v37 = vadd.f32 %v11405_v21, %v11322_v32  ;;  %v12392_v47 = vpop.f32.mrb[133].mxu0 }
0x1882   :  { %v11408_v5 = vpop.f32.mrb[134].mxu0 }
0x1883   :  { %v11411_v51 = vadd.f32 %v11406_v37, %v11179_v36  ;;  %v12393_v53 = vpop.f32.mrb[135].mxu0 }
0x1885   :  { %11412 = vadd.xlane.f32.xlu0 %v11411_v51 }
0x1912   :  { %v11413_v28 = vpop.xlane.xlu0 %11412 }
0x1913   :  { %v11414_v25 = vmul.f32 0.03125, %v11413_v28 }
0x1915   :  { %v11415_v48 = vsub.f32 %v11411_v51, %v11414_v25 }
0x1917   :  { %v11416_v63 = vsel %vm15306_vm1, %v11415_v48, 0.0 }
0x1918   :  { %v11417_v7 = vmul.f32 %v11416_v63, %v11416_v63 }
0x191a   :  { %11418 = vadd.xlane.f32.xlu1 %v11417_v7 }
0x19a7   :  { %v11419_v29 = vpop.xlane.xlu1 %11418 }
0x19a8   :  { %v11420_v23 = vmul.f32 0.03125, %v11419_v29 }
0x19aa   :  { %v11421_v40 = vadd.f32 1e-12, %v11420_v23 }
0x19ac   :  { %12678 = vrsqrt.f32 %v11421_v40 }
0x19b6   :  { %v12679_v55 = vpop.eup %12678 }
0x19b7   :  { %v11423_v1 = vmul.f32 %v12679_v55, %v11416_v63 }
0x19b9   :  { %v11428_v59 = vmul.f32 %v11427_v31, %v11423_v1 }
0x19bb   :  { %v11433_v10 = vadd.f32 %v11432_v22, %v11428_v59 }
0x19bd   :  { %11434 = vst [vmem:[#allocation14] sm:$0xff] %v11433_v10 }
0x19be   :  { %12847 = shalt.err (!%p12844_p4)
}
0x19bf   :  { %s12848_s18 = scalar_lea.hbm %s15299_s8, 128 }
0x19c0   :  { %p12849_p5 = scmp.ne.s32.totalorder %s15299_s8, %s12848_s18  ;;  %p12852_p6 = scmp.lt.u32.totalorder %s12848_s18, %s15299_s8 }
0x19c2   :  { %p12854_p7 = pnand %p12852_p6, %p12849_p5 }
0x19c4   :  { %12857 = shalt.err (!%p12854_p7)
}
0x19c5   :  { %11444 = dma.vmem_to_hbm [thread:$0]  %s11442_s14, 128, %s15299_s8, [#allocation4]  }
0x19c6   :  { %12866 = dma.done.wait [#allocation4], 128  }
0x19c7   :  { %12867 = vsyncadd [#allocation4], 4294967168 }
0x19c8   :  { %11448 = vsyncpa [#allocation3], 1 }
0x19c9   :  { %11449 = vsyncpa [#allocation6], 1 }
0x19ca   :  { %11450 = vsyncpa [#allocation9], 1 }
0x19cb   :  { %11451 = vsyncpa [#allocation12], 1 }
0x19cc   :  { %11452 = vsyncpa [#allocation4], 1 }

</bundles_post_ra>
